<compile_context>
chip_gen: v7x
topology: tpu7x:2x2x1
jax: 0.10.0
libtpu: 0.0.40
codegen_flags: <defaults>
</compile_context>

<pallas_src>
import functools

import numpy as np
import jax
import jax.numpy as jnp
from jax.experimental import pallas as pl
from jax.experimental.pallas import tpu as pltpu

_VMEM_LIMIT = 32 * 1024 * 1024   # well above the <8 MiB working sets used here


# ---------------------------------------------------------------------------
# Gabor wavelet init (same construction facemap uses for the conv1d weights)
# ---------------------------------------------------------------------------
def gabor_wavelet(sigma, f, ph, n_pts=201):
    x = np.linspace(0.0, 2.0 * np.pi, n_pts + 1)[:-1].astype("float32")
    xc = x - x.mean()
    cosine = np.cos(ph + f * xc)
    gaussian = np.exp(-(xc ** 2) / (2.0 * sigma ** 2))
    G = gaussian * cosine
    G = G / np.sqrt((G ** 2).sum(axis=-1, keepdims=True))
    return G.astype("float32")


def _round_up(n, m):
    return -(-n // m) * m


def _pick_tm(M, max_tm=512):
    """Largest row tile in {max_tm, 256, 128} that divides the 128-padded row
    count; prefer >= 2 grid steps so the parallel axis can shard on v7x."""
    Mp = _round_up(M, 128)
    for tm in (max_tm, 256, 128):
        if tm <= Mp and Mp % tm == 0 and (Mp // tm >= 2 or Mp == 128):
            return tm
    return 128


def _pad_rows(a, m):
    M = a.shape[0]
    Mp = _round_up(M, m)
    if Mp == M:
        return a
    return jnp.pad(a, ((0, Mp - M), (0, 0)))


# ---------------------------------------------------------------------------
# Pallas kernel: fused  y = x @ W + b  (+ optional ReLU), bf16 in / f32 acc
# ---------------------------------------------------------------------------
def _linear_kernel(x_ref, w_ref, b_ref, o_ref, *, apply_relu):
    y = jnp.dot(x_ref[...], w_ref[...], preferred_element_type=jnp.float32)
    y = y + b_ref[...]
    if apply_relu:
        y = jnp.maximum(y, 0.0)
    o_ref[...] = y.astype(o_ref.dtype)


def pallas_linear(x2d, w, b, *, apply_relu, out_dtype=jnp.float32, max_tm=512):
    """x2d: (M, K), w: (K, N), b: (N,) -> (M, N) out_dtype.
    Rows padded to a multiple of the chosen row tile, cropped after."""
    M, K = x2d.shape
    Kw, N = w.shape
    assert K == Kw, (K, Kw)
    tm = _pick_tm(M, max_tm)
    xp = _pad_rows(x2d.astype(jnp.bfloat16), tm)
    Mp = xp.shape[0]
    b2 = b.reshape(1, N).astype(jnp.float32)
    out = pl.pallas_call(
        functools.partial(_linear_kernel, apply_relu=apply_relu),
        out_shape=jax.ShapeDtypeStruct((Mp, N), out_dtype),
        grid=(Mp // tm,),
        in_specs=[
            pl.BlockSpec((tm, K), lambda i: (i, 0)),   # activation row tile
            pl.BlockSpec((K, N), lambda i: (0, 0)),    # full weight, resident
            pl.BlockSpec((1, N), lambda i: (0, 0)),    # bias row, resident
        ],
        out_specs=pl.BlockSpec((tm, N), lambda i: (i, 0)),
        compiler_params=pltpu.CompilerParams(
            dimension_semantics=("parallel",),
            vmem_limit_bytes=_VMEM_LIMIT),
    )(xp, w.astype(jnp.bfloat16), b2)
    return out[:M]


# ---------------------------------------------------------------------------
# Banded, time-tiled conv1d (1 -> n_filt channels, SAME padding) on the MXU.
# ---------------------------------------------------------------------------
def banded_conv_weight(taps, time_tile):
    """taps: (K, F) numpy cross-correlation taps (taps[k, f] == torch_w[f, 0, k]).
    Returns (C*TT, TT*F) banded block Wb and C, with
      Wb[p, t*F + f] = taps[p - t, f]  if 0 <= p - t < K else 0,
    so that  out[:, t*F+f] = sum_p window[:, p] * Wb[p, t*F+f]  is the SAME conv."""
    K, F = taps.shape
    TT = time_tile
    C = -(-(TT + K - 1) // TT)          # ceil((TT + K - 1) / TT)
    P = C * TT
    p = np.arange(P)[:, None]
    t = np.arange(TT)[None, :]
    idx = p - t                          # (P, TT)
    valid = (idx >= 0) & (idx < K)
    Wb = np.where(valid[:, :, None], taps[np.clip(idx, 0, K - 1)], 0.0)
    return Wb.reshape(P, TT * F).astype(np.float32), C


def _conv_band_kernel(*refs, n_band_tiles, time_tile, apply_relu):
    # refs = (x_win_0, ..., x_win_{C-1}, w_band, out)
    C, TT = n_band_tiles, time_tile
    x_refs = refs[:C]
    w_ref = refs[C]
    o_ref = refs[C + 1]
    # C unrolled MXU dots against static sub-slices of the VMEM-resident banded
    # weight block; summed in registers (f32), no accumulator scratch needed.
    y = jnp.dot(x_refs[0][...], w_ref[0:TT, :],
                preferred_element_type=jnp.float32)
    for c in range(1, C):
        y = y + jnp.dot(x_refs[c][...], w_ref[c * TT:(c + 1) * TT, :],
                        preferred_element_type=jnp.float32)
    if apply_relu:
        y = jnp.maximum(y, 0.0)
    o_ref[...] = y.astype(o_ref.dtype)


def pallas_conv1d_banded(rows, wband_bf16, *, kernel_size, n_filt,
                         time_tile, n_band_tiles, apply_relu, max_tm=512):
    """rows: (R, T).  Returns (R, Tt*TT*F) bf16 where column (j*TT+t)*F + f is
    the SAME-padded cross-correlation of rows[r] with filter f at time j*TT + t
    (columns with time >= T are padding garbage and must be cropped)."""
    R, T = rows.shape
    TT, C, F = time_tile, n_band_tiles, n_filt
    pad = kernel_size // 2
    Tt = _round_up(T, TT) // TT
    Wtot = (Tt - 1 + C) * TT
    tm = _pick_tm(R, max_tm)
    Rp = _round_up(R, tm)
    xpad = jnp.pad(rows.astype(jnp.bfloat16),
                   ((0, Rp - R), (pad, Wtot - T - pad)))

    in_specs = [pl.BlockSpec((tm, TT), (lambda i, j, c=c: (i, j + c)))
                for c in range(C)]                      # C overlapping windows
    in_specs.append(pl.BlockSpec((C * TT, TT * F), lambda i, j: (0, 0)))  # resident

    out = pl.pallas_call(
        functools.partial(_conv_band_kernel, n_band_tiles=C,
                          time_tile=TT, apply_relu=apply_relu),
        out_shape=jax.ShapeDtypeStruct((Rp, Tt * TT * F), jnp.bfloat16),
        grid=(Rp // tm, Tt),                            # rows, output time tiles
        in_specs=in_specs,
        out_specs=pl.BlockSpec((tm, TT * F), lambda i, j: (i, j)),
        compiler_params=pltpu.CompilerParams(
            dimension_semantics=("parallel", "parallel"),
            vmem_limit_bytes=_VMEM_LIMIT),
    )(*([xpad] * C), wband_bf16)
    return out[:R]


# ---------------------------------------------------------------------------
# The Core module
# ---------------------------------------------------------------------------
class CorePallas:
    def __init__(self, n_in=28, n_kp=None, n_filt=10, kernel_size=201,
                 n_layers=1, n_med=50, n_latents=256, identity=False,
                 relu_wavelets=True, relu_latents=True, seed=0, time_tile=128):
        self.n_in = n_in
        self.n_kp = n_in if (n_kp is None or identity) else n_kp
        self.n_filt = n_filt // 2 * 2
        self.kernel_size = kernel_size
        self.n_layers = n_layers
        self.n_med = n_med
        self.n_latents = n_latents
        self.identity = identity
        self.relu_wavelets = relu_wavelets
        self.relu_latents = relu_latents
        self.time_tile = time_tile

        keys = iter(jax.random.split(jax.random.PRNGKey(seed), 2 * (n_layers + 3)))

        def lin_init(fan_in, fan_out):
            bound = 1.0 / np.sqrt(fan_in)
            w = jax.random.uniform(next(keys), (fan_in, fan_out), jnp.float32,
                                   -bound, bound)
            b = jax.random.uniform(next(keys), (fan_out,), jnp.float32,
                                   -bound, bound)
            return w, b

        if not identity:
            # linear0 stays f32 and is executed by XLA (fused with the
            # reshape/transpose that follows) per perf review.
            self.W0, self.b0 = lin_init(self.n_in, self.n_kp)

        # Gabor wavelet conv weights (same init as the torch module).
        f = np.geomspace(1, 10, self.n_filt // 2).astype("float32")
        gw0 = gabor_wavelet(1, f[:, np.newaxis], 0.0, n_pts=kernel_size)
        gw1 = gabor_wavelet(1, f[:, np.newaxis], np.pi / 2, n_pts=kernel_size)
        wav_init = np.vstack((gw0, gw1))                    # (n_filt, K)
        self.conv_w = jnp.asarray(wav_init)[:, None, :]     # torch (F, 1, K) layout
        # Banded Toeplitz block: depends only on (time_tile, K, F) -> built once.
        wb, self.n_band_tiles = banded_conv_weight(wav_init.T, time_tile)
        self.Wband = jnp.asarray(wb).astype(jnp.bfloat16)   # (C*TT, TT*F)

        # Hidden layers (lane-padded to a multiple of 128 for dense vst stores).
        self.Wmed, self.bmed = [], []
        self.Wmed_p, self.bmed_p = [], []
        for n in range(1, n_layers):
            fan_in = self.n_kp * self.n_filt if n == 1 else n_med
            w, b = lin_init(fan_in, n_med)
            self.Wmed.append(w)
            self.bmed.append(b)
            Np = _round_up(n_med, 128)
            wp = jnp.zeros((fan_in, Np), jnp.float32).at[:, :n_med].set(w)
            bp = jnp.zeros((Np,), jnp.float32).at[:n_med].set(b)
            self.Wmed_p.append(wp.astype(jnp.bfloat16))
            self.bmed_p.append(bp)

        n_med_eff = n_med if n_layers > 1 else self.n_filt * self.n_kp
        self.Wl, self.bl = lin_init(n_med_eff, n_latents)
        self.Wl_bf = self.Wl.astype(jnp.bfloat16)

    # ------------------------- Pallas forward path -------------------------
    def forward(self, x):
        B, T, _ = x.shape
        F, TT = self.n_filt, self.time_tile
        x2d = x.reshape(B * T, self.n_in)

        # linear0: K=28 matmul left to XLA (pure step-overhead as a Pallas kernel)
        if self.identity:
            kp = x2d
        else:
            kp = x2d @ self.W0 + self.b0                                 # (B*T, n_kp)

        # (B*T, n_kp) -> (B*n_kp, T) bf16 rows for the depth-1 conv (XLA glue)
        rows = (kp.astype(jnp.bfloat16)
                  .reshape(B, T, self.n_kp)
                  .transpose(0, 2, 1)
                  .reshape(B * self.n_kp, T))

        # banded, time-tiled conv1d (+ wavelet ReLU) on the MXU, bf16 output
        conv = pallas_conv1d_banded(
            rows, self.Wband, kernel_size=self.kernel_size, n_filt=F,
            time_tile=TT, n_band_tiles=self.n_band_tiles,
            apply_relu=self.relu_wavelets)                   # (B*n_kp, Tt*TT*F) bf16

        # match torch ordering: (B*T, n_kp*n_filt), kp-major / filt-minor
        Tt = conv.shape[1] // (TT * F)
        wav = (conv.reshape(B, self.n_kp, Tt * TT, F)[:, :, :T, :]
                   .transpose(0, 2, 1, 3)
                   .reshape(B * T, self.n_kp * F))

        out = wav
        for n in range(1, self.n_layers):
            out = pallas_linear(out, self.Wmed_p[n - 1], self.bmed_p[n - 1],
                                apply_relu=True,
                                out_dtype=jnp.bfloat16)[:, :self.n_med]

        # latent linear (+ latent ReLU), f32 lane-dense output
        latents = pallas_linear(out, self.Wl_bf, self.bl,
                                apply_relu=self.relu_latents,
                                out_dtype=jnp.float32)       # (B*T, n_latents)
        return latents

    # ----------------------- pure-JAX f32 reference path -----------------------
    def reference_forward(self, x):
        B, T, _ = x.shape
        out = x.reshape(-1, self.n_in)
        if not self.identity:
            out = out @ self.W0 + self.b0
        out = out.reshape(B, T, self.n_kp).transpose(0, 2, 1)             # (B, n_kp, T)
        out = out.reshape(-1, T)[:, None, :]                              # (B*n_kp, 1, T)
        pad = self.kernel_size // 2
        conv = jax.lax.conv_general_dilated(
            out, self.conv_w, window_strides=(1,), padding=[(pad, pad)],
            dimension_numbers=("NCH", "OIH", "NCH"))                      # (B*n_kp, F, T)
        out = conv.reshape(B, self.n_kp * self.n_filt, T).transpose(0, 2, 1)
        out = out.reshape(-1, self.n_kp * self.n_filt)
        if self.relu_wavelets:
            out = jnp.maximum(out, 0.0)
        for n in range(1, self.n_layers):
            out = jnp.maximum(out @ self.Wmed[n - 1] + self.bmed[n - 1], 0.0)
        latents = out @ self.Wl + self.bl
        if self.relu_latents:
            latents = jnp.maximum(latents, 0.0)
        return latents


if __name__ == "__main__":
    B, T = 2, 16
    n_in = 28
    n_filt = 10
    kernel_size = 201       # module default (odd, SAME-padded)
    n_latents = 256         # module default, lane-dense output

    core = CorePallas(n_in=n_in, n_filt=n_filt, kernel_size=kernel_size,
                      n_layers=1, n_latents=n_latents, seed=0)

    x = jax.random.normal(jax.random.PRNGKey(0), (B, T, n_in), dtype=jnp.float32)

    fwd = jax.jit(core.forward)
    latents = jax.block_until_ready(fwd(x))
    ref = jax.block_until_ready(core.reference_forward(x))

    assert latents.shape == (B * T, n_latents), latents.shape
    # bf16 MXU inputs / bf16 intermediates with f32 accumulation -> loosened
    # tolerance vs the f32 reference
    np.testing.assert_allclose(np.asarray(latents), np.asarray(ref),
                               rtol=3e-2, atol=3e-2)
    print("KERNEL_OK")
</pallas_src>

<mosaic_0001>
module attributes {stable_mosaic.version = 11 : i64} {
  func.func @_conv_band_kernel(%arg0: i32, %arg1: i32, %arg2: memref<128x128xbf16, #tpu.memory_space<vmem>>, %arg3: memref<128x128xbf16, #tpu.memory_space<vmem>>, %arg4: memref<128x128xbf16, #tpu.memory_space<vmem>>, %arg5: memref<384x1280xbf16, #tpu.memory_space<vmem>>, %arg6: memref<128x1280xbf16, #tpu.memory_space<vmem>>) attributes {dimension_semantics = [#tpu.dimension_semantics<parallel>, #tpu.dimension_semantics<parallel>], iteration_bounds = array<i64: 1, 1>, scalar_prefetch = 0 : i64, scratch_operands = 0 : i64, tpu.core_type = #tpu.core_type<tc>, window_params = [{transform_indices = @transform_0, window_bounds = array<i64: 128, 128>}, {transform_indices = @transform_1, window_bounds = array<i64: 128, 128>}, {transform_indices = @transform_2, window_bounds = array<i64: 128, 128>}, {pipeline_mode = #tpu.pipeline_mode<synchronous>, transform_indices = @transform_3, window_bounds = array<i64: 384, 1280>}, {transform_indices = @transform_4, window_bounds = array<i64: 128, 1280>}]} {
    %c0 = arith.constant 0 : index
    %c0_0 = arith.constant 0 : index
    %0 = vector.load %arg2[%c0, %c0_0] : memref<128x128xbf16, #tpu.memory_space<vmem>>, vector<128x128xbf16>
    %c0_1 = arith.constant 0 : index
    %c0_2 = arith.constant 0 : index
    %1 = vector.load %arg5[%c0_1, %c0_2] : memref<384x1280xbf16, #tpu.memory_space<vmem>>, vector<128x1280xbf16>
    %cst = arith.constant dense<0.000000e+00> : vector<128x1280xf32>
    %2 = tpu.matmul %0, %1, %cst {dimension_numbers = #tpu.dot_dimension_numbers<[1], [0], [0], [1], [0, 0, 1, 1], [], []>} : vector<128x128xbf16>, vector<128x1280xbf16>, vector<128x1280xf32> -> vector<128x1280xf32>
    %c0_3 = arith.constant 0 : index
    %c0_4 = arith.constant 0 : index
    %3 = vector.load %arg3[%c0_3, %c0_4] : memref<128x128xbf16, #tpu.memory_space<vmem>>, vector<128x128xbf16>
    %c128 = arith.constant 128 : index
    %c0_5 = arith.constant 0 : index
    %4 = vector.load %arg5[%c128, %c0_5] : memref<384x1280xbf16, #tpu.memory_space<vmem>>, vector<128x1280xbf16>
    %cst_6 = arith.constant dense<0.000000e+00> : vector<128x1280xf32>
    %5 = tpu.matmul %3, %4, %cst_6 {dimension_numbers = #tpu.dot_dimension_numbers<[1], [0], [0], [1], [0, 0, 1, 1], [], []>} : vector<128x128xbf16>, vector<128x1280xbf16>, vector<128x1280xf32> -> vector<128x1280xf32>
    %6 = arith.addf %2, %5 : vector<128x1280xf32>
    %c0_7 = arith.constant 0 : index
    %c0_8 = arith.constant 0 : index
    %7 = vector.load %arg4[%c0_7, %c0_8] : memref<128x128xbf16, #tpu.memory_space<vmem>>, vector<128x128xbf16>
    %c256 = arith.constant 256 : index
    %c0_9 = arith.constant 0 : index
    %8 = vector.load %arg5[%c256, %c0_9] : memref<384x1280xbf16, #tpu.memory_space<vmem>>, vector<128x1280xbf16>
    %cst_10 = arith.constant dense<0.000000e+00> : vector<128x1280xf32>
    %9 = tpu.matmul %7, %8, %cst_10 {dimension_numbers = #tpu.dot_dimension_numbers<[1], [0], [0], [1], [0, 0, 1, 1], [], []>} : vector<128x128xbf16>, vector<128x1280xbf16>, vector<128x1280xf32> -> vector<128x1280xf32>
    %10 = arith.addf %6, %9 : vector<128x1280xf32>
    %cst_11 = arith.constant 0.000000e+00 : f32
    %11 = vector.broadcast %cst_11 : f32 to vector<128x1280xf32>
    %12 = arith.maximumf %10, %11 : vector<128x1280xf32>
    %13 = arith.truncf %12 : vector<128x1280xf32> to vector<128x1280xbf16>
    %c0_12 = arith.constant 0 : index
    %c0_13 = arith.constant 0 : index
    %14 = vector.load %arg6[%c0_12, %c0_13] : memref<128x1280xbf16, #tpu.memory_space<vmem>>, vector<128x1280xbf16>
    tpu.vector_store %arg6[%c0_12, %c0_13], %13 {strides = array<i32>} : memref<128x1280xbf16, #tpu.memory_space<vmem>>, vector<128x1280xbf16>,
    return
  }
  func.func @transform_0(%arg0: i32, %arg1: i32) -> (i32, i32) {
    %c0_i32 = arith.constant 0 : i32
    %0 = arith.addi %arg1, %c0_i32 : i32
    %c0_i32_0 = arith.constant 0 : i32
    return %arg0, %0 : i32, i32
  }
  func.func @transform_1(%arg0: i32, %arg1: i32) -> (i32, i32) {
    %c1_i32 = arith.constant 1 : i32
    %0 = arith.addi %arg1, %c1_i32 : i32
    %c0_i32 = arith.constant 0 : i32
    return %arg0, %0 : i32, i32
  }
  func.func @transform_2(%arg0: i32, %arg1: i32) -> (i32, i32) {
    %c2_i32 = arith.constant 2 : i32
    %0 = arith.addi %arg1, %c2_i32 : i32
    %c0_i32 = arith.constant 0 : i32
    return %arg0, %0 : i32, i32
  }
  func.func @transform_3(%arg0: i32, %arg1: i32) -> (i32, i32) {
    %c0_i32 = arith.constant 0 : i32
    %c0_i32_0 = arith.constant 0 : i32
    %c0_i32_1 = arith.constant 0 : i32
    return %c0_i32, %c0_i32_0 : i32, i32
  }
  func.func @transform_4(%arg0: i32, %arg1: i32) -> (i32, i32) {
    %c0_i32 = arith.constant 0 : i32
    return %arg0, %arg1 : i32, i32
  }
}

module attributes {stable_mosaic.version = 11 : i64} {
  func.func @_linear_kernel(%arg0: i32, %arg1: memref<128x280xbf16, #tpu.memory_space<vmem>>, %arg2: memref<280x256xbf16, #tpu.memory_space<vmem>>, %arg3: memref<1x256xf32, #tpu.memory_space<vmem>>, %arg4: memref<128x256xf32, #tpu.memory_space<vmem>>) attributes {dimension_semantics = [#tpu.dimension_semantics<parallel>], iteration_bounds = array<i64: 1>, scalar_prefetch = 0 : i64, scratch_operands = 0 : i64, tpu.core_type = #tpu.core_type<tc>, window_params = [{transform_indices = @transform_0, window_bounds = array<i64: 128, 280>}, {pipeline_mode = #tpu.pipeline_mode<synchronous>, transform_indices = @transform_1, window_bounds = array<i64: 280, 256>}, {pipeline_mode = #tpu.pipeline_mode<synchronous>, transform_indices = @transform_2, window_bounds = array<i64: 1, 256>}, {transform_indices = @transform_3, window_bounds = array<i64: 128, 256>}]} {
    %c0 = arith.constant 0 : index
    %c0_0 = arith.constant 0 : index
    %0 = vector.load %arg1[%c0, %c0_0] : memref<128x280xbf16, #tpu.memory_space<vmem>>, vector<128x280xbf16>
    %c0_1 = arith.constant 0 : index
    %c0_2 = arith.constant 0 : index
    %1 = vector.load %arg2[%c0_1, %c0_2] : memref<280x256xbf16, #tpu.memory_space<vmem>>, vector<280x256xbf16>
    %cst = arith.constant dense<0.000000e+00> : vector<128x256xf32>
    %2 = tpu.matmul %0, %1, %cst {dimension_numbers = #tpu.dot_dimension_numbers<[1], [0], [0], [1], [0, 0, 1, 1], [], []>} : vector<128x280xbf16>, vector<280x256xbf16>, vector<128x256xf32> -> vector<128x256xf32>
    %c0_3 = arith.constant 0 : index
    %c0_4 = arith.constant 0 : index
    %3 = vector.load %arg3[%c0_3, %c0_4] : memref<1x256xf32, #tpu.memory_space<vmem>>, vector<1x256xf32>
    %4 = vector.broadcast %3 : vector<1x256xf32> to vector<128x256xf32>
    %5 = arith.addf %2, %4 : vector<128x256xf32>
    %cst_5 = arith.constant 0.000000e+00 : f32
    %6 = vector.broadcast %cst_5 : f32 to vector<128x256xf32>
    %7 = arith.maximumf %5, %6 : vector<128x256xf32>
    %c0_6 = arith.constant 0 : index
    %c0_7 = arith.constant 0 : index
    %8 = vector.load %arg4[%c0_6, %c0_7] : memref<128x256xf32, #tpu.memory_space<vmem>>, vector<128x256xf32>
    tpu.vector_store %arg4[%c0_6, %c0_7], %7 {strides = array<i32>} : memref<128x256xf32, #tpu.memory_space<vmem>>, vector<128x256xf32>,
    return
  }
  func.func @transform_0(%arg0: i32) -> (i32, i32) {
    %c0_i32 = arith.constant 0 : i32
    %c0_i32_0 = arith.constant 0 : i32
    return %arg0, %c0_i32 : i32, i32
  }
  func.func @transform_1(%arg0: i32) -> (i32, i32) {
    %c0_i32 = arith.constant 0 : i32
    %c0_i32_0 = arith.constant 0 : i32
    %c0_i32_1 = arith.constant 0 : i32
    return %c0_i32, %c0_i32_0 : i32, i32
  }
  func.func @transform_2(%arg0: i32) -> (i32, i32) {
    %c0_i32 = arith.constant 0 : i32
    %c0_i32_0 = arith.constant 0 : i32
    %c0_i32_1 = arith.constant 0 : i32
    return %c0_i32, %c0_i32_0 : i32, i32
  }
  func.func @transform_3(%arg0: i32) -> (i32, i32) {
    %c0_i32 = arith.constant 0 : i32
    %c0_i32_0 = arith.constant 0 : i32
    return %arg0, %c0_i32 : i32, i32
  }
}

</mosaic_0001>

<bundles_post_ra>
// kernel: forward.3
= control target key start
LH: loop header
LB: loop body
LE: loop exit
PB: predicated region body
PF: predicated region fallthrough
CT: control target
= control target key end

     0   :  { %v934_v1 = vmov 0   ;;  %vm414_vm0 = vcmask 1043456   ;;  %vm389_vm1 = vcmask 195584   ;;  %s1355_s1 = inlined_call_operand.vmem [shape: bf16[280,256], index: 1, kind: input, shape index: {}]   ;;  %s1356_s0 = inlined_call_operand.vmem [shape: bf16[128,280], index: 0, kind: input, shape index: {}]   ;;  %s1357_s2 = inlined_call_operand.vmem [shape: f32[1,256], index: 2, kind: input, shape index: {}]   ;;  %s1358_s3 = inlined_call_operand.vmem [shape: f32[128,256], index: 3, kind: output, shape index: {}]  }
   0x1   :  { %v849_v0 = vld [vmem:[%s1355_s1 + $0x4] ss:$8 sps:$4 sm:$0xff]   ;;  %566 = vmatprep.mubr.bf16.mxu0 %v934_v1  ;;  %v851_v2 = vld [vmem:[%s1355_s1] ss:$8 sps:$4 sm:$0xff]   ;;  %v852_v3 = vld [vmem:[%s1355_s1 + $0x14] ss:$8 sps:$4 sm:$0xff]  }
   0x2   :  { %421 = vmatprep.subr.bf16.mxu1 %v849_v0  ;;  %v854_v4 = vld [vmem:[%s1355_s1 + $0x10] ss:$8 sps:$4 sm:$0xff]   ;;  %v855_v5 = vld [vmem:[%s1355_s1 + $0x24] ss:$8 sps:$4 sm:$0xff]   ;;  %v857_v6 = vld [vmem:[%s1355_s1 + $0x20] ss:$8 sps:$4 sm:$0xff]  }
   0x3   :  { %422 = vmatpush1.bf16.msra.mxu1 %v851_v2  ;;  %v858_v7 = vld [vmem:[%s1355_s1 + $0x34] ss:$8 sps:$4 sm:$0xff]   ;;  %v860_v8 = vld [vmem:[%s1355_s1 + $0x30] ss:$8 sps:$4 sm:$0xff]   ;;  %v861_v9 = vld [vmem:[%s1355_s1 + $0x44] ss:$8 sps:$4 sm:$0xff]  }
   0x4   :  { %423 = vmatprep.subr.bf16.mxu1 %v852_v3  ;;  %v863_v10 = vld [vmem:[%s1355_s1 + $0x40] ss:$8 sps:$4 sm:$0xff]   ;;  %v864_v11 = vld [vmem:[%s1355_s1 + $0x54] ss:$8 sps:$4 sm:$0xff]   ;;  %v866_v12 = vld [vmem:[%s1355_s1 + $0x50] ss:$8 sps:$4 sm:$0xff]  }
   0x5   :  { %v891_v13 = vld [vmem:[%s1355_s1 + $0x104] ss:$8 sps:$4 sm:$0xff]   ;;  %v895_v15 = vld [vmem:[%s1355_s1 + $0x100] ss:$8 sps:$4 sm:$0xff]   ;;  %v81_v16 = vld [vmem:[%s1355_s1 + $0x110] sm:$0xff] }
   0x6   :  { %v867_v14 = vld [vmem:[%s1355_s1 + $0x64] ss:$8 sps:$4 sm:$0xff]   ;;  %534 = vmatprep.subr.bf16.mxu0 %v891_v13  ;;  %v869_v17 = vld [vmem:[%s1355_s1 + $0x60] ss:$8 sps:$4 sm:$0xff]   ;;  %v774_v18 = vcombine.high %v81_v16, %v81_v16  ;;  %v773_v19 = vcombine.low %v81_v16, %v81_v16  ;;  %v870_v20 = vld [vmem:[%s1355_s1 + $0x74] ss:$8 sps:$4 sm:$0xff]  }
   0x7   :  { %424 = vmatpush1.bf16.msra.mxu1 %v854_v4  ;;  %535 = vmatpush1.bf16.msra.mxu0 %v895_v15  ;;  %v904_v22 = vld [vmem:[%s1356_s0 + $0x4] ss:$12 sps:$4 sm:$0xff]   ;;  %v905_v23 = vld [vmem:[%s1356_s0 + $0x8] ss:$12 sps:$4 sm:$0xff]   ;;  %v908_v28 = vld [vmem:[%s1356_s0 + $0x20] ss:$12 sps:$4 sm:$0xff]  }
   0x8   :  { %425 = vmatprep.subr.bf16.mxu1 %v855_v5  ;;  %775 = vmatprep.subr.msk.bf16.mxu0 %vm414_vm0, %v774_v18  ;;  %v416_v21 = vsel %vm414_vm0, %v773_v19, 0  ;;  %v872_v24 = vld [vmem:[%s1355_s1 + $0x70] ss:$8 sps:$4 sm:$0xff]   ;;  %v873_v25 = vld [vmem:[%s1355_s1 + $0x84] ss:$8 sps:$4 sm:$0xff]  }
   0x9   :  { %453 = vmatprep.mubr.bf16.mxu1 %v904_v22  ;;  %v875_v26 = vld [vmem:[%s1355_s1 + $0x80] ss:$8 sps:$4 sm:$0xff]   ;;  %v876_v27 = vld [vmem:[%s1355_s1 + $0x94] ss:$8 sps:$4 sm:$0xff]   ;;  %v878_v29 = vld [vmem:[%s1355_s1 + $0x90] ss:$8 sps:$4 sm:$0xff]  }
   0xa   :  { %v879_v30 = vld [vmem:[%s1355_s1 + $0xa4] ss:$8 sps:$4 sm:$0xff]   ;;  %v881_v31 = vld [vmem:[%s1355_s1 + $0xa0] ss:$8 sps:$4 sm:$0xff]   ;;  %v882_v32 = vld [vmem:[%s1355_s1 + $0xb4] ss:$8 sps:$4 sm:$0xff]  }
   0xb   :  { %426 = vmatpush1.bf16.msra.mxu1 %v857_v6  ;;  %537 = vmatpush1.bf16.msra.mxu0 %v416_v21  ;;  %v912_v33 = vld [vmem:[%s1356_s0 + $0x38] ss:$12 sps:$4 sm:$0xff]   ;;  %v887_v36 = vld [vmem:[%s1355_s1 + $0xc0] ss:$8 sps:$4 sm:$0xff]   ;;  %v888_v37 = vld [vmem:[%s1355_s1 + $0xd4] ss:$8 sps:$4 sm:$0xff]  }
   0xc   :  { %427 = vmatprep.subr.bf16.mxu1 %v858_v7  ;;  %v884_v34 = vld [vmem:[%s1355_s1 + $0xb0] ss:$8 sps:$4 sm:$0xff]   ;;  %v885_v35 = vld [vmem:[%s1355_s1 + $0xc4] ss:$8 sps:$4 sm:$0xff]   ;;  %v896_v41 = vld [vmem:[%s1355_s1 + $0xe0] ss:$8 sps:$4 sm:$0xff]  }
   0xd   :  { %v916_v38 = vld [vmem:[%s1356_s0 + $0x50] ss:$12 sps:$4 sm:$0xff]   ;;  %v893_v40 = vld [vmem:[%s1355_s1 + $0xe4] ss:$8 sps:$4 sm:$0xff]   ;;  %v920_v43 = vld [vmem:[%s1356_s0 + $0x68] ss:$12 sps:$4 sm:$0xff]  }
   0xe   :  { %776 = vmatmul.mubr.msk.bf16.vlgmr.msra.gmra.mrb[0].mxu0 %vm389_vm1, %v905_v23  ;;  %v890_v39 = vld [vmem:[%s1355_s1 + $0xd0] ss:$8 sps:$4 sm:$0xff]   ;;  %v898_v42 = vld [vmem:[%s1355_s1 + $0xf4] ss:$8 sps:$4 sm:$0xff]   ;;  %v902_v45 = vld [vmem:[%s1356_s0] ss:$12 sps:$4 sm:$0xff]  }
   0xf   :  { %428 = vmatpush1.bf16.msra.mxu1 %v860_v8  ;;  %576 = vmatprep.mubr.bf16.mxu0 %v934_v1  ;;  %v901_v44 = vld [vmem:[%s1355_s1 + $0xf0] ss:$8 sps:$4 sm:$0xff]   ;;  %v906_v46 = vld [vmem:[%s1356_s0 + $0x1c] ss:$12 sps:$4 sm:$0xff]   ;;  %v924_v47 = vld [vmem:[%s1356_s0 + $0x80] ss:$12 sps:$4 sm:$0xff]  }
  0x10   :  { %429 = vmatprep.subr.bf16.mxu1 %v861_v9  ;;  %v909_v48 = vld [vmem:[%s1356_s0 + $0x18] ss:$12 sps:$4 sm:$0xff]   ;;  %v910_v49 = vld [vmem:[%s1356_s0 + $0x34] ss:$12 sps:$4 sm:$0xff]   ;;  %v913_v51 = vld [vmem:[%s1356_s0 + $0x30] ss:$12 sps:$4 sm:$0xff]  }
  0x11   :  { %v928_v50 = vld [vmem:[%s1356_s0 + $0x98] ss:$12 sps:$4 sm:$0xff]   ;;  %v932_v53 = vld [vmem:[%s1356_s0 + $0xb0] ss:$12 sps:$4 sm:$0xff]   ;;  %v917_v54 = vld [vmem:[%s1356_s0 + $0x48] ss:$12 sps:$4 sm:$0xff]  }
  0x12   :  { %v914_v52 = vld [vmem:[%s1356_s0 + $0x4c] ss:$12 sps:$4 sm:$0xff]   ;;  %v918_v55 = vld [vmem:[%s1356_s0 + $0x64] ss:$12 sps:$4 sm:$0xff]   ;;  %v922_v57 = vld [vmem:[%s1356_s0 + $0x7c] ss:$12 sps:$4 sm:$0xff]  }
  0x13   :  { %430 = vmatpush1.bf16.msra.mxu1 %v863_v10  ;;  %v921_v56 = vld [vmem:[%s1356_s0 + $0x60] ss:$12 sps:$4 sm:$0xff]   ;;  %v925_v58 = vld [vmem:[%s1356_s0 + $0x78] ss:$12 sps:$4 sm:$0xff]   ;;  %v929_v60 = vld [vmem:[%s1356_s0 + $0x90] ss:$12 sps:$4 sm:$0xff]  }
  0x14   :  { %431 = vmatprep.subr.bf16.mxu1 %v864_v11  ;;  %v926_v59 = vld [vmem:[%s1356_s0 + $0x94] ss:$12 sps:$4 sm:$0xff]   ;;  %v930_v61 = vld [vmem:[%s1356_s0 + $0xac] ss:$12 sps:$4 sm:$0xff]   ;;  %v84_v11 = vlaneseq }
  0x15   :  { %v933_v62 = vld [vmem:[%s1356_s0 + $0xa8] ss:$12 sps:$4 sm:$0xff]   ;;  %v82_v18 = vld [vmem:[%s1357_s2] sm:$0x3] }
  0x16   :  { %777 = vmatmul.mubr.msk.bf16.gmra.mrb[4].mxu0 %vm389_vm1, %v908_v28 }
  0x17   :  { %432 = vmatpush1.bf16.msra.mxu1 %v866_v12  ;;  %586 = vmatprep.mubr.bf16.mxu0 %v934_v1 }
  0x18   :  { %433 = vmatprep.subr.bf16.mxu1 %v867_v14  ;;  %v85_v14 = vshrl.u32 %v84_v11, 7 }
  0x1a   :  { %v90_v19 = vsub.s32 1, %v85_v14 }
  0x1b   :  { %434 = vmatpush1.bf16.msra.mxu1 %v869_v17  ;;  %v86_v17 = vsub.s32 0, %v85_v14 }
  0x1c   :  { %435 = vmatprep.subr.bf16.mxu1 %v870_v20 }
  0x1d   :  { %v1171_v22 = vrot.slane %v82_v18, %v86_v17 }
  0x1e   :  { %778 = vmatmul.mubr.msk.bf16.gmra.mrb[8].mxu0 %vm389_vm1, %v912_v33 }
  0x1f   :  { %436 = vmatpush1.bf16.msra.mxu1 %v872_v24  ;;  %596 = vmatprep.mubr.bf16.mxu0 %v934_v1  ;;  %v1175_v24 = vrot.slane %v82_v18, %v90_v19 }
  0x20   :  { %437 = vmatprep.subr.bf16.mxu1 %v873_v25 }
  0x23   :  { %438 = vmatpush1.bf16.msra.mxu1 %v875_v26 }
  0x24   :  { %439 = vmatprep.subr.bf16.mxu1 %v876_v27 }
  0x26   :  { %779 = vmatmul.mubr.msk.bf16.gmra.mrb[12].mxu0 %vm389_vm1, %v916_v38 }
  0x27   :  { %440 = vmatpush1.bf16.msra.mxu1 %v878_v29  ;;  %606 = vmatprep.mubr.bf16.mxu0 %v934_v1 }
  0x28   :  { %441 = vmatprep.subr.bf16.mxu1 %v879_v30 }
  0x2b   :  { %442 = vmatpush1.bf16.msra.mxu1 %v881_v31 }
  0x2c   :  { %443 = vmatprep.subr.bf16.mxu1 %v882_v32 }
  0x2e   :  { %780 = vmatmul.mubr.msk.bf16.gmra.mrb[16].mxu0 %vm389_vm1, %v920_v43 }
  0x2f   :  { %444 = vmatpush1.bf16.msra.mxu1 %v884_v34  ;;  %616 = vmatprep.mubr.bf16.mxu0 %v934_v1 }
  0x30   :  { %445 = vmatprep.subr.bf16.mxu1 %v885_v35 }
  0x33   :  { %446 = vmatpush1.bf16.msra.mxu1 %v887_v36 }
  0x34   :  { %447 = vmatprep.subr.bf16.mxu1 %v888_v37 }
  0x36   :  { %781 = vmatmul.mubr.msk.bf16.gmra.mrb[20].mxu0 %vm389_vm1, %v924_v47 }
  0x37   :  { %448 = vmatpush1.bf16.msra.mxu1 %v890_v39  ;;  %626 = vmatprep.mubr.bf16.mxu0 %v934_v1 }
  0x38   :  { %449 = vmatprep.subr.bf16.mxu1 %v893_v40 }
  0x3b   :  { %450 = vmatpush1.bf16.msra.mxu1 %v896_v41 }
  0x3c   :  { %451 = vmatprep.subr.bf16.mxu1 %v898_v42 }
  0x3e   :  { %782 = vmatmul.mubr.msk.bf16.gmra.mrb[24].mxu0 %vm389_vm1, %v928_v50 }
  0x3f   :  { %452 = vmatpush1.bf16.msra.mxu1 %v901_v44  ;;  %636 = vmatprep.mubr.bf16.mxu0 %v934_v1 }
  0x42   :  { %454 = vmatmul.mubr.bf16.vlgmr.msra.gmra.mrb[0].mxu1 %v902_v45 }
  0x43   :  { %463 = vmatprep.mubr.bf16.mxu1 %v906_v46 }
  0x46   :  { %783 = vmatmul.mubr.msk.bf16.gmra.mrb[28].mxu0 %vm389_vm1, %v932_v53 }
  0x4a   :  { %464 = vmatmul.mubr.bf16.gmra.mrb[4].mxu1 %v909_v48 }
  0x4b   :  { %473 = vmatprep.mubr.bf16.mxu1 %v910_v49 }
  0x52   :  { %474 = vmatmul.mubr.bf16.gmra.mrb[8].mxu1 %v913_v51 }
  0x53   :  { %483 = vmatprep.mubr.bf16.mxu1 %v914_v52 }
  0x5a   :  { %484 = vmatmul.mubr.bf16.gmra.mrb[12].mxu1 %v917_v54 }
  0x5b   :  { %493 = vmatprep.mubr.bf16.mxu1 %v918_v55 }
  0x62   :  { %494 = vmatmul.mubr.bf16.gmra.mrb[16].mxu1 %v921_v56 }
  0x63   :  { %503 = vmatprep.mubr.bf16.mxu1 %v922_v57 }
  0x6a   :  { %504 = vmatmul.mubr.bf16.gmra.mrb[20].mxu1 %v925_v58 }
  0x6b   :  { %513 = vmatprep.mubr.bf16.mxu1 %v926_v59 }
  0x72   :  { %514 = vmatmul.mubr.bf16.gmra.mrb[24].mxu1 %v929_v60 }
  0x73   :  { %523 = vmatprep.mubr.bf16.mxu1 %v930_v61 }
  0x7a   :  { %524 = vmatmul.mubr.bf16.gmra.mrb[28].mxu1 %v933_v62 }
  0xe1   :  { %v568_v63 = vpop.f32.mrb[0].mxu0 }
  0xe2   :  { %v570_v0 = vpop.f32.mrb[1].mxu0 }
  0xe3   :  { %v572_v1 = vpop.f32.mrb[2].mxu0 }
  0xe4   :  { %v574_v2 = vpop.f32.mrb[3].mxu0 }
  0xe9   :  { %v578_v3 = vpop.f32.mrb[4].mxu0 }
  0xea   :  { %v580_v4 = vpop.f32.mrb[5].mxu0 }
  0xeb   :  { %v582_v5 = vpop.f32.mrb[6].mxu0 }
  0xec   :  { %v584_v6 = vpop.f32.mrb[7].mxu0 }
  0xf1   :  { %v1148_v7 = vpop.f32.mrb[8].mxu0 }
  0xf2   :  { %v1150_v8 = vpop.f32.mrb[9].mxu0 }
  0xf3   :  { %v1152_v9 = vpop.f32.mrb[10].mxu0 }
  0xf4   :  { %v1154_v10 = vpop.f32.mrb[11].mxu0 }
  0xf9   :  { %v1156_v12 = vpop.f32.mrb[12].mxu0 }
  0xfa   :  { %v1158_v13 = vpop.f32.mrb[13].mxu0 }
  0xfb   :  { %v1160_v15 = vpop.f32.mrb[14].mxu0 }
  0xfc   :  { %v1162_v16 = vpop.f32.mrb[15].mxu0 }
 0x101   :  { %v1167_v20 = vpop.f32.mrb[16].mxu0 }
 0x102   :  { %v1169_v21 = vpop.f32.mrb[17].mxu0 }
 0x103   :  { %v1173_v23 = vpop.f32.mrb[18].mxu0 }
 0x104   :  { %v1177_v25 = vpop.f32.mrb[19].mxu0 }
 0x109   :  { %v1182_v34 = vpop.f32.mrb[20].mxu0 }
 0x10a   :  { %v1185_v37 = vpop.f32.mrb[21].mxu0 }
 0x10b   :  { %v1187_v40 = vpop.f32.mrb[22].mxu0 }
 0x10c   :  { %v1189_v43 = vpop.f32.mrb[23].mxu0 }
 0x111   :  { %v1206_v54 = vpop.f32.mrb[24].mxu0 }
 0x112   :  { %v1209_v57 = vpop.f32.mrb[25].mxu0 }
 0x113   :  { %v1211_v60 = vpop.f32.mrb[26].mxu0 }
 0x115   :  { %v455_v26 = vpop.f32.mrb[0].mxu1 }
 0x116   :  { %v456_v27 = vadd.f32 %v455_v26, %v1171_v22  ;;  %v457_v28 = vpop.f32.mrb[1].mxu1 }
 0x117   :  { %v458_v29 = vadd.f32 %v457_v28, %v1175_v24  ;;  %v459_v30 = vpop.f32.mrb[2].mxu1 }
 0x118   :  { %v569_v31 = vadd.f32 %v568_v63, %v456_v27  ;;  %v460_v32 = vadd.f32 %v459_v30, %v1171_v22  ;;  %v461_v33 = vpop.f32.mrb[3].mxu1  ;;  %v1213_v63 = vpop.f32.mrb[27].mxu0 }
 0x119   :  { %v571_v35 = vadd.f32 %v570_v0, %v458_v29  ;;  %v462_v36 = vadd.f32 %v461_v33, %v1175_v24  ;;  %v1231_v18 = vpop.f32.mrb[28].mxu0 }
 0x11a   :  { %v647_v38 = vmax.f32 %v569_v31, 0.0  ;;  %v573_v39 = vadd.f32 %v572_v1, %v460_v32  ;;  %v1235_v27 = vpop.f32.mrb[29].mxu0 }
 0x11b   :  { %v648_v41 = vmax.f32 %v571_v35, 0.0  ;;  %v575_v42 = vadd.f32 %v574_v2, %v462_v36  ;;  %v1238_v30 = vpop.f32.mrb[30].mxu0 }
 0x11c   :  { %679 = vst [vmem:[%s1358_s3] sm:$0xff] %v647_v38  ;;  %v649_v44 = vmax.f32 %v573_v39, 0.0 }
 0x11d   :  { %680 = vst [vmem:[%s1358_s3 + $0x8] sm:$0xff] %v648_v41  ;;  %v650_v45 = vmax.f32 %v575_v42, 0.0  ;;  %v465_v46 = vpop.f32.mrb[4].mxu1 }
 0x11e   :  { %681 = vst [vmem:[%s1358_s3 + $0x10] sm:$0xff] %v649_v44  ;;  %v466_v47 = vadd.f32 %v465_v46, %v1171_v22  ;;  %v467_v48 = vpop.f32.mrb[5].mxu1 }
 0x11f   :  { %682 = vst [vmem:[%s1358_s3 + $0x18] sm:$0xff] %v650_v45  ;;  %v468_v49 = vadd.f32 %v467_v48, %v1175_v24  ;;  %v469_v50 = vpop.f32.mrb[6].mxu1 }
 0x120   :  { %v579_v51 = vadd.f32 %v578_v3, %v466_v47  ;;  %v470_v52 = vadd.f32 %v469_v50, %v1171_v22  ;;  %v471_v53 = vpop.f32.mrb[7].mxu1 }
 0x121   :  { %v581_v55 = vadd.f32 %v580_v4, %v468_v49  ;;  %v472_v56 = vadd.f32 %v471_v53, %v1175_v24 }
 0x122   :  { %v651_v58 = vmax.f32 %v579_v51, 0.0  ;;  %v583_v59 = vadd.f32 %v582_v5, %v470_v52 }
 0x123   :  { %v652_v61 = vmax.f32 %v581_v55, 0.0  ;;  %v585_v62 = vadd.f32 %v584_v6, %v472_v56 }
 0x124   :  { %683 = vst [vmem:[%s1358_s3 + $0x20] sm:$0xff] %v651_v58  ;;  %v653_v0 = vmax.f32 %v583_v59, 0.0 }
 0x125   :  { %684 = vst [vmem:[%s1358_s3 + $0x28] sm:$0xff] %v652_v61  ;;  %v654_v1 = vmax.f32 %v585_v62, 0.0  ;;  %v475_v2 = vpop.f32.mrb[8].mxu1 }
 0x126   :  { %685 = vst [vmem:[%s1358_s3 + $0x30] sm:$0xff] %v653_v0  ;;  %v476_v3 = vadd.f32 %v475_v2, %v1171_v22  ;;  %v477_v4 = vpop.f32.mrb[9].mxu1 }
 0x127   :  { %686 = vst [vmem:[%s1358_s3 + $0x38] sm:$0xff] %v654_v1  ;;  %v478_v5 = vadd.f32 %v477_v4, %v1175_v24  ;;  %v479_v6 = vpop.f32.mrb[10].mxu1 }
 0x128   :  { %v589_v11 = vadd.f32 %v1148_v7, %v476_v3  ;;  %v480_v14 = vadd.f32 %v479_v6, %v1171_v22  ;;  %v481_v17 = vpop.f32.mrb[11].mxu1  ;;  %v1241_v7 = vpop.f32.mrb[31].mxu0 }
 0x129   :  { %v591_v19 = vadd.f32 %v1150_v8, %v478_v5  ;;  %v482_v26 = vadd.f32 %v481_v17, %v1175_v24 }
 0x12a   :  { %v655_v28 = vmax.f32 %v589_v11, 0.0  ;;  %v593_v29 = vadd.f32 %v1152_v9, %v480_v14 }
 0x12b   :  { %v656_v31 = vmax.f32 %v591_v19, 0.0  ;;  %v595_v32 = vadd.f32 %v1154_v10, %v482_v26 }
 0x12c   :  { %687 = vst [vmem:[%s1358_s3 + $0x40] sm:$0xff] %v655_v28  ;;  %v657_v33 = vmax.f32 %v593_v29, 0.0 }
 0x12d   :  { %688 = vst [vmem:[%s1358_s3 + $0x48] sm:$0xff] %v656_v31  ;;  %v658_v8 = vmax.f32 %v595_v32, 0.0  ;;  %v485_v35 = vpop.f32.mrb[12].mxu1 }
 0x12e   :  { %689 = vst [vmem:[%s1358_s3 + $0x50] sm:$0xff] %v657_v33  ;;  %v486_v9 = vadd.f32 %v485_v35, %v1171_v22  ;;  %v487_v10 = vpop.f32.mrb[13].mxu1 }
 0x12f   :  { %690 = vst [vmem:[%s1358_s3 + $0x58] sm:$0xff] %v658_v8  ;;  %v488_v36 = vadd.f32 %v487_v10, %v1175_v24  ;;  %v489_v38 = vpop.f32.mrb[14].mxu1 }
 0x130   :  { %v599_v39 = vadd.f32 %v1156_v12, %v486_v9  ;;  %v490_v41 = vadd.f32 %v489_v38, %v1171_v22  ;;  %v491_v42 = vpop.f32.mrb[15].mxu1 }
 0x131   :  { %v601_v44 = vadd.f32 %v1158_v13, %v488_v36  ;;  %v492_v45 = vadd.f32 %v491_v42, %v1175_v24 }
 0x132   :  { %v659_v46 = vmax.f32 %v599_v39, 0.0  ;;  %v603_v47 = vadd.f32 %v1160_v15, %v490_v41 }
 0x133   :  { %v660_v48 = vmax.f32 %v601_v44, 0.0  ;;  %v605_v49 = vadd.f32 %v1162_v16, %v492_v45 }
 0x134   :  { %691 = vst [vmem:[%s1358_s3 + $0x60] sm:$0xff] %v659_v46  ;;  %v661_v50 = vmax.f32 %v603_v47, 0.0 }
 0x135   :  { %692 = vst [vmem:[%s1358_s3 + $0x68] sm:$0xff] %v660_v48  ;;  %v662_v12 = vmax.f32 %v605_v49, 0.0  ;;  %v495_v51 = vpop.f32.mrb[16].mxu1 }
 0x136   :  { %693 = vst [vmem:[%s1358_s3 + $0x70] sm:$0xff] %v661_v50  ;;  %v496_v13 = vadd.f32 %v495_v51, %v1171_v22  ;;  %v497_v15 = vpop.f32.mrb[17].mxu1 }
 0x137   :  { %694 = vst [vmem:[%s1358_s3 + $0x78] sm:$0xff] %v662_v12  ;;  %v498_v16 = vadd.f32 %v497_v15, %v1175_v24  ;;  %v499_v52 = vpop.f32.mrb[18].mxu1 }
 0x138   :  { %v609_v53 = vadd.f32 %v1167_v20, %v496_v13  ;;  %v500_v55 = vadd.f32 %v499_v52, %v1171_v22  ;;  %v501_v56 = vpop.f32.mrb[19].mxu1 }
 0x139   :  { %v611_v58 = vadd.f32 %v1169_v21, %v498_v16  ;;  %v502_v59 = vadd.f32 %v501_v56, %v1175_v24 }
 0x13a   :  { %v663_v61 = vmax.f32 %v609_v53, 0.0  ;;  %v613_v62 = vadd.f32 %v1173_v23, %v500_v55 }
 0x13b   :  { %v664_v0 = vmax.f32 %v611_v58, 0.0  ;;  %v615_v1 = vadd.f32 %v1177_v25, %v502_v59 }
 0x13c   :  { %695 = vst [vmem:[%s1358_s3 + $0x80] sm:$0xff] %v663_v61  ;;  %v665_v2 = vmax.f32 %v613_v62, 0.0 }
 0x13d   :  { %696 = vst [vmem:[%s1358_s3 + $0x88] sm:$0xff] %v664_v0  ;;  %v666_v20 = vmax.f32 %v615_v1, 0.0  ;;  %v505_v3 = vpop.f32.mrb[20].mxu1 }
 0x13e   :  { %697 = vst [vmem:[%s1358_s3 + $0x90] sm:$0xff] %v665_v2  ;;  %v506_v21 = vadd.f32 %v505_v3, %v1171_v22  ;;  %v507_v23 = vpop.f32.mrb[21].mxu1 }
 0x13f   :  { %698 = vst [vmem:[%s1358_s3 + $0x98] sm:$0xff] %v666_v20  ;;  %v508_v25 = vadd.f32 %v507_v23, %v1175_v24  ;;  %v509_v4 = vpop.f32.mrb[22].mxu1 }
 0x140   :  { %v619_v5 = vadd.f32 %v1182_v34, %v506_v21  ;;  %v510_v6 = vadd.f32 %v509_v4, %v1171_v22  ;;  %v511_v11 = vpop.f32.mrb[23].mxu1 }
 0x141   :  { %v621_v14 = vadd.f32 %v1185_v37, %v508_v25  ;;  %v512_v17 = vadd.f32 %v511_v11, %v1175_v24 }
 0x142   :  { %v667_v19 = vmax.f32 %v619_v5, 0.0  ;;  %v623_v26 = vadd.f32 %v1187_v40, %v510_v6 }
 0x143   :  { %v668_v28 = vmax.f32 %v621_v14, 0.0  ;;  %v625_v29 = vadd.f32 %v1189_v43, %v512_v17 }
 0x144   :  { %699 = vst [vmem:[%s1358_s3 + $0xa0] sm:$0xff] %v667_v19  ;;  %v669_v31 = vmax.f32 %v623_v26, 0.0 }
 0x145   :  { %700 = vst [vmem:[%s1358_s3 + $0xa8] sm:$0xff] %v668_v28  ;;  %v670_v34 = vmax.f32 %v625_v29, 0.0  ;;  %v515_v32 = vpop.f32.mrb[24].mxu1 }
 0x146   :  { %701 = vst [vmem:[%s1358_s3 + $0xb0] sm:$0xff] %v669_v31  ;;  %v516_v37 = vadd.f32 %v515_v32, %v1171_v22  ;;  %v517_v40 = vpop.f32.mrb[25].mxu1 }
 0x147   :  { %702 = vst [vmem:[%s1358_s3 + $0xb8] sm:$0xff] %v670_v34  ;;  %v518_v43 = vadd.f32 %v517_v40, %v1175_v24  ;;  %v519_v33 = vpop.f32.mrb[26].mxu1 }
 0x148   :  { %v629_v8 = vadd.f32 %v1206_v54, %v516_v37  ;;  %v520_v35 = vadd.f32 %v519_v33, %v1171_v22  ;;  %v521_v9 = vpop.f32.mrb[27].mxu1 }
 0x149   :  { %v631_v10 = vadd.f32 %v1209_v57, %v518_v43  ;;  %v522_v36 = vadd.f32 %v521_v9, %v1175_v24 }
 0x14a   :  { %v671_v38 = vmax.f32 %v629_v8, 0.0  ;;  %v633_v39 = vadd.f32 %v1211_v60, %v520_v35 }
 0x14b   :  { %v672_v41 = vmax.f32 %v631_v10, 0.0  ;;  %v635_v42 = vadd.f32 %v1213_v63, %v522_v36 }
 0x14c   :  { %703 = vst [vmem:[%s1358_s3 + $0xc0] sm:$0xff] %v671_v38  ;;  %v673_v44 = vmax.f32 %v633_v39, 0.0 }
 0x14d   :  { %704 = vst [vmem:[%s1358_s3 + $0xc8] sm:$0xff] %v672_v41  ;;  %v674_v54 = vmax.f32 %v635_v42, 0.0  ;;  %v525_v45 = vpop.f32.mrb[28].mxu1 }
 0x14e   :  { %705 = vst [vmem:[%s1358_s3 + $0xd0] sm:$0xff] %v673_v44  ;;  %v526_v57 = vadd.f32 %v525_v45, %v1171_v22  ;;  %v527_v60 = vpop.f32.mrb[29].mxu1 }
 0x14f   :  { %706 = vst [vmem:[%s1358_s3 + $0xd8] sm:$0xff] %v674_v54  ;;  %v528_v63 = vadd.f32 %v527_v60, %v1175_v24  ;;  %v529_v46 = vpop.f32.mrb[30].mxu1 }
 0x150   :  { %v639_v47 = vadd.f32 %v1231_v18, %v526_v57  ;;  %v530_v48 = vadd.f32 %v529_v46, %v1171_v22  ;;  %v531_v49 = vpop.f32.mrb[31].mxu1 }
 0x151   :  { %v641_v50 = vadd.f32 %v1235_v27, %v528_v63  ;;  %v532_v12 = vadd.f32 %v531_v49, %v1175_v24 }
 0x152   :  { %v675_v51 = vmax.f32 %v639_v47, 0.0  ;;  %v643_v13 = vadd.f32 %v1238_v30, %v530_v48 }
 0x153   :  { %v676_v15 = vmax.f32 %v641_v50, 0.0  ;;  %v645_v16 = vadd.f32 %v1241_v7, %v532_v12 }
 0x154   :  { %707 = vst [vmem:[%s1358_s3 + $0xe0] sm:$0xff] %v675_v51  ;;  %v677_v52 = vmax.f32 %v643_v13, 0.0 }
 0x155   :  { %708 = vst [vmem:[%s1358_s3 + $0xe8] sm:$0xff] %v676_v15  ;;  %v678_v22 = vmax.f32 %v645_v16, 0.0 }
 0x156   :  { %709 = vst [vmem:[%s1358_s3 + $0xf0] sm:$0xff] %v677_v52 }
 0x157   :  { %710 = vst [vmem:[%s1358_s3 + $0xf8] sm:$0xff] %v678_v22 }

// kernel: forward.2
= control target key start
LH: loop header
LB: loop body
LE: loop exit
PB: predicated region body
PF: predicated region fallthrough
CT: control target
= control target key end

     0   :  { %v7362_v2 = vmov 0   ;;  %s7357_s0 = inlined_call_operand.vmem [shape: bf16[128,384], index: 0, kind: input, shape index: {}, may-alias: {0,1,2}]   ;;  %s7358_s1 = inlined_call_operand.vmem [shape: bf16[128,384], index: 1, kind: input, shape index: {}, may-alias: {0,1,2}]   ;;  %s7359_s2 = inlined_call_operand.vmem [shape: bf16[128,384], index: 2, kind: input, shape index: {}, may-alias: {0,1,2}]   ;;  %s7360_s3 = inlined_call_operand.vmem [shape: bf16[384,1280], index: 3, kind: input, shape index: {}]   ;;  %s7361_s4 = inlined_call_operand.vmem [shape: bf16[128,1280], index: 4, kind: output, shape index: {}]  }
   0x1   :  { %v5347_v0 = vld [vmem:[%s7360_s3 + $0x284] ss:$40 sps:$4 sm:$0xff]   ;;  %v5768_v1 = vld [vmem:[%s7360_s3 + $0x294] ss:$40 sps:$4 sm:$0xff]   ;;  %1001 = vmatprep.mubr.bf16.mxu1 %v7362_v2  ;;  %1227 = vmatprep.mubr.bf16.mxu0 %v7362_v2  ;;  %v5351_v3 = vld [vmem:[%s7360_s3 + $0x280] ss:$40 sps:$4 sm:$0xff]  }
   0x2   :  { %969 = vmatprep.subr.bf16.mxu1 %v5347_v0  ;;  %v5778_v4 = vld [vmem:[%s7360_s3 + $0x290] ss:$40 sps:$4 sm:$0xff]   ;;  %1195 = vmatprep.subr.bf16.mxu0 %v5768_v1  ;;  %v5353_v5 = vld [vmem:[%s7360_s3 + $0x2d4] ss:$40 sps:$4 sm:$0xff]   ;;  %v5788_v6 = vld [vmem:[%s7360_s3 + $0x2e4] ss:$40 sps:$4 sm:$0xff]  }
   0x3   :  { %970 = vmatpush1.bf16.msra.mxu1 %v5351_v3  ;;  %1196 = vmatpush1.bf16.msra.mxu0 %v5778_v4  ;;  %v5357_v7 = vld [vmem:[%s7360_s3 + $0x2d0] ss:$40 sps:$4 sm:$0xff]   ;;  %v5796_v8 = vld [vmem:[%s7360_s3 + $0x2e0] ss:$40 sps:$4 sm:$0xff]   ;;  %v5359_v9 = vld [vmem:[%s7360_s3 + $0x324] ss:$40 sps:$4 sm:$0xff]  }
   0x4   :  { %971 = vmatprep.subr.bf16.mxu1 %v5353_v5  ;;  %1197 = vmatprep.subr.bf16.mxu0 %v5788_v6  ;;  %v5805_v10 = vld [vmem:[%s7360_s3 + $0x334] ss:$40 sps:$4 sm:$0xff]   ;;  %v5363_v11 = vld [vmem:[%s7360_s3 + $0x320] ss:$40 sps:$4 sm:$0xff]   ;;  %v5813_v12 = vld [vmem:[%s7360_s3 + $0x330] ss:$40 sps:$4 sm:$0xff]  }
   0x5   :  { %v5365_v13 = vld [vmem:[%s7360_s3 + $0x374] ss:$40 sps:$4 sm:$0xff]   ;;  %v5823_v14 = vld [vmem:[%s7360_s3 + $0x384] ss:$40 sps:$4 sm:$0xff]   ;;  %v5369_v15 = vld [vmem:[%s7360_s3 + $0x370] ss:$40 sps:$4 sm:$0xff]  }
   0x6   :  { %v5832_v16 = vld [vmem:[%s7360_s3 + $0x380] ss:$40 sps:$4 sm:$0xff]   ;;  %v5371_v17 = vld [vmem:[%s7360_s3 + $0x3c4] ss:$40 sps:$4 sm:$0xff]   ;;  %v5841_v18 = vld [vmem:[%s7360_s3 + $0x3d4] ss:$40 sps:$4 sm:$0xff]  }
   0x7   :  { %972 = vmatpush1.bf16.msra.mxu1 %v5357_v7  ;;  %1198 = vmatpush1.bf16.msra.mxu0 %v5796_v8  ;;  %v5375_v19 = vld [vmem:[%s7360_s3 + $0x3c0] ss:$40 sps:$4 sm:$0xff]   ;;  %v5849_v20 = vld [vmem:[%s7360_s3 + $0x3d0] ss:$40 sps:$4 sm:$0xff]   ;;  %v5377_v21 = vld [vmem:[%s7360_s3 + $0x414] ss:$40 sps:$4 sm:$0xff]  }
   0x8   :  { %973 = vmatprep.subr.bf16.mxu1 %v5359_v9  ;;  %1199 = vmatprep.subr.bf16.mxu0 %v5805_v10  ;;  %v5859_v22 = vld [vmem:[%s7360_s3 + $0x424] ss:$40 sps:$4 sm:$0xff]   ;;  %v5381_v23 = vld [vmem:[%s7360_s3 + $0x410] ss:$40 sps:$4 sm:$0xff]   ;;  %v5868_v24 = vld [vmem:[%s7360_s3 + $0x420] ss:$40 sps:$4 sm:$0xff]  }
   0x9   :  { %v5383_v25 = vld [vmem:[%s7360_s3 + $0x464] ss:$40 sps:$4 sm:$0xff]   ;;  %v5877_v26 = vld [vmem:[%s7360_s3 + $0x474] ss:$40 sps:$4 sm:$0xff]   ;;  %v4555_v28 = vld [vmem:[%s7358_s1 + $0x10] sm:$0xf] }
   0xa   :  { %v4554_v27 = vld [vmem:[%s7358_s1 + $0x4] sm:$0xf]  ;;  %133 = vst [vmem:[#allocation3 + $0x4] sm:$0xf] %v4555_v28  ;;  %v5387_v29 = vld [vmem:[%s7360_s3 + $0x460] ss:$40 sps:$4 sm:$0xff]  }
   0xb   :  { %974 = vmatpush1.bf16.msra.mxu1 %v5363_v11  ;;  %1200 = vmatpush1.bf16.msra.mxu0 %v5813_v12  ;;  %131 = vst [vmem:[#allocation3] sm:$0xf] %v4554_v27  ;;  %v5892_v30 = vld [vmem:[%s7360_s3 + $0x470] ss:$40 sps:$4 sm:$0xff]   ;;  %v5389_v31 = vld [vmem:[%s7360_s3 + $0x4b4] ss:$40 sps:$4 sm:$0xff]  }
   0xc   :  { %975 = vmatprep.subr.bf16.mxu1 %v5365_v13  ;;  %1201 = vmatprep.subr.bf16.mxu0 %v5823_v14  ;;  %v5901_v32 = vld [vmem:[%s7360_s3 + $0x4c4] ss:$40 sps:$4 sm:$0xff]   ;;  %v4556_v33 = vld [vmem:[%s7358_s1 + $0x1c] sm:$0xf]  ;;  %v4557_v34 = vld [vmem:[%s7358_s1 + $0x28] sm:$0xf] }
   0xd   :  { %v5393_v35 = vld [vmem:[%s7360_s3 + $0x4b0] ss:$40 sps:$4 sm:$0xff]   ;;  %v5915_v36 = vld [vmem:[%s7360_s3 + $0x4c0] ss:$40 sps:$4 sm:$0xff]   ;;  %135 = vst [vmem:[#allocation3 + $0x8] sm:$0xf] %v4556_v33 }
   0xe   :  { %137 = vst [vmem:[#allocation3 + $0xc] sm:$0xf] %v4557_v34  ;;  %v5398_v37 = vld [vmem:[%s7360_s3 + $0x28c] ss:$40 sps:$4 sm:$0xff]   ;;  %v5396_v39 = vld [vmem:[%s7360_s3 + $0x288] ss:$40 sps:$4 sm:$0xff]  }
   0xf   :  { %976 = vmatpush1.bf16.msra.mxu1 %v5369_v15  ;;  %1202 = vmatpush1.bf16.msra.mxu0 %v5832_v16  ;;  %v5401_v38 = vld [vmem:[%s7360_s3 + $0x2a4] ss:$40 sps:$4 sm:$0xff]   ;;  %v5399_v41 = vld [vmem:[%s7360_s3 + $0x2a0] ss:$40 sps:$4 sm:$0xff]   ;;  %v4558_v42 = vld [vmem:[%s7358_s1 + $0x34] sm:$0xf] }
  0x10   :  { %977 = vmatprep.subr.bf16.mxu1 %v5371_v17  ;;  %1203 = vmatprep.subr.bf16.mxu0 %v5841_v18  ;;  %139 = vst [vmem:[#allocation3 + $0x10] sm:$0xf] %v4558_v42  ;;  %v4559_v43 = vld [vmem:[%s7358_s1 + $0x40] sm:$0xf]  ;;  %v5404_v44 = vld [vmem:[%s7360_s3 + $0x2f4] ss:$40 sps:$4 sm:$0xff]  }
  0x11   :  { %141 = vst [vmem:[#allocation3 + $0x14] sm:$0xf] %v4559_v43  ;;  %v5408_v45 = vld [vmem:[%s7360_s3 + $0x2dc] ss:$40 sps:$4 sm:$0xff]   ;;  %v5402_v46 = vld [vmem:[%s7360_s3 + $0x2f0] ss:$40 sps:$4 sm:$0xff]  }
  0x12   :  { %v5928_v40 = vld [vmem:[#allocation3] sm:$0xff]   ;;  %v5418_v49 = vld [vmem:[%s7360_s3 + $0x32c] ss:$40 sps:$4 sm:$0xff]   ;;  %v4561_v51 = vld [vmem:[%s7358_s1 + $0x58] sm:$0xf] }
  0x13   :  { %978 = vmatpush1.bf16.msra.mxu1 %v5375_v19  ;;  %1204 = vmatpush1.bf16.msra.mxu0 %v5849_v20  ;;  %v5406_v47 = vld [vmem:[%s7360_s3 + $0x2d8] ss:$40 sps:$4 sm:$0xff]   ;;  %v5411_v48 = vld [vmem:[%s7360_s3 + $0x344] ss:$40 sps:$4 sm:$0xff]   ;;  %145 = vst [vmem:[#allocation3 + $0x1c] sm:$0xf] %v4561_v51 }
  0x14   :  { %979 = vmatprep.subr.bf16.mxu1 %v5377_v21  ;;  %1205 = vmatprep.subr.bf16.mxu0 %v5859_v22  ;;  %v4560_v50 = vld [vmem:[%s7358_s1 + $0x4c] sm:$0xf]  ;;  %v5409_v53 = vld [vmem:[%s7360_s3 + $0x340] ss:$40 sps:$4 sm:$0xff]   ;;  %v5414_v54 = vld [vmem:[%s7360_s3 + $0x394] ss:$40 sps:$4 sm:$0xff]  }
  0x15   :  { %143 = vst [vmem:[#allocation3 + $0x18] sm:$0xf] %v4560_v50  ;;  %v5968_v52 = vld [vmem:[#allocation3 + $0x8] sm:$0xff]   ;;  %v5428_v56 = vld [vmem:[%s7360_s3 + $0x37c] ss:$40 sps:$4 sm:$0xff]  }
  0x16   :  { %v5416_v55 = vld [vmem:[%s7360_s3 + $0x328] ss:$40 sps:$4 sm:$0xff]   ;;  %v4562_v57 = vld [vmem:[%s7358_s1 + $0x64] sm:$0xf]  ;;  %v5426_v61 = vld [vmem:[%s7360_s3 + $0x378] ss:$40 sps:$4 sm:$0xff]  }
  0x17   :  { %980 = vmatpush1.bf16.msra.mxu1 %v5381_v23  ;;  %1206 = vmatpush1.bf16.msra.mxu0 %v5868_v24  ;;  %v4563_v58 = vld [vmem:[%s7358_s1 + $0x70] sm:$0xf]  ;;  %147 = vst [vmem:[#allocation3 + $0x20] sm:$0xf] %v4562_v57  ;;  %v5421_v60 = vld [vmem:[%s7360_s3 + $0x3e4] ss:$40 sps:$4 sm:$0xff]  }
  0x18   :  { %981 = vmatprep.subr.bf16.mxu1 %v5383_v25  ;;  %1207 = vmatprep.subr.bf16.mxu0 %v5877_v26  ;;  %v5412_v59 = vld [vmem:[%s7360_s3 + $0x390] ss:$40 sps:$4 sm:$0xff]   ;;  %149 = vst [vmem:[#allocation3 + $0x24] sm:$0xf] %v4563_v58  ;;  %v4564_v63 = vld [vmem:[%s7358_s1 + $0x7c] sm:$0xf] }
  0x19   :  { %v6001_v62 = vld [vmem:[#allocation3 + $0x10] sm:$0xff]   ;;  %v4565_v0 = vld [vmem:[%s7358_s1 + $0x88] sm:$0xf]  ;;  %151 = vst [vmem:[#allocation3 + $0x28] sm:$0xf] %v4564_v63 }
  0x1a   :  { %v5419_v3 = vld [vmem:[%s7360_s3 + $0x3e0] ss:$40 sps:$4 sm:$0xff]   ;;  %153 = vst [vmem:[#allocation3 + $0x2c] sm:$0xf] %v4565_v0  ;;  %v5424_v5 = vld [vmem:[%s7360_s3 + $0x434] ss:$40 sps:$4 sm:$0xff]  }
  0x1b   :  { %982 = vmatpush1.bf16.msra.mxu1 %v5387_v29  ;;  %1208 = vmatpush1.bf16.msra.mxu0 %v5892_v30  ;;  %v5422_v7 = vld [vmem:[%s7360_s3 + $0x430] ss:$40 sps:$4 sm:$0xff]   ;;  %v5438_v11 = vld [vmem:[%s7360_s3 + $0x3cc] ss:$40 sps:$4 sm:$0xff]   ;;  %v5445_v15 = vld [vmem:[%s7360_s3 + $0x41c] ss:$40 sps:$4 sm:$0xff]  }
  0x1c   :  { %983 = vmatprep.subr.bf16.mxu1 %v5389_v31  ;;  %1209 = vmatprep.subr.bf16.mxu0 %v5901_v32  ;;  %v5436_v9 = vld [vmem:[%s7360_s3 + $0x3c8] ss:$40 sps:$4 sm:$0xff]   ;;  %v4566_v13 = vld [vmem:[%s7358_s1 + $0x94] sm:$0xf]  ;;  %v4567_v17 = vld [vmem:[%s7358_s1 + $0xa0] sm:$0xf] }
  0x1d   :  { %155 = vst [vmem:[#allocation3 + $0x30] sm:$0xf] %v4566_v13  ;;  %v5431_v19 = vld [vmem:[%s7360_s3 + $0x484] ss:$40 sps:$4 sm:$0xff]   ;;  %157 = vst [vmem:[#allocation3 + $0x34] sm:$0xf] %v4567_v17 }
  0x1e   :  { %v5429_v21 = vld [vmem:[%s7360_s3 + $0x480] ss:$40 sps:$4 sm:$0xff]   ;;  %v6043_v23 = vld [vmem:[#allocation3 + $0x18] sm:$0xff]   ;;  %v4568_v25 = vld [vmem:[%s7358_s1 + $0xac] sm:$0xf] }
  0x1f   :  { %984 = vmatpush1.bf16.msra.mxu1 %v5393_v35  ;;  %1210 = vmatpush1.bf16.msra.mxu0 %v5915_v36  ;;  %v4569_v27 = vld [vmem:[%s7358_s1 + $0xb8] sm:$0xf]  ;;  %v5434_v28 = vld [vmem:[%s7360_s3 + $0x4d4] ss:$40 sps:$4 sm:$0xff]   ;;  %159 = vst [vmem:[#allocation3 + $0x38] sm:$0xf] %v4568_v25 }
  0x20   :  { %1082 = vmatprep.subr.bf16.mxu1 %v5398_v37  ;;  %1421 = vmatprep.subr.bf16.mxu0 %v5401_v38  ;;  %v5443_v29 = vld [vmem:[%s7360_s3 + $0x418] ss:$40 sps:$4 sm:$0xff]   ;;  %161 = vst [vmem:[#allocation3 + $0x3c] sm:$0xf] %v4569_v27  ;;  %v5452_v31 = vld [vmem:[%s7360_s3 + $0x46c] ss:$40 sps:$4 sm:$0xff]  }
  0x21   :  { %v5432_v33 = vld [vmem:[%s7360_s3 + $0x4d0] ss:$40 sps:$4 sm:$0xff]   ;;  %v5441_v34 = vld [vmem:[%s7360_s3 + $0x4] ss:$40 sps:$4 sm:$0xff]   ;;  %v5439_v38 = vld [vmem:[%s7360_s3] ss:$40 sps:$4 sm:$0xff]  }
  0x22   :  { %1002 = vmatmul.mubr.bf16.vlgmr.msra.gmra.mrb[0].mxu1 %v5928_v40  ;;  %1228 = vmatmul.mubr.bf16.vlgmr.msra.gmra.mrb[0].mxu0 %v5928_v40  ;;  %v5450_v35 = vld [vmem:[%s7360_s3 + $0x468] ss:$40 sps:$4 sm:$0xff]   ;;  %v6073_v37 = vld [vmem:[#allocation3 + $0x20] sm:$0xff]   ;;  %v36_v51 = vld [vmem:[%s7357_s0 + $0x3c] sm:$0xf] }
  0x23   :  { %1083 = vmatpush1.bf16.msra.mxu1 %v5396_v39  ;;  %1422 = vmatpush1.bf16.msra.mxu0 %v5399_v41  ;;  %v5448_v39 = vld [vmem:[%s7360_s3 + $0x54] ss:$40 sps:$4 sm:$0xff]   ;;  %v5457_v41 = vld [vmem:[%s7360_s3 + $0x4b8] ss:$40 sps:$4 sm:$0xff]   ;;  %v34_v50 = vld [vmem:[%s7357_s0 + $0x30] sm:$0xf] }
  0x24   :  { %1423 = vmatprep.subr.bf16.mxu0 %v5404_v44  ;;  %1011 = vmatprep.mubr.bf16.mxu1 %v7362_v2  ;;  %v5459_v42 = vld [vmem:[%s7360_s3 + $0x4bc] ss:$40 sps:$4 sm:$0xff]   ;;  %v26_v43 = vld [vmem:[%s7357_s0] sm:$0xf]  ;;  %v28_v44 = vld [vmem:[%s7357_s0 + $0xc] sm:$0xf] }
  0x25   :  { %1237 = vmatprep.mubr.bf16.mxu0 %v7362_v2  ;;  %1084 = vmatprep.subr.bf16.mxu1 %v5408_v45  ;;  %27 = vst [vmem:[#allocation2] sm:$0xf] %v26_v43  ;;  %v5446_v45 = vld [vmem:[%s7360_s3 + $0x50] ss:$40 sps:$4 sm:$0xff]   ;;  %29 = vst [vmem:[#allocation2 + $0x4] sm:$0xf] %v28_v44 }
  0x26   :  { %35 = vst [vmem:[#allocation2 + $0x10] sm:$0xf] %v34_v50  ;;  %37 = vst [vmem:[#allocation2 + $0x14] sm:$0xf] %v36_v51  ;;  %v5465_v57 = vld [vmem:[%s7360_s3 + $0x144] ss:$40 sps:$4 sm:$0xff]  }
  0x27   :  { %1424 = vmatpush1.bf16.msra.mxu0 %v5402_v46  ;;  %1085 = vmatpush1.bf16.msra.mxu1 %v5406_v47  ;;  %v5455_v46 = vld [vmem:[%s7360_s3 + $0xa4] ss:$40 sps:$4 sm:$0xff]   ;;  %v30_v47 = vld [vmem:[%s7357_s0 + $0x18] sm:$0xf]  ;;  %v42_v58 = vld [vmem:[%s7357_s0 + $0x60] sm:$0xf] }
  0x28   :  { %1425 = vmatprep.subr.bf16.mxu0 %v5411_v48  ;;  %1086 = vmatprep.subr.bf16.mxu1 %v5418_v49  ;;  %31 = vst [vmem:[#allocation2 + $0x8] sm:$0xf] %v30_v47  ;;  %v32_v48 = vld [vmem:[%s7357_s0 + $0x24] sm:$0xf]  ;;  %v6109_v49 = vld [vmem:[#allocation3 + $0x28] sm:$0xff]  }
  0x29   :  { %33 = vst [vmem:[#allocation2 + $0xc] sm:$0xf] %v32_v48  ;;  %43 = vst [vmem:[#allocation2 + $0x20] sm:$0xf] %v42_v58  ;;  %v5468_v63 = vld [vmem:[%s7360_s3 + $0x194] ss:$40 sps:$4 sm:$0xff]  }
  0x2a   :  { %1012 = vmatmul.mubr.bf16.gmra.mrb[4].mxu1 %v5968_v52  ;;  %1238 = vmatmul.mubr.bf16.gmra.mrb[4].mxu0 %v5968_v52  ;;  %v5466_v0 = vld [vmem:[%s7360_s3 + $0x190] ss:$40 sps:$4 sm:$0xff]   ;;  %v5474_v13 = vld [vmem:[%s7360_s3 + $0x234] ss:$40 sps:$4 sm:$0xff]   ;;  %v54_v25 = vld [vmem:[%s7357_s0 + $0xa8] sm:$0xf] }
  0x2b   :  { %1426 = vmatpush1.bf16.msra.mxu0 %v5409_v53  ;;  %1021 = vmatprep.mubr.bf16.mxu1 %v7362_v2  ;;  %v5453_v53 = vld [vmem:[%s7360_s3 + $0xa0] ss:$40 sps:$4 sm:$0xff]   ;;  %v52_v17 = vld [vmem:[%s7357_s0 + $0x9c] sm:$0xf]  ;;  %v56_v27 = vld [vmem:[%s7357_s0 + $0xb4] sm:$0xf] }
  0x2c   :  { %1427 = vmatprep.subr.bf16.mxu0 %v5414_v54  ;;  %1247 = vmatprep.mubr.bf16.mxu0 %v7362_v2  ;;  %v38_v54 = vld [vmem:[%s7357_s0 + $0x48] sm:$0xf]  ;;  %53 = vst [vmem:[#allocation2 + $0x34] sm:$0xf] %v52_v17  ;;  %55 = vst [vmem:[#allocation2 + $0x38] sm:$0xf] %v54_v25 }
  0x2d   :  { %1087 = vmatpush1.bf16.msra.mxu1 %v5416_v55  ;;  %39 = vst [vmem:[#allocation2 + $0x18] sm:$0xf] %v38_v54  ;;  %v40_v55 = vld [vmem:[%s7357_s0 + $0x54] sm:$0xf]  ;;  %57 = vst [vmem:[#allocation2 + $0x3c] sm:$0xf] %v56_v27 }
  0x2e   :  { %1088 = vmatprep.subr.bf16.mxu1 %v5428_v56  ;;  %v5462_v56 = vld [vmem:[%s7360_s3 + $0xf4] ss:$40 sps:$4 sm:$0xff]   ;;  %41 = vst [vmem:[#allocation2 + $0x1c] sm:$0xf] %v40_v55  ;;  %v5518_v47 = vld [vmem:[%s7360_s3 + $0x428] ss:$40 sps:$4 sm:$0xff]  }
  0x2f   :  { %1428 = vmatpush1.bf16.msra.mxu0 %v5412_v59  ;;  %v44_v59 = vld [vmem:[%s7357_s0 + $0x6c] sm:$0xf]  ;;  %v5513_v43 = vld [vmem:[%s7360_s3 + $0x3dc] ss:$40 sps:$4 sm:$0xff]   ;;  %v5521_v51 = vld [vmem:[%s7360_s3 + $0x478] ss:$40 sps:$4 sm:$0xff]  }
  0x30   :  { %1429 = vmatprep.subr.bf16.mxu0 %v5421_v60  ;;  %v6146_v60 = vld [vmem:[#allocation3 + $0x30] sm:$0xff]   ;;  %45 = vst [vmem:[#allocation2 + $0x24] sm:$0xf] %v44_v59  ;;  %v5523_v48 = vld [vmem:[%s7360_s3 + $0x47c] ss:$40 sps:$4 sm:$0xff]  }
  0x31   :  { %1089 = vmatpush1.bf16.msra.mxu1 %v5426_v61  ;;  %v5463_v61 = vld [vmem:[%s7360_s3 + $0x140] ss:$40 sps:$4 sm:$0xff]   ;;  %v4571_v55 = vld [vmem:[%s7359_s2 + $0x14] sm:$0xf]  ;;  %v5539_v59 = vld [vmem:[%s7360_s3 + $0x5c] ss:$40 sps:$4 sm:$0xff]  }
  0x32   :  { %1022 = vmatmul.mubr.bf16.gmra.mrb[8].mxu1 %v6001_v62  ;;  %1248 = vmatmul.mubr.bf16.gmra.mrb[8].mxu0 %v6001_v62  ;;  %v4570_v54 = vld [vmem:[%s7359_s2 + $0x8] sm:$0xf]  ;;  %237 = vst [vmem:[#allocation4 + $0x4] sm:$0xf] %v4571_v55  ;;  %v4575_v25 = vld [vmem:[%s7359_s2 + $0x44] sm:$0xf] }
  0x33   :  { %1430 = vmatpush1.bf16.msra.mxu0 %v5419_v3  ;;  %1031 = vmatprep.mubr.bf16.mxu1 %v7362_v2  ;;  %v46_v3 = vld [vmem:[%s7357_s0 + $0x78] sm:$0xf]  ;;  %235 = vst [vmem:[#allocation4] sm:$0xf] %v4570_v54  ;;  %v5534_v58 = vld [vmem:[%s7360_s3 + $0x20] ss:$40 sps:$4 sm:$0xff]  }
  0x34   :  { %1431 = vmatprep.subr.bf16.mxu0 %v5424_v5  ;;  %1257 = vmatprep.mubr.bf16.mxu0 %v7362_v2  ;;  %47 = vst [vmem:[#allocation2 + $0x28] sm:$0xf] %v46_v3  ;;  %v48_v5 = vld [vmem:[%s7357_s0 + $0x84] sm:$0xf]  ;;  %v6360_v50 = vld [vmem:[#allocation2 + $0x38] sm:$0xff]  }
  0x35   :  { %1090 = vmatprep.subr.bf16.mxu1 %v5438_v11  ;;  %49 = vst [vmem:[#allocation2 + $0x2c] sm:$0xf] %v48_v5  ;;  %v5469_v11 = vld [vmem:[%s7360_s3 + $0x1e0] ss:$40 sps:$4 sm:$0xff]   ;;  %v5554_v27 = vld [vmem:[%s7360_s3 + $0x114] ss:$40 sps:$4 sm:$0xff]  }
  0x36   :  { %1091 = vmatpush1.bf16.msra.mxu1 %v5436_v9  ;;  %v6170_v9 = vld [vmem:[#allocation3 + $0x38] sm:$0xff]   ;;  %v5731_v3 = vld [vmem:[#allocation3] sm:$0xff]   ;;  %245 = vst [vmem:[#allocation4 + $0x14] sm:$0xf] %v4575_v25  ;;  %v4584_v55 = vld [vmem:[%s7359_s2 + $0xb0] sm:$0xf] }
  0x37   :  { %1432 = vmatpush1.bf16.msra.mxu0 %v5422_v7  ;;  %1092 = vmatprep.subr.bf16.mxu1 %v5445_v15  ;;  %v5471_v7 = vld [vmem:[%s7360_s3 + $0x1e4] ss:$40 sps:$4 sm:$0xff]   ;;  %v50_v15 = vld [vmem:[%s7357_s0 + $0x90] sm:$0xf]  ;;  %v5537_v5 = vld [vmem:[%s7360_s3 + $0x58] ss:$40 sps:$4 sm:$0xff]  }
  0x38   :  { %1433 = vmatprep.subr.bf16.mxu0 %v5431_v19  ;;  %51 = vst [vmem:[#allocation2 + $0x30] sm:$0xf] %v50_v15  ;;  %v5472_v19 = vld [vmem:[%s7360_s3 + $0x230] ss:$40 sps:$4 sm:$0xff]   ;;  %v5546_v17 = vld [vmem:[%s7360_s3 + $0xc0] ss:$40 sps:$4 sm:$0xff]  }
  0x39   :  { %v5543_v15 = vld [vmem:[%s7360_s3 + $0xa8] ss:$40 sps:$4 sm:$0xff]   ;;  %v4583_v54 = vld [vmem:[%s7359_s2 + $0xa4] sm:$0xf]  ;;  %263 = vst [vmem:[#allocation4 + $0x38] sm:$0xf] %v4584_v55 }
  0x3a   :  { %1032 = vmatmul.mubr.bf16.gmra.mrb[12].mxu1 %v6043_v23  ;;  %1258 = vmatmul.mubr.bf16.gmra.mrb[12].mxu0 %v6043_v23  ;;  %261 = vst [vmem:[#allocation4 + $0x34] sm:$0xf] %v4583_v54  ;;  %v5633_v54 = vld [vmem:[%s7360_s3 + $0x514] ss:$40 sps:$4 sm:$0xff]  }
  0x3b   :  { %1434 = vmatpush1.bf16.msra.mxu0 %v5429_v21  ;;  %1041 = vmatprep.mubr.bf16.mxu1 %v7362_v2  ;;  %v5478_v21 = vld [vmem:[%s7360_s3 + $0x14] ss:$40 sps:$4 sm:$0xff]  }
  0x3c   :  { %1435 = vmatprep.subr.bf16.mxu0 %v5434_v28  ;;  %1453 = vmatprep.mubr.bf16.mxu0 %v7362_v2  ;;  %v5525_v28 = vld [vmem:[%s7360_s3 + $0x240] ss:$40 sps:$4 sm:$0xff]  }
  0x3d   :  { %1093 = vmatpush1.bf16.msra.mxu1 %v5443_v29  ;;  %v5536_v29 = vld [vmem:[%s7360_s3 + $0x24] ss:$40 sps:$4 sm:$0xff]  }
  0x3e   :  { %1094 = vmatprep.subr.bf16.mxu1 %v5452_v31  ;;  %v6306_v31 = vld [vmem:[#allocation2 + $0x20] sm:$0xff]  }
  0x3f   :  { %1436 = vmatpush1.bf16.msra.mxu0 %v5432_v33  ;;  %v5491_v33 = vld [vmem:[%s7360_s3 + $0x298] ss:$40 sps:$4 sm:$0xff]   ;;  %v6342_v44 = vld [vmem:[#allocation2 + $0x30] sm:$0xff]  }
  0x40   :  { %1982 = vmatprep.subr.bf16.mxu0 %v5441_v34  ;;  %v5500_v34 = vld [vmem:[%s7360_s3 + $0x2ec] ss:$40 sps:$4 sm:$0xff]  }
  0x41   :  { %1095 = vmatpush1.bf16.msra.mxu1 %v5450_v35  ;;  %v5498_v35 = vld [vmem:[%s7360_s3 + $0x2e8] ss:$40 sps:$4 sm:$0xff]  }
  0x42   :  { %1042 = vmatmul.mubr.bf16.gmra.mrb[16].mxu1 %v6073_v37  ;;  %1454 = vmatmul.mubr.bf16.vlgmr.msra.gmra.mrb[16].mxu0 %v5928_v40 }
  0x43   :  { %1983 = vmatpush1.bf16.msra.mxu0 %v5439_v38  ;;  %1051 = vmatprep.mubr.bf16.mxu1 %v7362_v2  ;;  %v5503_v38 = vld [vmem:[%s7360_s3 + $0x33c] ss:$40 sps:$4 sm:$0xff]  }
  0x44   :  { %1463 = vmatprep.mubr.bf16.mxu0 %v7362_v2  ;;  %1984 = vmatprep.subr.bf16.mxu0 %v5448_v39  ;;  %v6324_v39 = vld [vmem:[#allocation2 + $0x28] sm:$0xff]  }
  0x45   :  { %1096 = vmatprep.subr.bf16.mxu1 %v5459_v42  ;;  %v5508_v42 = vld [vmem:[%s7360_s3 + $0x388] ss:$40 sps:$4 sm:$0xff]  }
  0x46   :  { %1097 = vmatpush1.bf16.msra.mxu1 %v5457_v41  ;;  %v5510_v41 = vld [vmem:[%s7360_s3 + $0x38c] ss:$40 sps:$4 sm:$0xff]  }
  0x47   :  { %1985 = vmatpush1.bf16.msra.mxu0 %v5446_v45  ;;  %5010 = vmatprep.subr.bf16.mxu1 %v5768_v1  ;;  %v5460_v1 = vld [vmem:[%s7360_s3 + $0xf0] ss:$40 sps:$4 sm:$0xff]  }
  0x48   :  { %1986 = vmatprep.subr.bf16.mxu0 %v5455_v46  ;;  %v5511_v45 = vld [vmem:[%s7360_s3 + $0x3d8] ss:$40 sps:$4 sm:$0xff]   ;;  %v5520_v46 = vld [vmem:[%s7360_s3 + $0x42c] ss:$40 sps:$4 sm:$0xff]  }
  0x4a   :  { %1052 = vmatmul.mubr.bf16.gmra.mrb[20].mxu1 %v6109_v49  ;;  %1464 = vmatmul.mubr.bf16.gmra.mrb[20].mxu0 %v5968_v52 }
  0x4b   :  { %1061 = vmatprep.mubr.bf16.mxu1 %v7362_v2  ;;  %1473 = vmatprep.mubr.bf16.mxu0 %v7362_v2 }
  0x4c   :  { %1987 = vmatpush1.bf16.msra.mxu0 %v5453_v53  ;;  %v5530_v53 = vld [vmem:[%s7360_s3 + $0x4cc] ss:$40 sps:$4 sm:$0xff]  }
  0x4d   :  { %1988 = vmatprep.subr.bf16.mxu0 %v5462_v56  ;;  %v5528_v56 = vld [vmem:[%s7360_s3 + $0x4c8] ss:$40 sps:$4 sm:$0xff]  }
  0x50   :  { %1989 = vmatpush1.bf16.msra.mxu0 %v5460_v1  ;;  %v5533_v1 = vld [vmem:[%s7360_s3 + $0xc] ss:$40 sps:$4 sm:$0xff]  }
  0x51   :  { %1990 = vmatprep.subr.bf16.mxu0 %v5465_v57  ;;  %v5531_v57 = vld [vmem:[%s7360_s3 + $0x8] ss:$40 sps:$4 sm:$0xff]  }
  0x52   :  { %1062 = vmatmul.mubr.bf16.gmra.mrb[24].mxu1 %v6146_v60  ;;  %1474 = vmatmul.mubr.bf16.gmra.mrb[24].mxu0 %v6001_v62 }
  0x53   :  { %1071 = vmatprep.mubr.bf16.mxu1 %v7362_v2  ;;  %1483 = vmatprep.mubr.bf16.mxu0 %v7362_v2 }
  0x54   :  { %1991 = vmatpush1.bf16.msra.mxu0 %v5463_v61  ;;  %v5542_v61 = vld [vmem:[%s7360_s3 + $0x74] ss:$40 sps:$4 sm:$0xff]  }
  0x55   :  { %1992 = vmatprep.subr.bf16.mxu0 %v5468_v63  ;;  %v4572_v63 = vld [vmem:[%s7359_s2 + $0x20] sm:$0xf] }
  0x56   :  { %239 = vst [vmem:[#allocation4 + $0x8] sm:$0xf] %v4572_v63  ;;  %v5579_v63 = vld [vmem:[%s7360_s3 + $0x18] ss:$40 sps:$4 sm:$0xff]  }
  0x58   :  { %1993 = vmatpush1.bf16.msra.mxu0 %v5466_v0  ;;  %v4573_v0 = vld [vmem:[%s7359_s2 + $0x2c] sm:$0xf] }
  0x59   :  { %1994 = vmatprep.subr.bf16.mxu0 %v5471_v7  ;;  %241 = vst [vmem:[#allocation4 + $0xc] sm:$0xf] %v4573_v0  ;;  %v5540_v7 = vld [vmem:[%s7360_s3 + $0x70] ss:$40 sps:$4 sm:$0xff]  }
  0x5a   :  { %1072 = vmatmul.mubr.bf16.gmra.mrb[28].mxu1 %v6170_v9  ;;  %1484 = vmatmul.mubr.bf16.gmra.mrb[28].mxu0 %v6043_v23 }
  0x5b   :  { %1114 = vmatprep.mubr.bf16.mxu1 %v7362_v2  ;;  %1493 = vmatprep.mubr.bf16.mxu0 %v7362_v2 }
  0x5c   :  { %1995 = vmatpush1.bf16.msra.mxu0 %v5469_v11  ;;  %v5545_v11 = vld [vmem:[%s7360_s3 + $0xac] ss:$40 sps:$4 sm:$0xff]  }
  0x5d   :  { %1996 = vmatprep.subr.bf16.mxu0 %v5474_v13  ;;  %v5548_v13 = vld [vmem:[%s7360_s3 + $0xc4] ss:$40 sps:$4 sm:$0xff]  }
  0x60   :  { %1997 = vmatpush1.bf16.msra.mxu0 %v5472_v19  ;;  %v5551_v19 = vld [vmem:[%s7360_s3 + $0xfc] ss:$40 sps:$4 sm:$0xff]  }
  0x61   :  { %2208 = vmatprep.subr.bf16.mxu0 %v5478_v21  ;;  %v4574_v21 = vld [vmem:[%s7359_s2 + $0x38] sm:$0xf] }
  0x62   :  { %1115 = vmatmul.mubr.bf16.vlgmr.msra.gmra.mrb[32].mxu1 %v5928_v40  ;;  %1494 = vmatmul.mubr.bf16.gmra.mrb[32].mxu0 %v6073_v37  ;;  %v5517_v40 = vld [vmem:[%s7360_s3 + $0x1f4] ss:$40 sps:$4 sm:$0xff]   ;;  %243 = vst [vmem:[#allocation4 + $0x10] sm:$0xf] %v4574_v21 }
  0x63   :  { %5018 = vmatpush1.bf16.msra.mxu1 %v5778_v4  ;;  %1124 = vmatprep.mubr.bf16.mxu1 %v7362_v2  ;;  %v5493_v4 = vld [vmem:[%s7360_s3 + $0x29c] ss:$40 sps:$4 sm:$0xff]  }
  0x64   :  { %1503 = vmatprep.mubr.bf16.mxu0 %v7362_v2  ;;  %5011 = vmatprep.subr.bf16.mxu1 %v5788_v6  ;;  %v6231_v6 = vld [vmem:[#allocation2] sm:$0xff]  }
  0x67   :  { %5019 = vmatpush1.bf16.msra.mxu1 %v5796_v8  ;;  %v5476_v8 = vld [vmem:[%s7360_s3 + $0x10] ss:$40 sps:$4 sm:$0xff]  }
  0x68   :  { %5012 = vmatprep.subr.bf16.mxu1 %v5805_v10  ;;  %v5482_v10 = vld [vmem:[%s7360_s3 + $0x64] ss:$40 sps:$4 sm:$0xff]  }
  0x6a   :  { %1125 = vmatmul.mubr.bf16.gmra.mrb[36].mxu1 %v5968_v52  ;;  %1504 = vmatmul.mubr.bf16.gmra.mrb[36].mxu0 %v6109_v49  ;;  %v6288_v52 = vld [vmem:[#allocation2 + $0x18] sm:$0xff]  }
  0x6b   :  { %1134 = vmatprep.mubr.bf16.mxu1 %v7362_v2  ;;  %1513 = vmatprep.mubr.bf16.mxu0 %v7362_v2 }
  0x6c   :  { %5020 = vmatpush1.bf16.msra.mxu1 %v5813_v12  ;;  %v5480_v12 = vld [vmem:[%s7360_s3 + $0x60] ss:$40 sps:$4 sm:$0xff]  }
  0x6d   :  { %5013 = vmatprep.subr.bf16.mxu1 %v5823_v14  ;;  %v5486_v14 = vld [vmem:[%s7360_s3 + $0xb4] ss:$40 sps:$4 sm:$0xff]  }
  0x70   :  { %5021 = vmatpush1.bf16.msra.mxu1 %v5832_v16  ;;  %v6252_v16 = vld [vmem:[#allocation2 + $0x8] sm:$0xff]  }
  0x71   :  { %5014 = vmatprep.subr.bf16.mxu1 %v5841_v18  ;;  %v5484_v18 = vld [vmem:[%s7360_s3 + $0xb0] ss:$40 sps:$4 sm:$0xff]  }
  0x72   :  { %1135 = vmatmul.mubr.bf16.gmra.mrb[40].mxu1 %v6001_v62  ;;  %1514 = vmatmul.mubr.bf16.gmra.mrb[40].mxu0 %v6146_v60  ;;  %v5515_v62 = vld [vmem:[%s7360_s3 + $0x1f0] ss:$40 sps:$4 sm:$0xff]  }
  0x73   :  { %1144 = vmatprep.mubr.bf16.mxu1 %v7362_v2  ;;  %1523 = vmatprep.mubr.bf16.mxu0 %v7362_v2 }
  0x74   :  { %5022 = vmatpush1.bf16.msra.mxu1 %v5849_v20  ;;  %v5490_v20 = vld [vmem:[%s7360_s3 + $0x104] ss:$40 sps:$4 sm:$0xff]  }
  0x75   :  { %5015 = vmatprep.subr.bf16.mxu1 %v5859_v22  ;;  %v5488_v22 = vld [vmem:[%s7360_s3 + $0x100] ss:$40 sps:$4 sm:$0xff]  }
  0x78   :  { %5023 = vmatpush1.bf16.msra.mxu1 %v5868_v24  ;;  %v5497_v24 = vld [vmem:[%s7360_s3 + $0x154] ss:$40 sps:$4 sm:$0xff]  }
  0x79   :  { %5016 = vmatprep.subr.bf16.mxu1 %v5877_v26  ;;  %v6270_v26 = vld [vmem:[#allocation2 + $0x10] sm:$0xff]  }
  0x7a   :  { %1145 = vmatmul.mubr.bf16.gmra.mrb[44].mxu1 %v6043_v23  ;;  %1524 = vmatmul.mubr.bf16.gmra.mrb[44].mxu0 %v6170_v9  ;;  %v5527_v23 = vld [vmem:[%s7360_s3 + $0x244] ss:$40 sps:$4 sm:$0xff]  }
  0x7b   :  { %1154 = vmatprep.mubr.bf16.mxu1 %v7362_v2  ;;  %2014 = vmatprep.mubr.bf16.mxu0 %v7362_v2 }
  0x7c   :  { %5024 = vmatpush1.bf16.msra.mxu1 %v5892_v30  ;;  %v5495_v30 = vld [vmem:[%s7360_s3 + $0x150] ss:$40 sps:$4 sm:$0xff]  }
  0x7d   :  { %5017 = vmatprep.subr.bf16.mxu1 %v5901_v32  ;;  %v5507_v32 = vld [vmem:[%s7360_s3 + $0x1a4] ss:$40 sps:$4 sm:$0xff]  }
  0x80   :  { %5025 = vmatpush1.bf16.msra.mxu1 %v5915_v36  ;;  %v5505_v36 = vld [vmem:[%s7360_s3 + $0x1a0] ss:$40 sps:$4 sm:$0xff]  }
  0x81   :  { %1308 = vmatprep.subr.bf16.mxu1 %v5493_v4  ;;  %v5732_v4 = vld [vmem:[#allocation3 + $0x8] sm:$0xff]  }
  0x82   :  { %1155 = vmatmul.mubr.bf16.gmra.mrb[48].mxu1 %v6073_v37  ;;  %2015 = vmatmul.mubr.bf16.vlgmr.msra.gmra.mrb[48].mxu0 %v6231_v6 }
  0x83   :  { %2209 = vmatpush1.bf16.msra.mxu0 %v5476_v8  ;;  %1164 = vmatprep.mubr.bf16.mxu1 %v7362_v2  ;;  %v5549_v8 = vld [vmem:[%s7360_s3 + $0xf8] ss:$40 sps:$4 sm:$0xff]  }
  0x84   :  { %2024 = vmatprep.mubr.bf16.mxu0 %v7362_v2  ;;  %2210 = vmatprep.subr.bf16.mxu0 %v5482_v10  ;;  %v5552_v10 = vld [vmem:[%s7360_s3 + $0x110] ss:$40 sps:$4 sm:$0xff]  }
  0x87   :  { %2211 = vmatpush1.bf16.msra.mxu0 %v5480_v12  ;;  %v5557_v12 = vld [vmem:[%s7360_s3 + $0x14c] ss:$40 sps:$4 sm:$0xff]  }
  0x88   :  { %2212 = vmatprep.subr.bf16.mxu0 %v5486_v14  ;;  %v5560_v14 = vld [vmem:[%s7360_s3 + $0x164] ss:$40 sps:$4 sm:$0xff]  }
  0x8a   :  { %1165 = vmatmul.mubr.bf16.gmra.mrb[52].mxu1 %v6109_v49  ;;  %2025 = vmatmul.mubr.bf16.gmra.mrb[52].mxu0 %v6252_v16 }
  0x8b   :  { %1174 = vmatprep.mubr.bf16.mxu1 %v7362_v2  ;;  %2034 = vmatprep.mubr.bf16.mxu0 %v7362_v2 }
  0x8c   :  { %2213 = vmatpush1.bf16.msra.mxu0 %v5484_v18  ;;  %v5555_v18 = vld [vmem:[%s7360_s3 + $0x148] ss:$40 sps:$4 sm:$0xff]  }
  0x8d   :  { %2214 = vmatprep.subr.bf16.mxu0 %v5490_v20  ;;  %v5558_v20 = vld [vmem:[%s7360_s3 + $0x160] ss:$40 sps:$4 sm:$0xff]  }
  0x90   :  { %2215 = vmatpush1.bf16.msra.mxu0 %v5488_v22  ;;  %v5563_v22 = vld [vmem:[%s7360_s3 + $0x19c] ss:$40 sps:$4 sm:$0xff]  }
  0x91   :  { %2216 = vmatprep.subr.bf16.mxu0 %v5497_v24  ;;  %v5566_v24 = vld [vmem:[%s7360_s3 + $0x1b4] ss:$40 sps:$4 sm:$0xff]  }
  0x92   :  { %1175 = vmatmul.mubr.bf16.gmra.mrb[56].mxu1 %v6146_v60  ;;  %2035 = vmatmul.mubr.bf16.gmra.mrb[56].mxu0 %v6270_v26 }
  0x93   :  { %1184 = vmatprep.mubr.bf16.mxu1 %v7362_v2  ;;  %2044 = vmatprep.mubr.bf16.mxu0 %v7362_v2 }
  0x94   :  { %2217 = vmatpush1.bf16.msra.mxu0 %v5495_v30  ;;  %v4576_v30 = vld [vmem:[%s7359_s2 + $0x50] sm:$0xf] }
  0x95   :  { %2218 = vmatprep.subr.bf16.mxu0 %v5507_v32  ;;  %v4577_v32 = vld [vmem:[%s7359_s2 + $0x5c] sm:$0xf]  ;;  %247 = vst [vmem:[#allocation4 + $0x18] sm:$0xf] %v4576_v30 }
  0x96   :  { %249 = vst [vmem:[#allocation4 + $0x1c] sm:$0xf] %v4577_v32 }
  0x98   :  { %2219 = vmatpush1.bf16.msra.mxu0 %v5505_v36  ;;  %v5733_v36 = vld [vmem:[#allocation3 + $0x10] sm:$0xff]  }
  0x99   :  { %2220 = vmatprep.subr.bf16.mxu0 %v5517_v40  ;;  %v5561_v40 = vld [vmem:[%s7360_s3 + $0x198] ss:$40 sps:$4 sm:$0xff]  }
  0x9a   :  { %1185 = vmatmul.mubr.bf16.gmra.mrb[60].mxu1 %v6170_v9  ;;  %2045 = vmatmul.mubr.bf16.gmra.mrb[60].mxu0 %v6288_v52 }
  0x9b   :  { %1267 = vmatprep.mubr.bf16.mxu1 %v7362_v2  ;;  %2054 = vmatprep.mubr.bf16.mxu0 %v7362_v2 }
  0x9c   :  { %2221 = vmatpush1.bf16.msra.mxu0 %v5515_v62  ;;  %v5564_v62 = vld [vmem:[%s7360_s3 + $0x1b0] ss:$40 sps:$4 sm:$0xff]  }
  0x9d   :  { %2222 = vmatprep.subr.bf16.mxu0 %v5527_v23  ;;  %v5569_v23 = vld [vmem:[%s7360_s3 + $0x1ec] ss:$40 sps:$4 sm:$0xff]  }
  0xa0   :  { %2223 = vmatpush1.bf16.msra.mxu0 %v5525_v28  ;;  %v5572_v28 = vld [vmem:[%s7360_s3 + $0x204] ss:$40 sps:$4 sm:$0xff]  }
  0xa1   :  { %2434 = vmatprep.subr.bf16.mxu0 %v5536_v29  ;;  %v5567_v29 = vld [vmem:[%s7360_s3 + $0x1e8] ss:$40 sps:$4 sm:$0xff]  }
  0xa2   :  { %1268 = vmatmul.mubr.bf16.vlgmr.msra.gmra.mrb[64].mxu1 %v6073_v37  ;;  %2055 = vmatmul.mubr.bf16.gmra.mrb[64].mxu0 %v6306_v31  ;;  %v5501_v37 = vld [vmem:[%s7360_s3 + $0x338] ss:$40 sps:$4 sm:$0xff]  }
  0xa3   :  { %1309 = vmatpush1.bf16.msra.mxu1 %v5491_v33  ;;  %1277 = vmatprep.mubr.bf16.mxu1 %v7362_v2  ;;  %v5570_v33 = vld [vmem:[%s7360_s3 + $0x200] ss:$40 sps:$4 sm:$0xff]  }
  0xa4   :  { %1310 = vmatprep.subr.bf16.mxu1 %v5500_v34  ;;  %2064 = vmatprep.mubr.bf16.mxu0 %v7362_v2  ;;  %v5575_v34 = vld [vmem:[%s7360_s3 + $0x23c] ss:$40 sps:$4 sm:$0xff]  }
  0xa7   :  { %1311 = vmatpush1.bf16.msra.mxu1 %v5498_v35  ;;  %v4578_v35 = vld [vmem:[%s7359_s2 + $0x68] sm:$0xf] }
  0xa8   :  { %1312 = vmatprep.subr.bf16.mxu1 %v5503_v38  ;;  %v4579_v38 = vld [vmem:[%s7359_s2 + $0x74] sm:$0xf]  ;;  %251 = vst [vmem:[#allocation4 + $0x20] sm:$0xf] %v4578_v35  ;;  %v5620_v35 = vld [vmem:[%s7360_s3 + $0x6e4] ss:$40 sps:$4 sm:$0xff]  }
  0xa9   :  { %253 = vst [vmem:[#allocation4 + $0x24] sm:$0xf] %v4579_v38 }
  0xaa   :  { %1278 = vmatmul.mubr.bf16.gmra.mrb[68].mxu1 %v6109_v49  ;;  %2065 = vmatmul.mubr.bf16.gmra.mrb[68].mxu0 %v6324_v39 }
  0xab   :  { %1313 = vmatpush1.bf16.msra.mxu1 %v5501_v37  ;;  %1287 = vmatprep.mubr.bf16.mxu1 %v7362_v2  ;;  %v5578_v37 = vld [vmem:[%s7360_s3 + $0x254] ss:$40 sps:$4 sm:$0xff]  }
  0xac   :  { %1314 = vmatprep.subr.bf16.mxu1 %v5510_v41  ;;  %2074 = vmatprep.mubr.bf16.mxu0 %v7362_v2  ;;  %v5734_v41 = vld [vmem:[#allocation3 + $0x18] sm:$0xff]  }
  0xaf   :  { %1315 = vmatpush1.bf16.msra.mxu1 %v5508_v42  ;;  %v5573_v42 = vld [vmem:[%s7360_s3 + $0x238] ss:$40 sps:$4 sm:$0xff]  }
  0xb0   :  { %1316 = vmatprep.subr.bf16.mxu1 %v5513_v43  ;;  %v5576_v43 = vld [vmem:[%s7360_s3 + $0x250] ss:$40 sps:$4 sm:$0xff]  }
  0xb2   :  { %1288 = vmatmul.mubr.bf16.gmra.mrb[72].mxu1 %v6146_v60  ;;  %2075 = vmatmul.mubr.bf16.gmra.mrb[72].mxu0 %v6342_v44 }
  0xb3   :  { %1317 = vmatpush1.bf16.msra.mxu1 %v5511_v45  ;;  %1297 = vmatprep.mubr.bf16.mxu1 %v7362_v2  ;;  %v5581_v45 = vld [vmem:[%s7360_s3 + $0x1c] ss:$40 sps:$4 sm:$0xff]  }
  0xb4   :  { %1318 = vmatprep.subr.bf16.mxu1 %v5520_v46  ;;  %2084 = vmatprep.mubr.bf16.mxu0 %v7362_v2  ;;  %v5584_v46 = vld [vmem:[%s7360_s3 + $0x504] ss:$40 sps:$4 sm:$0xff]  }
  0xb7   :  { %1319 = vmatpush1.bf16.msra.mxu1 %v5518_v47  ;;  %v4580_v47 = vld [vmem:[%s7359_s2 + $0x80] sm:$0xf] }
  0xb8   :  { %1320 = vmatprep.subr.bf16.mxu1 %v5523_v48  ;;  %v4581_v48 = vld [vmem:[%s7359_s2 + $0x8c] sm:$0xf]  ;;  %255 = vst [vmem:[#allocation4 + $0x28] sm:$0xf] %v4580_v47  ;;  %v5621_v47 = vld [vmem:[%s7360_s3 + $0x248] ss:$40 sps:$4 sm:$0xff]  }
  0xb9   :  { %257 = vst [vmem:[#allocation4 + $0x2c] sm:$0xf] %v4581_v48  ;;  %v5624_v48 = vld [vmem:[%s7360_s3 + $0x730] ss:$40 sps:$4 sm:$0xff]  }
  0xba   :  { %1298 = vmatmul.mubr.bf16.gmra.mrb[76].mxu1 %v6170_v9  ;;  %2085 = vmatmul.mubr.bf16.gmra.mrb[76].mxu0 %v6360_v50 }
  0xbb   :  { %1321 = vmatpush1.bf16.msra.mxu1 %v5521_v51  ;;  %1340 = vmatprep.mubr.bf16.mxu1 %v7362_v2  ;;  %v5735_v51 = vld [vmem:[#allocation3 + $0x20] sm:$0xff]  }
  0xbc   :  { %1322 = vmatprep.subr.bf16.mxu1 %v5530_v53  ;;  %2240 = vmatprep.mubr.bf16.mxu0 %v7362_v2  ;;  %v4582_v53 = vld [vmem:[%s7359_s2 + $0x98] sm:$0xf] }
  0xbd   :  { %259 = vst [vmem:[#allocation4 + $0x30] sm:$0xf] %v4582_v53  ;;  %v5630_v53 = vld [vmem:[%s7360_s3 + $0x50c] ss:$40 sps:$4 sm:$0xff]  }
  0xbf   :  { %1323 = vmatpush1.bf16.msra.mxu1 %v5528_v56  ;;  %v4585_v56 = vld [vmem:[%s7359_s2 + $0xbc] sm:$0xf] }
  0xc0   :  { %2095 = vmatprep.subr.bf16.mxu1 %v5533_v1  ;;  %265 = vst [vmem:[#allocation4 + $0x3c] sm:$0xf] %v4585_v56 }
  0xc2   :  { %1341 = vmatmul.mubr.bf16.vlgmr.msra.gmra.mrb[80].mxu1 %v5731_v3  ;;  %2241 = vmatmul.mubr.bf16.vlgmr.msra.gmra.mrb[0].mxu0 %v6231_v6  ;;  %v5587_v3 = vld [vmem:[%s7360_s3 + $0x6c] ss:$40 sps:$4 sm:$0xff]  }
  0xc3   :  { %2096 = vmatpush1.bf16.msra.mxu1 %v5531_v57  ;;  %2435 = vmatpush1.bf16.msra.mxu0 %v5534_v58 }
  0xc4   :  { %1350 = vmatprep.mubr.bf16.mxu1 %v7362_v2  ;;  %2250 = vmatprep.mubr.bf16.mxu0 %v7362_v2 }
  0xc5   :  { %2097 = vmatprep.subr.bf16.mxu1 %v5539_v59  ;;  %2436 = vmatprep.subr.bf16.mxu0 %v5542_v61 }
  0xc7   :  { %2098 = vmatpush1.bf16.msra.mxu1 %v5537_v5  ;;  %2437 = vmatpush1.bf16.msra.mxu0 %v5540_v7  ;;  %v5590_v5 = vld [vmem:[%s7360_s3 + $0x554] ss:$40 sps:$4 sm:$0xff]   ;;  %v5585_v7 = vld [vmem:[%s7360_s3 + $0x68] ss:$40 sps:$4 sm:$0xff]  }
  0xc8   :  { %2099 = vmatprep.subr.bf16.mxu1 %v5545_v11  ;;  %2438 = vmatprep.subr.bf16.mxu0 %v5548_v13  ;;  %v5588_v11 = vld [vmem:[%s7360_s3 + $0x550] ss:$40 sps:$4 sm:$0xff]   ;;  %v5593_v13 = vld [vmem:[%s7360_s3 + $0xbc] ss:$40 sps:$4 sm:$0xff]  }
  0xca   :  { %1351 = vmatmul.mubr.bf16.gmra.mrb[84].mxu1 %v5732_v4  ;;  %2251 = vmatmul.mubr.bf16.gmra.mrb[4].mxu0 %v6252_v16  ;;  %v5594_v4 = vld [vmem:[%s7360_s3 + $0x5a0] ss:$40 sps:$4 sm:$0xff]  }
  0xcb   :  { %1360 = vmatprep.mubr.bf16.mxu1 %v7362_v2  ;;  %2260 = vmatprep.mubr.bf16.mxu0 %v7362_v2 }
  0xcc   :  { %2100 = vmatpush1.bf16.msra.mxu1 %v5543_v15  ;;  %2439 = vmatpush1.bf16.msra.mxu0 %v5546_v17  ;;  %v5596_v15 = vld [vmem:[%s7360_s3 + $0x5a4] ss:$40 sps:$4 sm:$0xff]  }
  0xcd   :  { %2101 = vmatprep.subr.bf16.mxu1 %v5551_v19  ;;  %2440 = vmatprep.subr.bf16.mxu0 %v5554_v27  ;;  %v5591_v27 = vld [vmem:[%s7360_s3 + $0xb8] ss:$40 sps:$4 sm:$0xff]  }
  0xd0   :  { %2102 = vmatpush1.bf16.msra.mxu1 %v5549_v8  ;;  %2441 = vmatpush1.bf16.msra.mxu0 %v5552_v10  ;;  %v5599_v8 = vld [vmem:[%s7360_s3 + $0x10c] ss:$40 sps:$4 sm:$0xff]  }
  0xd1   :  { %2103 = vmatprep.subr.bf16.mxu1 %v5557_v12  ;;  %2442 = vmatprep.subr.bf16.mxu0 %v5560_v14  ;;  %v5602_v10 = vld [vmem:[%s7360_s3 + $0x5f4] ss:$40 sps:$4 sm:$0xff]   ;;  %v5597_v12 = vld [vmem:[%s7360_s3 + $0x108] ss:$40 sps:$4 sm:$0xff]  }
  0xd2   :  { %1361 = vmatmul.mubr.bf16.gmra.mrb[88].mxu1 %v5733_v36  ;;  %2261 = vmatmul.mubr.bf16.gmra.mrb[8].mxu0 %v6270_v26  ;;  %v5600_v14 = vld [vmem:[%s7360_s3 + $0x5f0] ss:$40 sps:$4 sm:$0xff]  }
  0xd3   :  { %1370 = vmatprep.mubr.bf16.mxu1 %v7362_v2  ;;  %2270 = vmatprep.mubr.bf16.mxu0 %v7362_v2  ;;  %v5603_v36 = vld [vmem:[%s7360_s3 + $0x158] ss:$40 sps:$4 sm:$0xff]  }
  0xd4   :  { %2104 = vmatpush1.bf16.msra.mxu1 %v5555_v18  ;;  %2443 = vmatpush1.bf16.msra.mxu0 %v5558_v20  ;;  %v5605_v20 = vld [vmem:[%s7360_s3 + $0x15c] ss:$40 sps:$4 sm:$0xff]  }
  0xd5   :  { %2105 = vmatprep.subr.bf16.mxu1 %v5563_v22  ;;  %2444 = vmatprep.subr.bf16.mxu0 %v5566_v24  ;;  %v5608_v22 = vld [vmem:[%s7360_s3 + $0x644] ss:$40 sps:$4 sm:$0xff]  }
  0xd8   :  { %2106 = vmatpush1.bf16.msra.mxu1 %v5561_v40  ;;  %2445 = vmatpush1.bf16.msra.mxu0 %v5564_v62  ;;  %v5606_v40 = vld [vmem:[%s7360_s3 + $0x640] ss:$40 sps:$4 sm:$0xff]   ;;  %v5611_v62 = vld [vmem:[%s7360_s3 + $0x1ac] ss:$40 sps:$4 sm:$0xff]  }
  0xd9   :  { %2107 = vmatprep.subr.bf16.mxu1 %v5569_v23  ;;  %2446 = vmatprep.subr.bf16.mxu0 %v5572_v28  ;;  %v5614_v23 = vld [vmem:[%s7360_s3 + $0x694] ss:$40 sps:$4 sm:$0xff]   ;;  %v5609_v28 = vld [vmem:[%s7360_s3 + $0x1a8] ss:$40 sps:$4 sm:$0xff]  }
  0xda   :  { %1371 = vmatmul.mubr.bf16.gmra.mrb[92].mxu1 %v5734_v41  ;;  %2271 = vmatmul.mubr.bf16.gmra.mrb[12].mxu0 %v6288_v52 }
  0xdb   :  { %1380 = vmatprep.mubr.bf16.mxu1 %v7362_v2  ;;  %2280 = vmatprep.mubr.bf16.mxu0 %v7362_v2 }
  0xdc   :  { %2108 = vmatpush1.bf16.msra.mxu1 %v5567_v29  ;;  %2447 = vmatpush1.bf16.msra.mxu0 %v5570_v33  ;;  %v5612_v29 = vld [vmem:[%s7360_s3 + $0x690] ss:$40 sps:$4 sm:$0xff]  }
  0xdd   :  { %2109 = vmatprep.subr.bf16.mxu1 %v5575_v34  ;;  %2448 = vmatprep.subr.bf16.mxu0 %v5578_v37  ;;  %v5617_v34 = vld [vmem:[%s7360_s3 + $0x1fc] ss:$40 sps:$4 sm:$0xff]  }
  0xe0   :  { %2110 = vmatpush1.bf16.msra.mxu1 %v5573_v42  ;;  %2449 = vmatpush1.bf16.msra.mxu0 %v5576_v43  ;;  %v5615_v42 = vld [vmem:[%s7360_s3 + $0x1f8] ss:$40 sps:$4 sm:$0xff]  }
  0xe1   :  { %2321 = vmatprep.subr.bf16.mxu1 %v5581_v45  ;;  %3091 = vmatprep.subr.bf16.mxu0 %v5584_v46  ;;  %v5618_v43 = vld [vmem:[%s7360_s3 + $0x6e0] ss:$40 sps:$4 sm:$0xff]   ;;  %v5623_v45 = vld [vmem:[%s7360_s3 + $0x24c] ss:$40 sps:$4 sm:$0xff]  }
  0xe2   :  { %1381 = vmatmul.mubr.bf16.gmra.mrb[96].mxu1 %v5735_v51  ;;  %2281 = vmatmul.mubr.bf16.gmra.mrb[80].mxu0 %v6306_v31  ;;  %v5626_v46 = vld [vmem:[%s7360_s3 + $0x734] ss:$40 sps:$4 sm:$0xff]  }
  0xe3   :  { %1390 = vmatprep.mubr.bf16.mxu1 %v7362_v2  ;;  %2290 = vmatprep.mubr.bf16.mxu0 %v7362_v2 }
  0xea   :  { %1391 = vmatmul.mubr.bf16.gmra.mrb[100].mxu1 %v6109_v49  ;;  %2291 = vmatmul.mubr.bf16.gmra.mrb[84].mxu0 %v6324_v39 }
  0xeb   :  { %1400 = vmatprep.mubr.bf16.mxu1 %v7362_v2  ;;  %2300 = vmatprep.mubr.bf16.mxu0 %v7362_v2 }
  0xf2   :  { %1401 = vmatmul.mubr.bf16.gmra.mrb[104].mxu1 %v6146_v60  ;;  %2301 = vmatmul.mubr.bf16.gmra.mrb[88].mxu0 %v6342_v44 }
  0xf3   :  { %1410 = vmatprep.mubr.bf16.mxu1 %v7362_v2  ;;  %2310 = vmatprep.mubr.bf16.mxu0 %v7362_v2 }
  0xf5   :  { %v6545_v49 = vpop.f32.mrb[0].mxu1 }
  0xf6   :  { %v6547_v1 = vpop.f32.mrb[1].mxu1 }
  0xf7   :  { %v6549_v57 = vpop.f32.mrb[2].mxu1 }
  0xf8   :  { %v6551_v58 = vpop.f32.mrb[3].mxu1 }
  0xfa   :  { %1411 = vmatmul.mubr.bf16.gmra.mrb[108].mxu1 %v6170_v9  ;;  %2311 = vmatmul.mubr.bf16.gmra.mrb[92].mxu0 %v6360_v50  ;;  %v5582_v9 = vld [vmem:[%s7360_s3 + $0x500] ss:$40 sps:$4 sm:$0xff]  }
  0xfb   :  { %2127 = vmatprep.mubr.bf16.mxu1 %v7362_v2  ;;  %2466 = vmatprep.mubr.bf16.mxu0 %v7362_v2 }
  0xfd   :  { %v6557_v60 = vpop.f32.mrb[4].mxu1 }
  0xfe   :  { %v6559_v59 = vpop.f32.mrb[5].mxu1 }
  0xff   :  { %v6561_v61 = vpop.f32.mrb[6].mxu1 }
 0x100   :  { %v6569_v0 = vpop.f32.mrb[7].mxu1 }
 0x102   :  { %2128 = vmatmul.mubr.bf16.vlgmr.msra.gmra.mrb[32].mxu1 %v6231_v6  ;;  %2467 = vmatmul.mubr.bf16.vlgmr.msra.gmra.mrb[16].mxu0 %v6231_v6 }
 0x103   :  { %2322 = vmatpush1.bf16.msra.mxu1 %v5579_v63  ;;  %3092 = vmatpush1.bf16.msra.mxu0 %v5582_v9 }
 0x104   :  { %2137 = vmatprep.mubr.bf16.mxu1 %v7362_v2  ;;  %2476 = vmatprep.mubr.bf16.mxu0 %v7362_v2 }
 0x105   :  { %v6593_v17 = vpop.f32.mrb[8].mxu1  ;;  %2323 = vmatprep.subr.bf16.mxu1 %v5587_v3  ;;  %3093 = vmatprep.subr.bf16.mxu0 %v5590_v5 }
 0x106   :  { %v6595_v19 = vpop.f32.mrb[9].mxu1 }
 0x107   :  { %v6597_v21 = vpop.f32.mrb[10].mxu1  ;;  %2324 = vmatpush1.bf16.msra.mxu1 %v5585_v7  ;;  %3094 = vmatpush1.bf16.msra.mxu0 %v5588_v11 }
 0x108   :  { %v6599_v25 = vpop.f32.mrb[11].mxu1  ;;  %2325 = vmatprep.subr.bf16.mxu1 %v5593_v13  ;;  %3095 = vmatprep.subr.bf16.mxu0 %v5596_v15 }
 0x10a   :  { %2138 = vmatmul.mubr.bf16.gmra.mrb[36].mxu1 %v6252_v16  ;;  %2477 = vmatmul.mubr.bf16.gmra.mrb[20].mxu0 %v6252_v16 }
 0x10b   :  { %2147 = vmatprep.mubr.bf16.mxu1 %v7362_v2  ;;  %2486 = vmatprep.mubr.bf16.mxu0 %v7362_v2 }
 0x10c   :  { %2326 = vmatpush1.bf16.msra.mxu1 %v5591_v27  ;;  %3096 = vmatpush1.bf16.msra.mxu0 %v5594_v4  ;;  %v6741_v4 = vld [vmem:[#allocation4] sm:$0xff]  }
 0x10d   :  { %v6623_v18 = vpop.f32.mrb[12].mxu1  ;;  %2327 = vmatprep.subr.bf16.mxu1 %v5599_v8  ;;  %3097 = vmatprep.subr.bf16.mxu0 %v5602_v10  ;;  %v5628_v8 = vld [vmem:[%s7360_s3 + $0x508] ss:$40 sps:$4 sm:$0xff]  }
 0x10e   :  { %v6631_v24 = vpop.f32.mrb[13].mxu1  ;;  %v5631_v10 = vld [vmem:[%s7360_s3 + $0x510] ss:$40 sps:$4 sm:$0xff]  }
 0x10f   :  { %v6633_v30 = vpop.f32.mrb[14].mxu1 }
 0x110   :  { %v6635_v32 = vpop.f32.mrb[15].mxu1  ;;  %2328 = vmatpush1.bf16.msra.mxu1 %v5597_v12  ;;  %3098 = vmatpush1.bf16.msra.mxu0 %v5600_v14  ;;  %v5637_v12 = vld [vmem:[%s7360_s3 + $0x55c] ss:$40 sps:$4 sm:$0xff]  }
 0x111   :  { %2329 = vmatprep.subr.bf16.mxu1 %v5605_v20  ;;  %3099 = vmatprep.subr.bf16.mxu0 %v5608_v22  ;;  %v5640_v14 = vld [vmem:[%s7360_s3 + $0x564] ss:$40 sps:$4 sm:$0xff]   ;;  %v5635_v20 = vld [vmem:[%s7360_s3 + $0x558] ss:$40 sps:$4 sm:$0xff]  }
 0x112   :  { %2148 = vmatmul.mubr.bf16.gmra.mrb[40].mxu1 %v6270_v26  ;;  %2487 = vmatmul.mubr.bf16.gmra.mrb[24].mxu0 %v6270_v26  ;;  %v5638_v22 = vld [vmem:[%s7360_s3 + $0x560] ss:$40 sps:$4 sm:$0xff]  }
 0x113   :  { %2157 = vmatprep.mubr.bf16.mxu1 %v7362_v2  ;;  %2496 = vmatprep.mubr.bf16.mxu0 %v7362_v2 }
 0x114   :  { %2330 = vmatpush1.bf16.msra.mxu1 %v5603_v36  ;;  %3100 = vmatpush1.bf16.msra.mxu0 %v5606_v40  ;;  %v5647_v36 = vld [vmem:[%s7360_s3 + $0x5b4] ss:$40 sps:$4 sm:$0xff]   ;;  %v6771_v40 = vld [vmem:[#allocation4 + $0x8] sm:$0xff]  }
 0x115   :  { %v6659_v33 = vpop.f32.mrb[16].mxu1  ;;  %2331 = vmatprep.subr.bf16.mxu1 %v5611_v62  ;;  %3101 = vmatprep.subr.bf16.mxu0 %v5614_v23  ;;  %v5642_v62 = vld [vmem:[%s7360_s3 + $0x5a8] ss:$40 sps:$4 sm:$0xff]  }
 0x116   :  { %v6667_v38 = vpop.f32.mrb[17].mxu1  ;;  %v5645_v23 = vld [vmem:[%s7360_s3 + $0x5b0] ss:$40 sps:$4 sm:$0xff]  }
 0x117   :  { %v6669_v37 = vpop.f32.mrb[18].mxu1 }
 0x118   :  { %v6671_v41 = vpop.f32.mrb[19].mxu1  ;;  %2332 = vmatpush1.bf16.msra.mxu1 %v5609_v28  ;;  %3102 = vmatpush1.bf16.msra.mxu0 %v5612_v29  ;;  %v5651_v28 = vld [vmem:[%s7360_s3 + $0x5fc] ss:$40 sps:$4 sm:$0xff]  }
 0x119   :  { %2333 = vmatprep.subr.bf16.mxu1 %v5617_v34  ;;  %3103 = vmatprep.subr.bf16.mxu0 %v5620_v35  ;;  %v5654_v29 = vld [vmem:[%s7360_s3 + $0x604] ss:$40 sps:$4 sm:$0xff]   ;;  %v5649_v34 = vld [vmem:[%s7360_s3 + $0x5f8] ss:$40 sps:$4 sm:$0xff]  }
 0x11a   :  { %2158 = vmatmul.mubr.bf16.gmra.mrb[44].mxu1 %v6288_v52  ;;  %2497 = vmatmul.mubr.bf16.gmra.mrb[28].mxu0 %v6288_v52  ;;  %v5652_v35 = vld [vmem:[%s7360_s3 + $0x600] ss:$40 sps:$4 sm:$0xff]  }
 0x11b   :  { %2167 = vmatprep.mubr.bf16.mxu1 %v7362_v2  ;;  %2506 = vmatprep.mubr.bf16.mxu0 %v7362_v2 }
 0x11c   :  { %2334 = vmatpush1.bf16.msra.mxu1 %v5615_v42  ;;  %3104 = vmatpush1.bf16.msra.mxu0 %v5618_v43  ;;  %v5661_v42 = vld [vmem:[%s7360_s3 + $0x654] ss:$40 sps:$4 sm:$0xff]  }
 0x11d   :  { %v6695_v51 = vpop.f32.mrb[20].mxu1  ;;  %2335 = vmatprep.subr.bf16.mxu1 %v5623_v45  ;;  %3105 = vmatprep.subr.bf16.mxu0 %v5626_v46  ;;  %v6801_v43 = vld [vmem:[#allocation4 + $0x10] sm:$0xff]  }
 0x11e   :  { %v6703_v55 = vpop.f32.mrb[21].mxu1  ;;  %v5656_v45 = vld [vmem:[%s7360_s3 + $0x648] ss:$40 sps:$4 sm:$0xff]  }
 0x11f   :  { %v6705_v56 = vpop.f32.mrb[22].mxu1  ;;  %v5659_v46 = vld [vmem:[%s7360_s3 + $0x650] ss:$40 sps:$4 sm:$0xff]  }
 0x120   :  { %v6707_v63 = vpop.f32.mrb[23].mxu1  ;;  %2336 = vmatpush1.bf16.msra.mxu1 %v5621_v47  ;;  %3106 = vmatpush1.bf16.msra.mxu0 %v5624_v48  ;;  %v5665_v47 = vld [vmem:[%s7360_s3 + $0x69c] ss:$40 sps:$4 sm:$0xff]  }
 0x121   :  { %3204 = vmatprep.subr.bf16.mxu1 %v5630_v53  ;;  %3317 = vmatprep.subr.bf16.mxu0 %v5633_v54  ;;  %v5668_v48 = vld [vmem:[%s7360_s3 + $0x6a4] ss:$40 sps:$4 sm:$0xff]   ;;  %v5663_v53 = vld [vmem:[%s7360_s3 + $0x698] ss:$40 sps:$4 sm:$0xff]  }
 0x122   :  { %2168 = vmatmul.mubr.bf16.gmra.mrb[48].mxu1 %v6306_v31  ;;  %2507 = vmatmul.mubr.bf16.gmra.mrb[32].mxu0 %v6306_v31  ;;  %v5666_v54 = vld [vmem:[%s7360_s3 + $0x6a0] ss:$40 sps:$4 sm:$0xff]  }
 0x123   :  { %2177 = vmatprep.mubr.bf16.mxu1 %v7362_v2  ;;  %2516 = vmatprep.mubr.bf16.mxu0 %v7362_v2 }
 0x125   :  { %v6713_v9 = vpop.f32.mrb[24].mxu1 }
 0x126   :  { %v6715_v3 = vpop.f32.mrb[25].mxu1 }
 0x127   :  { %v6717_v5 = vpop.f32.mrb[26].mxu1 }
 0x128   :  { %v6719_v7 = vpop.f32.mrb[27].mxu1 }
 0x12a   :  { %2178 = vmatmul.mubr.bf16.gmra.mrb[52].mxu1 %v6324_v39  ;;  %2517 = vmatmul.mubr.bf16.gmra.mrb[36].mxu0 %v6324_v39 }
 0x12b   :  { %2187 = vmatprep.mubr.bf16.mxu1 %v7362_v2  ;;  %2526 = vmatprep.mubr.bf16.mxu0 %v7362_v2 }
 0x12d   :  { %v6725_v11 = vpop.f32.mrb[28].mxu1 }
 0x12e   :  { %v6727_v13 = vpop.f32.mrb[29].mxu1 }
 0x12f   :  { %v6729_v15 = vpop.f32.mrb[30].mxu1 }
 0x130   :  { %v6731_v27 = vpop.f32.mrb[31].mxu1 }
 0x132   :  { %2188 = vmatmul.mubr.bf16.gmra.mrb[56].mxu1 %v6342_v44  ;;  %2527 = vmatmul.mubr.bf16.gmra.mrb[40].mxu0 %v6342_v44 }
 0x133   :  { %2197 = vmatprep.mubr.bf16.mxu1 %v7362_v2  ;;  %2536 = vmatprep.mubr.bf16.mxu0 %v7362_v2 }
 0x13a   :  { %2198 = vmatmul.mubr.bf16.gmra.mrb[60].mxu1 %v6360_v50  ;;  %2537 = vmatmul.mubr.bf16.gmra.mrb[44].mxu0 %v6360_v50 }
 0x13b   :  { %2353 = vmatprep.mubr.bf16.mxu1 %v7362_v2  ;;  %3123 = vmatprep.mubr.bf16.mxu0 %v7362_v2 }
 0x142   :  { %2354 = vmatmul.mubr.bf16.vlgmr.msra.gmra.mrb[80].mxu1 %v6231_v6  ;;  %3124 = vmatmul.mubr.bf16.vlgmr.msra.gmra.mrb[48].mxu0 %v6741_v4  ;;  %v5644_v6 = vld [vmem:[%s7360_s3 + $0x5ac] ss:$40 sps:$4 sm:$0xff]  }
 0x143   :  { %3205 = vmatpush1.bf16.msra.mxu1 %v5628_v8  ;;  %3318 = vmatpush1.bf16.msra.mxu0 %v5631_v10  ;;  %v5675_v8 = vld [vmem:[%s7360_s3 + $0x6f4] ss:$40 sps:$4 sm:$0xff]  }
 0x144   :  { %2363 = vmatprep.mubr.bf16.mxu1 %v7362_v2  ;;  %3133 = vmatprep.mubr.bf16.mxu0 %v7362_v2  ;;  %v6831_v10 = vld [vmem:[#allocation4 + $0x18] sm:$0xff]  }
 0x145   :  { %3206 = vmatprep.subr.bf16.mxu1 %v5637_v12  ;;  %3319 = vmatprep.subr.bf16.mxu0 %v5640_v14  ;;  %v5670_v12 = vld [vmem:[%s7360_s3 + $0x6e8] ss:$40 sps:$4 sm:$0xff]  }
 0x146   :  { %v5673_v14 = vld [vmem:[%s7360_s3 + $0x6f0] ss:$40 sps:$4 sm:$0xff]  }
 0x147   :  { %3207 = vmatpush1.bf16.msra.mxu1 %v5635_v20  ;;  %3320 = vmatpush1.bf16.msra.mxu0 %v5638_v22  ;;  %v5679_v20 = vld [vmem:[%s7360_s3 + $0x73c] ss:$40 sps:$4 sm:$0xff]  }
 0x148   :  { %3208 = vmatprep.subr.bf16.mxu1 %v5644_v6  ;;  %3321 = vmatprep.subr.bf16.mxu0 %v5647_v36  ;;  %v5682_v22 = vld [vmem:[%s7360_s3 + $0x744] ss:$40 sps:$4 sm:$0xff]   ;;  %v5677_v6 = vld [vmem:[%s7360_s3 + $0x738] ss:$40 sps:$4 sm:$0xff]  }
 0x149   :  { %v5680_v36 = vld [vmem:[%s7360_s3 + $0x740] ss:$40 sps:$4 sm:$0xff]  }
 0x14a   :  { %2364 = vmatmul.mubr.bf16.gmra.mrb[84].mxu1 %v6252_v16  ;;  %3134 = vmatmul.mubr.bf16.gmra.mrb[52].mxu0 %v6771_v40  ;;  %v5658_v16 = vld [vmem:[%s7360_s3 + $0x64c] ss:$40 sps:$4 sm:$0xff]  }
 0x14b   :  { %2373 = vmatprep.mubr.bf16.mxu1 %v7362_v2  ;;  %3143 = vmatprep.mubr.bf16.mxu0 %v7362_v2 }
 0x14c   :  { %3209 = vmatpush1.bf16.msra.mxu1 %v5642_v62  ;;  %3322 = vmatpush1.bf16.msra.mxu0 %v5645_v23  ;;  %v5688_v62 = vld [vmem:[%s7360_s3 + $0x524] ss:$40 sps:$4 sm:$0xff]  }
 0x14d   :  { %3210 = vmatprep.subr.bf16.mxu1 %v5651_v28  ;;  %3323 = vmatprep.subr.bf16.mxu0 %v5654_v29  ;;  %v6861_v23 = vld [vmem:[#allocation4 + $0x20] sm:$0xff]   ;;  %v6867_v28 = vld [vmem:[#allocation4 + $0x28] sm:$0xff]   ;;  %v6873_v29 = vld [vmem:[#allocation4 + $0x30] sm:$0xff]  }
 0x150   :  { %3211 = vmatpush1.bf16.msra.mxu1 %v5649_v34  ;;  %3324 = vmatpush1.bf16.msra.mxu0 %v5652_v35 }
 0x151   :  { %3212 = vmatprep.subr.bf16.mxu1 %v5658_v16  ;;  %3325 = vmatprep.subr.bf16.mxu0 %v5661_v42 }
 0x152   :  { %2374 = vmatmul.mubr.bf16.gmra.mrb[88].mxu1 %v6270_v26  ;;  %3144 = vmatmul.mubr.bf16.gmra.mrb[56].mxu0 %v6801_v43  ;;  %v5672_v26 = vld [vmem:[%s7360_s3 + $0x6ec] ss:$40 sps:$4 sm:$0xff]  }
 0x153   :  { %2383 = vmatprep.mubr.bf16.mxu1 %v7362_v2  ;;  %3153 = vmatprep.mubr.bf16.mxu0 %v7362_v2 }
 0x154   :  { %3213 = vmatpush1.bf16.msra.mxu1 %v5656_v45  ;;  %3326 = vmatpush1.bf16.msra.mxu0 %v5659_v46  ;;  %v5683_v46 = vld [vmem:[%s7360_s3 + $0x518] ss:$40 sps:$4 sm:$0xff]  }
 0x155   :  { %3214 = vmatprep.subr.bf16.mxu1 %v5665_v47  ;;  %3327 = vmatprep.subr.bf16.mxu0 %v5668_v48  ;;  %v5691_v48 = vld [vmem:[%s7360_s3 + $0x56c] ss:$40 sps:$4 sm:$0xff]  }
 0x158   :  { %3215 = vmatpush1.bf16.msra.mxu1 %v5663_v53  ;;  %3328 = vmatpush1.bf16.msra.mxu0 %v5666_v54  ;;  %v5694_v53 = vld [vmem:[%s7360_s3 + $0x574] ss:$40 sps:$4 sm:$0xff]   ;;  %v5689_v54 = vld [vmem:[%s7360_s3 + $0x568] ss:$40 sps:$4 sm:$0xff]  }
 0x159   :  { %3216 = vmatprep.subr.bf16.mxu1 %v5672_v26  ;;  %3329 = vmatprep.subr.bf16.mxu0 %v5675_v8  ;;  %v5692_v26 = vld [vmem:[%s7360_s3 + $0x570] ss:$40 sps:$4 sm:$0xff]   ;;  %v5697_v8 = vld [vmem:[%s7360_s3 + $0x5bc] ss:$40 sps:$4 sm:$0xff]  }
 0x15a   :  { %2384 = vmatmul.mubr.bf16.gmra.mrb[92].mxu1 %v6288_v52  ;;  %3154 = vmatmul.mubr.bf16.gmra.mrb[60].mxu0 %v6831_v10  ;;  %v5685_v52 = vld [vmem:[%s7360_s3 + $0x51c] ss:$40 sps:$4 sm:$0xff]  }
 0x15b   :  { %2393 = vmatprep.mubr.bf16.mxu1 %v7362_v2  ;;  %3163 = vmatprep.mubr.bf16.mxu0 %v7362_v2 }
 0x15c   :  { %3217 = vmatpush1.bf16.msra.mxu1 %v5670_v12  ;;  %3330 = vmatpush1.bf16.msra.mxu0 %v5673_v14  ;;  %v5700_v12 = vld [vmem:[%s7360_s3 + $0x5c4] ss:$40 sps:$4 sm:$0xff]  }
 0x15d   :  { %3218 = vmatprep.subr.bf16.mxu1 %v5679_v20  ;;  %3331 = vmatprep.subr.bf16.mxu0 %v5682_v22 }
 0x160   :  { %3219 = vmatpush1.bf16.msra.mxu1 %v5677_v6  ;;  %3332 = vmatpush1.bf16.msra.mxu0 %v5680_v36  ;;  %v5695_v36 = vld [vmem:[%s7360_s3 + $0x5b8] ss:$40 sps:$4 sm:$0xff]  }
 0x161   :  { %3430 = vmatprep.subr.bf16.mxu1 %v5685_v52  ;;  %3543 = vmatprep.subr.bf16.mxu0 %v5688_v62  ;;  %v5698_v52 = vld [vmem:[%s7360_s3 + $0x5c0] ss:$40 sps:$4 sm:$0xff]   ;;  %v5703_v62 = vld [vmem:[%s7360_s3 + $0x60c] ss:$40 sps:$4 sm:$0xff]  }
 0x162   :  { %2394 = vmatmul.mubr.bf16.gmra.mrb[96].mxu1 %v6306_v31  ;;  %3164 = vmatmul.mubr.bf16.gmra.mrb[64].mxu0 %v6861_v23 }
 0x163   :  { %2403 = vmatprep.mubr.bf16.mxu1 %v7362_v2  ;;  %3173 = vmatprep.mubr.bf16.mxu0 %v7362_v2 }
 0x16a   :  { %2404 = vmatmul.mubr.bf16.gmra.mrb[100].mxu1 %v6324_v39  ;;  %3174 = vmatmul.mubr.bf16.gmra.mrb[68].mxu0 %v6867_v28  ;;  %v6883_v39 = vld [vmem:[#allocation4 + $0x38] sm:$0xff]  }
 0x16b   :  { %2413 = vmatprep.mubr.bf16.mxu1 %v7362_v2  ;;  %3183 = vmatprep.mubr.bf16.mxu0 %v7362_v2 }
 0x172   :  { %2414 = vmatmul.mubr.bf16.gmra.mrb[104].mxu1 %v6342_v44  ;;  %3184 = vmatmul.mubr.bf16.gmra.mrb[72].mxu0 %v6873_v29 }
 0x173   :  { %2423 = vmatprep.mubr.bf16.mxu1 %v7362_v2  ;;  %3193 = vmatprep.mubr.bf16.mxu0 %v7362_v2 }
 0x175   :  { %v6879_v31 = vpop.f32.mrb[64].mxu1 }
 0x176   :  { %v6881_v34 = vpop.f32.mrb[65].mxu1 }
 0x177   :  { %v6885_v35 = vpop.f32.mrb[66].mxu1 }
 0x178   :  { %v6887_v16 = vpop.f32.mrb[67].mxu1 }
 0x17a   :  { %2424 = vmatmul.mubr.bf16.gmra.mrb[108].mxu1 %v6360_v50  ;;  %3194 = vmatmul.mubr.bf16.gmra.mrb[76].mxu0 %v6883_v39  ;;  %v5686_v50 = vld [vmem:[%s7360_s3 + $0x520] ss:$40 sps:$4 sm:$0xff]  }
 0x17b   :  { %3236 = vmatprep.mubr.bf16.mxu1 %v7362_v2  ;;  %3349 = vmatprep.mubr.bf16.mxu0 %v7362_v2 }
 0x17d   :  { %v6893_v44 = vpop.f32.mrb[68].mxu1 }
 0x17e   :  { %v6895_v42 = vpop.f32.mrb[69].mxu1 }
 0x17f   :  { %v6897_v45 = vpop.f32.mrb[70].mxu1 }
 0x180   :  { %v6905_v47 = vpop.f32.mrb[71].mxu1 }
 0x182   :  { %3237 = vmatmul.mubr.bf16.vlgmr.msra.gmra.mrb[32].mxu1 %v6741_v4  ;;  %3350 = vmatmul.mubr.bf16.vlgmr.msra.gmra.mrb[0].mxu0 %v6741_v4 }
 0x183   :  { %3431 = vmatpush1.bf16.msra.mxu1 %v5683_v46  ;;  %3544 = vmatpush1.bf16.msra.mxu0 %v5686_v50  ;;  %v5706_v46 = vld [vmem:[%s7360_s3 + $0x614] ss:$40 sps:$4 sm:$0xff]   ;;  %v5701_v50 = vld [vmem:[%s7360_s3 + $0x608] ss:$40 sps:$4 sm:$0xff]  }
 0x184   :  { %3246 = vmatprep.mubr.bf16.mxu1 %v7362_v2  ;;  %3359 = vmatprep.mubr.bf16.mxu0 %v7362_v2 }
 0x185   :  { %v6929_v14 = vpop.f32.mrb[72].mxu1  ;;  %3432 = vmatprep.subr.bf16.mxu1 %v5691_v48  ;;  %3545 = vmatprep.subr.bf16.mxu0 %v5694_v53  ;;  %v5704_v48 = vld [vmem:[%s7360_s3 + $0x610] ss:$40 sps:$4 sm:$0xff]  }
 0x186   :  { %v6931_v20 = vpop.f32.mrb[73].mxu1 }
 0x187   :  { %v6933_v22 = vpop.f32.mrb[74].mxu1  ;;  %3433 = vmatpush1.bf16.msra.mxu1 %v5689_v54  ;;  %3546 = vmatpush1.bf16.msra.mxu0 %v5692_v26  ;;  %v5709_v54 = vld [vmem:[%s7360_s3 + $0x65c] ss:$40 sps:$4 sm:$0xff]  }
 0x188   :  { %v6935_v6 = vpop.f32.mrb[75].mxu1  ;;  %3434 = vmatprep.subr.bf16.mxu1 %v5697_v8  ;;  %3547 = vmatprep.subr.bf16.mxu0 %v5700_v12  ;;  %v5712_v26 = vld [vmem:[%s7360_s3 + $0x664] ss:$40 sps:$4 sm:$0xff]  }
 0x18a   :  { %3247 = vmatmul.mubr.bf16.gmra.mrb[36].mxu1 %v6771_v40  ;;  %3360 = vmatmul.mubr.bf16.gmra.mrb[4].mxu0 %v6771_v40 }
 0x18b   :  { %3256 = vmatprep.mubr.bf16.mxu1 %v7362_v2  ;;  %3369 = vmatprep.mubr.bf16.mxu0 %v7362_v2  ;;  %v5718_v2 = vld [vmem:[%s7360_s3 + $0x6b4] ss:$40 sps:$4 sm:$0xff]  }
 0x18c   :  { %3435 = vmatpush1.bf16.msra.mxu1 %v5695_v36  ;;  %3548 = vmatpush1.bf16.msra.mxu0 %v5698_v52  ;;  %v5707_v52 = vld [vmem:[%s7360_s3 + $0x658] ss:$40 sps:$4 sm:$0xff]  }
 0x18d   :  { %v6959_v53 = vpop.f32.mrb[76].mxu1  ;;  %3436 = vmatprep.subr.bf16.mxu1 %v5703_v62  ;;  %3549 = vmatprep.subr.bf16.mxu0 %v5706_v46  ;;  %v5710_v62 = vld [vmem:[%s7360_s3 + $0x660] ss:$40 sps:$4 sm:$0xff]   ;;  %v5715_v46 = vld [vmem:[%s7360_s3 + $0x6ac] ss:$40 sps:$4 sm:$0xff]  }
 0x18e   :  { %v6967_v8 = vpop.f32.mrb[77].mxu1 }
 0x18f   :  { %v6969_v12 = vpop.f32.mrb[78].mxu1 }
 0x190   :  { %v6971_v36 = vpop.f32.mrb[79].mxu1  ;;  %3437 = vmatpush1.bf16.msra.mxu1 %v5701_v50  ;;  %3550 = vmatpush1.bf16.msra.mxu0 %v5704_v48  ;;  %v7365_v50 = vmov 0   ;;  %v5713_v48 = vld [vmem:[%s7360_s3 + $0x6a8] ss:$40 sps:$4 sm:$0xff]  }
 0x191   :  { %7364 = vst [vmem:[#allocation5_spill] sm:$0xff] %v6971_v36  ;;  %3438 = vmatprep.subr.bf16.mxu1 %v5709_v54  ;;  %3551 = vmatprep.subr.bf16.mxu0 %v5712_v26  ;;  %v5716_v54 = vld [vmem:[%s7360_s3 + $0x6b0] ss:$40 sps:$4 sm:$0xff]   ;;  %v5721_v26 = vld [vmem:[%s7360_s3 + $0x6fc] ss:$40 sps:$4 sm:$0xff]  }
 0x192   :  { %3257 = vmatmul.mubr.bf16.gmra.mrb[40].mxu1 %v6801_v43  ;;  %3370 = vmatmul.mubr.bf16.gmra.mrb[8].mxu0 %v6801_v43  ;;  %v5724_v36 = vld [vmem:[%s7360_s3 + $0x704] ss:$40 sps:$4 sm:$0xff]  }
 0x193   :  { %3266 = vmatprep.mubr.bf16.mxu1 %v7365_v50  ;;  %3379 = vmatprep.mubr.bf16.mxu0 %v7365_v50 }
 0x194   :  { %3439 = vmatpush1.bf16.msra.mxu1 %v5707_v52  ;;  %3552 = vmatpush1.bf16.msra.mxu0 %v5710_v62  ;;  %v5719_v52 = vld [vmem:[%s7360_s3 + $0x6f8] ss:$40 sps:$4 sm:$0xff]  }
 0x195   :  { %3440 = vmatprep.subr.bf16.mxu1 %v5715_v46  ;;  %3553 = vmatprep.subr.bf16.mxu0 %v5718_v2  ;;  %v5722_v62 = vld [vmem:[%s7360_s3 + $0x700] ss:$40 sps:$4 sm:$0xff]   ;;  %v5727_v2 = vld [vmem:[%s7360_s3 + $0x74c] ss:$40 sps:$4 sm:$0xff]  }
 0x196   :  { %v5730_v46 = vld [vmem:[%s7360_s3 + $0x754] ss:$40 sps:$4 sm:$0xff]  }
 0x198   :  { %3441 = vmatpush1.bf16.msra.mxu1 %v5713_v48  ;;  %3554 = vmatpush1.bf16.msra.mxu0 %v5716_v54  ;;  %v5728_v48 = vld [vmem:[%s7360_s3 + $0x750] ss:$40 sps:$4 sm:$0xff]  }
 0x199   :  { %3442 = vmatprep.subr.bf16.mxu1 %v5721_v26  ;;  %3555 = vmatprep.subr.bf16.mxu0 %v5724_v36  ;;  %v5725_v36 = vld [vmem:[%s7360_s3 + $0x748] ss:$40 sps:$4 sm:$0xff]  }
 0x19a   :  { %3267 = vmatmul.mubr.bf16.gmra.mrb[44].mxu1 %v6831_v10  ;;  %3380 = vmatmul.mubr.bf16.gmra.mrb[12].mxu0 %v6831_v10 }
 0x19b   :  { %3276 = vmatprep.mubr.bf16.mxu1 %v7365_v50  ;;  %3389 = vmatprep.mubr.bf16.mxu0 %v7365_v50 }
 0x19c   :  { %3443 = vmatpush1.bf16.msra.mxu1 %v5719_v52  ;;  %3556 = vmatpush1.bf16.msra.mxu0 %v5722_v62 }
 0x19d   :  { %3444 = vmatprep.subr.bf16.mxu1 %v5727_v2  ;;  %3557 = vmatprep.subr.bf16.mxu0 %v5730_v46 }
 0x1a0   :  { %3445 = vmatpush1.bf16.msra.mxu1 %v5725_v36  ;;  %3558 = vmatpush1.bf16.msra.mxu0 %v5728_v48 }
 0x1a2   :  { %3277 = vmatmul.mubr.bf16.gmra.mrb[48].mxu1 %v6861_v23  ;;  %3390 = vmatmul.mubr.bf16.gmra.mrb[80].mxu0 %v6861_v23 }
 0x1a3   :  { %3286 = vmatprep.mubr.bf16.mxu1 %v7365_v50  ;;  %3399 = vmatprep.mubr.bf16.mxu0 %v7365_v50 }
 0x1aa   :  { %3287 = vmatmul.mubr.bf16.gmra.mrb[52].mxu1 %v6867_v28  ;;  %3400 = vmatmul.mubr.bf16.gmra.mrb[84].mxu0 %v6867_v28 }
 0x1ab   :  { %3296 = vmatprep.mubr.bf16.mxu1 %v7365_v50  ;;  %3409 = vmatprep.mubr.bf16.mxu0 %v7365_v50 }
 0x1b2   :  { %3297 = vmatmul.mubr.bf16.gmra.mrb[56].mxu1 %v6873_v29  ;;  %3410 = vmatmul.mubr.bf16.gmra.mrb[88].mxu0 %v6873_v29 }
 0x1b3   :  { %3306 = vmatprep.mubr.bf16.mxu1 %v7365_v50  ;;  %3419 = vmatprep.mubr.bf16.mxu0 %v7365_v50 }
 0x1ba   :  { %3307 = vmatmul.mubr.bf16.gmra.mrb[60].mxu1 %v6883_v39  ;;  %3420 = vmatmul.mubr.bf16.gmra.mrb[92].mxu0 %v6883_v39 }
 0x1bb   :  { %3462 = vmatprep.mubr.bf16.mxu1 %v7365_v50  ;;  %3575 = vmatprep.mubr.bf16.mxu0 %v7365_v50 }
 0x1c2   :  { %3463 = vmatmul.mubr.bf16.vlgmr.msra.gmra.mrb[80].mxu1 %v6741_v4  ;;  %3576 = vmatmul.mubr.bf16.vlgmr.msra.gmra.mrb[16].mxu0 %v6741_v4 }
 0x1c3   :  { %3472 = vmatprep.mubr.bf16.mxu1 %v7365_v50  ;;  %3585 = vmatprep.mubr.bf16.mxu0 %v7365_v50 }
 0x1ca   :  { %3473 = vmatmul.mubr.bf16.gmra.mrb[84].mxu1 %v6771_v40  ;;  %3586 = vmatmul.mubr.bf16.gmra.mrb[20].mxu0 %v6771_v40 }
 0x1cb   :  { %3482 = vmatprep.mubr.bf16.mxu1 %v7365_v50  ;;  %3595 = vmatprep.mubr.bf16.mxu0 %v7365_v50 }
 0x1d2   :  { %3483 = vmatmul.mubr.bf16.gmra.mrb[88].mxu1 %v6801_v43  ;;  %3596 = vmatmul.mubr.bf16.gmra.mrb[24].mxu0 %v6801_v43 }
 0x1d3   :  { %3492 = vmatprep.mubr.bf16.mxu1 %v7365_v50  ;;  %3605 = vmatprep.mubr.bf16.mxu0 %v7365_v50 }
 0x1da   :  { %3493 = vmatmul.mubr.bf16.gmra.mrb[92].mxu1 %v6831_v10  ;;  %3606 = vmatmul.mubr.bf16.gmra.mrb[28].mxu0 %v6831_v10 }
 0x1db   :  { %3502 = vmatprep.mubr.bf16.mxu1 %v7365_v50  ;;  %3615 = vmatprep.mubr.bf16.mxu0 %v7365_v50 }
 0x1e2   :  { %3503 = vmatmul.mubr.bf16.gmra.mrb[96].mxu1 %v6861_v23  ;;  %3616 = vmatmul.mubr.bf16.gmra.mrb[32].mxu0 %v6861_v23 }
 0x1e3   :  { %3512 = vmatprep.mubr.bf16.mxu1 %v7365_v50  ;;  %3625 = vmatprep.mubr.bf16.mxu0 %v7365_v50 }
 0x1ea   :  { %3513 = vmatmul.mubr.bf16.gmra.mrb[100].mxu1 %v6867_v28  ;;  %3626 = vmatmul.mubr.bf16.gmra.mrb[36].mxu0 %v6867_v28 }
 0x1eb   :  { %3522 = vmatprep.mubr.bf16.mxu1 %v7365_v50  ;;  %3635 = vmatprep.mubr.bf16.mxu0 %v7365_v50 }
 0x1f2   :  { %3523 = vmatmul.mubr.bf16.gmra.mrb[104].mxu1 %v6873_v29  ;;  %3636 = vmatmul.mubr.bf16.gmra.mrb[40].mxu0 %v6873_v29 }
 0x1f3   :  { %3532 = vmatprep.mubr.bf16.mxu1 %v7365_v50  ;;  %3645 = vmatprep.mubr.bf16.mxu0 %v7365_v50 }
 0x1fa   :  { %3533 = vmatmul.mubr.bf16.gmra.mrb[108].mxu1 %v6883_v39  ;;  %3646 = vmatmul.mubr.bf16.gmra.mrb[44].mxu0 %v6883_v39 }
 0x215   :  { %v3125_v4 = vpop.f32.mrb[48].mxu0 }
 0x216   :  { %v5026_v40 = vadd.f32 %v3125_v4, %v6545_v49  ;;  %v3127_v43 = vpop.f32.mrb[49].mxu0 }
 0x217   :  { %v5027_v10 = vadd.f32 %v3127_v43, %v6547_v1  ;;  %v3129_v23 = vpop.f32.mrb[50].mxu0 }
 0x218   :  { %v3816_v28 = vmax.f32 %v5026_v40, 0.0  ;;  %v5028_v54 = vadd.f32 %v3129_v23, %v6549_v57  ;;  %v3131_v26 = vpop.f32.mrb[51].mxu0 }
 0x219   :  { %v3817_v29 = vmax.f32 %v5027_v10, 0.0  ;;  %v5029_v52 = vadd.f32 %v3131_v26, %v6551_v58 }
 0x21a   :  { %v3826_v62 = vmax.f32 %v5028_v54, 0.0 }
 0x21b   :  { %v4930_v50 = vpack.c.bf16 %v3817_v29, %v3816_v28  ;;  %v3827_v2 = vmax.f32 %v5029_v52, 0.0 }
 0x21d   :  { %4456 = vst [vmem:[%s7361_s4] sm:$0xff] %v4930_v50  ;;  %v4935_v39 = vpack.c.bf16 %v3827_v2, %v3826_v62  ;;  %v3135_v49 = vpop.f32.mrb[52].mxu0 }
 0x21e   :  { %v5030_v46 = vadd.f32 %v3135_v49, %v6557_v60  ;;  %v3137_v1 = vpop.f32.mrb[53].mxu0 }
 0x21f   :  { %4461 = vst [vmem:[%s7361_s4 + $0x28] sm:$0xff] %v4935_v39  ;;  %v5031_v57 = vadd.f32 %v3137_v1, %v6559_v59  ;;  %v3139_v36 = vpop.f32.mrb[54].mxu0 }
 0x220   :  { %v3836_v58 = vmax.f32 %v5030_v46, 0.0  ;;  %v5032_v48 = vadd.f32 %v3139_v36, %v6561_v61  ;;  %v3141_v4 = vpop.f32.mrb[55].mxu0 }
 0x221   :  { %v3837_v40 = vmax.f32 %v5031_v57, 0.0  ;;  %v5033_v43 = vadd.f32 %v3141_v4, %v6569_v0 }
 0x222   :  { %v3846_v10 = vmax.f32 %v5032_v48, 0.0 }
 0x223   :  { %v4940_v23 = vpack.c.bf16 %v3837_v40, %v3836_v58  ;;  %v3847_v28 = vmax.f32 %v5033_v43, 0.0 }
 0x225   :  { %4466 = vst [vmem:[%s7361_s4 + $0x50] sm:$0xff] %v4940_v23  ;;  %v4945_v60 = vpack.c.bf16 %v3847_v28, %v3846_v10  ;;  %v3145_v54 = vpop.f32.mrb[56].mxu0 }
 0x226   :  { %v5034_v26 = vadd.f32 %v3145_v54, %v6593_v17  ;;  %v3147_v59 = vpop.f32.mrb[57].mxu0 }
 0x227   :  { %4471 = vst [vmem:[%s7361_s4 + $0x78] sm:$0xff] %v4945_v60  ;;  %v5035_v61 = vadd.f32 %v3147_v59, %v6595_v19  ;;  %v3149_v29 = vpop.f32.mrb[58].mxu0 }
 0x228   :  { %v3856_v0 = vmax.f32 %v5034_v26, 0.0  ;;  %v5036_v52 = vadd.f32 %v3149_v29, %v6597_v21  ;;  %v3151_v62 = vpop.f32.mrb[59].mxu0 }
 0x229   :  { %v3857_v50 = vmax.f32 %v5035_v61, 0.0  ;;  %v5037_v2 = vadd.f32 %v3151_v62, %v6599_v25 }
 0x22a   :  { %v3866_v39 = vmax.f32 %v5036_v52, 0.0 }
 0x22b   :  { %v4950_v49 = vpack.c.bf16 %v3857_v50, %v3856_v0  ;;  %v3867_v46 = vmax.f32 %v5037_v2, 0.0 }
 0x22d   :  { %4476 = vst [vmem:[%s7361_s4 + $0xa0] sm:$0xff] %v4950_v49  ;;  %v4955_v17 = vpack.c.bf16 %v3867_v46, %v3866_v39  ;;  %v3155_v1 = vpop.f32.mrb[60].mxu0 }
 0x22e   :  { %v5038_v57 = vadd.f32 %v3155_v1, %v6623_v18  ;;  %v3157_v19 = vpop.f32.mrb[61].mxu0 }
 0x22f   :  { %4481 = vst [vmem:[%s7361_s4 + $0xc8] sm:$0xff] %v4955_v17  ;;  %v5039_v21 = vadd.f32 %v3157_v19, %v6631_v24  ;;  %v3159_v36 = vpop.f32.mrb[62].mxu0 }
 0x230   :  { %v3876_v25 = vmax.f32 %v5038_v57, 0.0  ;;  %v5040_v58 = vadd.f32 %v3159_v36, %v6633_v30  ;;  %v3161_v48 = vpop.f32.mrb[63].mxu0 }
 0x231   :  { %v3877_v4 = vmax.f32 %v5039_v21, 0.0  ;;  %v5041_v40 = vadd.f32 %v3161_v48, %v6635_v32 }
 0x232   :  { %v3886_v43 = vmax.f32 %v5040_v58, 0.0 }
 0x233   :  { %v4960_v10 = vpack.c.bf16 %v3877_v4, %v3876_v25  ;;  %v3887_v23 = vmax.f32 %v5041_v40, 0.0 }
 0x235   :  { %4486 = vst [vmem:[%s7361_s4 + $0xf0] sm:$0xff] %v4960_v10  ;;  %v4965_v18 = vpack.c.bf16 %v3887_v23, %v3886_v43  ;;  %v3165_v28 = vpop.f32.mrb[64].mxu0 }
 0x236   :  { %v5042_v60 = vadd.f32 %v3165_v28, %v6659_v33  ;;  %v3167_v24 = vpop.f32.mrb[65].mxu0 }
 0x237   :  { %4491 = vst [vmem:[%s7361_s4 + $0x118] sm:$0xff] %v4965_v18  ;;  %v5043_v30 = vadd.f32 %v3167_v24, %v6667_v38  ;;  %v3169_v54 = vpop.f32.mrb[66].mxu0 }
 0x238   :  { %v3896_v32 = vmax.f32 %v5042_v60, 0.0  ;;  %v5044_v26 = vadd.f32 %v3169_v54, %v6669_v37  ;;  %v3171_v59 = vpop.f32.mrb[67].mxu0 }
 0x239   :  { %v3897_v61 = vmax.f32 %v5043_v30, 0.0  ;;  %v5045_v29 = vadd.f32 %v3171_v59, %v6671_v41 }
 0x23a   :  { %v3906_v0 = vmax.f32 %v5044_v26, 0.0 }
 0x23b   :  { %v4970_v52 = vpack.c.bf16 %v3897_v61, %v3896_v32  ;;  %v3907_v62 = vmax.f32 %v5045_v29, 0.0 }
 0x23d   :  { %4496 = vst [vmem:[%s7361_s4 + $0x140] sm:$0xff] %v4970_v52  ;;  %v4975_v33 = vpack.c.bf16 %v3907_v62, %v3906_v0  ;;  %v3175_v50 = vpop.f32.mrb[68].mxu0 }
 0x23e   :  { %v5046_v2 = vadd.f32 %v3175_v50, %v6695_v51  ;;  %v3177_v38 = vpop.f32.mrb[69].mxu0 }
 0x23f   :  { %4501 = vst [vmem:[%s7361_s4 + $0x168] sm:$0xff] %v4975_v33  ;;  %v5047_v37 = vadd.f32 %v3177_v38, %v6703_v55  ;;  %v3179_v39 = vpop.f32.mrb[70].mxu0 }
 0x240   :  { %v3916_v41 = vmax.f32 %v5046_v2, 0.0  ;;  %v5048_v49 = vadd.f32 %v3179_v39, %v6705_v56  ;;  %v3181_v46 = vpop.f32.mrb[71].mxu0 }
 0x241   :  { %v3917_v17 = vmax.f32 %v5047_v37, 0.0  ;;  %v5049_v1 = vadd.f32 %v3181_v46, %v6707_v63 }
 0x242   :  { %v3926_v57 = vmax.f32 %v5048_v49, 0.0 }
 0x243   :  { %v4980_v19 = vpack.c.bf16 %v3917_v17, %v3916_v41  ;;  %v3927_v21 = vmax.f32 %v5049_v1, 0.0 }
 0x245   :  { %4506 = vst [vmem:[%s7361_s4 + $0x190] sm:$0xff] %v4980_v19  ;;  %v4985_v51 = vpack.c.bf16 %v3927_v21, %v3926_v57  ;;  %v3185_v36 = vpop.f32.mrb[72].mxu0 }
 0x246   :  { %v5050_v25 = vadd.f32 %v3185_v36, %v6713_v9  ;;  %v3187_v55 = vpop.f32.mrb[73].mxu0 }
 0x247   :  { %4511 = vst [vmem:[%s7361_s4 + $0x1b8] sm:$0xff] %v4985_v51  ;;  %v5051_v56 = vadd.f32 %v3187_v55, %v6715_v3  ;;  %v3189_v58 = vpop.f32.mrb[74].mxu0 }
 0x248   :  { %v3936_v63 = vmax.f32 %v5050_v25, 0.0  ;;  %v5052_v48 = vadd.f32 %v3189_v58, %v6717_v5  ;;  %v3191_v4 = vpop.f32.mrb[75].mxu0 }
 0x249   :  { %v3937_v40 = vmax.f32 %v5051_v56, 0.0  ;;  %v5053_v43 = vadd.f32 %v3191_v4, %v6719_v7 }
 0x24a   :  { %v3946_v10 = vmax.f32 %v5052_v48, 0.0 }
 0x24b   :  { %v4990_v23 = vpack.c.bf16 %v3937_v40, %v3936_v63  ;;  %v3947_v18 = vmax.f32 %v5053_v43, 0.0 }
 0x24d   :  { %4516 = vst [vmem:[%s7361_s4 + $0x1e0] sm:$0xff] %v4990_v23  ;;  %v4995_v9 = vpack.c.bf16 %v3947_v18, %v3946_v10  ;;  %v3195_v28 = vpop.f32.mrb[76].mxu0 }
 0x24e   :  { %v5054_v60 = vadd.f32 %v3195_v28, %v6725_v11  ;;  %v3197_v3 = vpop.f32.mrb[77].mxu0 }
 0x24f   :  { %4521 = vst [vmem:[%s7361_s4 + $0x208] sm:$0xff] %v4995_v9  ;;  %v5055_v5 = vadd.f32 %v3197_v3, %v6727_v13  ;;  %v3199_v24 = vpop.f32.mrb[78].mxu0 }
 0x250   :  { %v3956_v7 = vmax.f32 %v5054_v60, 0.0  ;;  %v5056_v30 = vadd.f32 %v3199_v24, %v6729_v15  ;;  %v3201_v54 = vpop.f32.mrb[79].mxu0 }
 0x251   :  { %v3957_v32 = vmax.f32 %v5055_v5, 0.0  ;;  %v5057_v26 = vadd.f32 %v3201_v54, %v6731_v27 }
 0x252   :  { %v3966_v59 = vmax.f32 %v5056_v30, 0.0 }
 0x253   :  { %v5000_v61 = vpack.c.bf16 %v3957_v32, %v3956_v7  ;;  %v3967_v29 = vmax.f32 %v5057_v26, 0.0 }
 0x255   :  { %4526 = vst [vmem:[%s7361_s4 + $0x230] sm:$0xff] %v5000_v61  ;;  %v5005_v11 = vpack.c.bf16 %v3967_v29, %v3966_v59  ;;  %v3238_v0 = vpop.f32.mrb[32].mxu1  ;;  %v3351_v52 = vpop.f32.mrb[0].mxu0 }
 0x256   :  { %v3818_v62 = vmax.f32 %v3238_v0, 0.0  ;;  %v3820_v13 = vmax.f32 %v3351_v52, 0.0  ;;  %v3240_v33 = vpop.f32.mrb[33].mxu1  ;;  %v3353_v50 = vpop.f32.mrb[1].mxu0 }
 0x257   :  { %4531 = vst [vmem:[%s7361_s4 + $0x258] sm:$0xff] %v5005_v11  ;;  %v3819_v15 = vmax.f32 %v3240_v33, 0.0  ;;  %v3821_v27 = vmax.f32 %v3353_v50, 0.0  ;;  %v3242_v2 = vpop.f32.mrb[34].mxu1  ;;  %v3355_v38 = vpop.f32.mrb[2].mxu0 }
 0x258   :  { %v3828_v37 = vmax.f32 %v3242_v2, 0.0  ;;  %v3830_v39 = vmax.f32 %v3355_v38, 0.0  ;;  %v3244_v41 = vpop.f32.mrb[35].mxu1  ;;  %v3357_v49 = vpop.f32.mrb[3].mxu0 }
 0x259   :  { %v4931_v46 = vpack.c.bf16 %v3819_v15, %v3818_v62  ;;  %v4932_v17 = vpack.c.bf16 %v3821_v27, %v3820_v13  ;;  %v3829_v1 = vmax.f32 %v3244_v41, 0.0  ;;  %v3831_v57 = vmax.f32 %v3357_v49, 0.0 }
 0x25b   :  { %4457 = vst [vmem:[%s7361_s4 + $0x8] sm:$0xff] %v4931_v46  ;;  %4458 = vst [vmem:[%s7361_s4 + $0x10] sm:$0xff] %v4932_v17  ;;  %v4936_v19 = vpack.c.bf16 %v3829_v1, %v3828_v37  ;;  %v4937_v21 = vpack.c.bf16 %v3831_v57, %v3830_v39 }
 0x25d   :  { %4462 = vst [vmem:[%s7361_s4 + $0x30] sm:$0xff] %v4936_v19  ;;  %4463 = vst [vmem:[%s7361_s4 + $0x38] sm:$0xff] %v4937_v21  ;;  %v3248_v51 = vpop.f32.mrb[36].mxu1  ;;  %v3361_v36 = vpop.f32.mrb[4].mxu0 }
 0x25e   :  { %v3838_v25 = vmax.f32 %v3248_v51, 0.0  ;;  %v3840_v55 = vmax.f32 %v3361_v36, 0.0  ;;  %v3250_v56 = vpop.f32.mrb[37].mxu1  ;;  %v3363_v58 = vpop.f32.mrb[5].mxu0 }
 0x25f   :  { %v3839_v63 = vmax.f32 %v3250_v56, 0.0  ;;  %v3841_v48 = vmax.f32 %v3363_v58, 0.0  ;;  %v3252_v4 = vpop.f32.mrb[38].mxu1  ;;  %v3365_v40 = vpop.f32.mrb[6].mxu0 }
 0x260   :  { %v3848_v43 = vmax.f32 %v3252_v4, 0.0  ;;  %v3850_v10 = vmax.f32 %v3365_v40, 0.0  ;;  %v3254_v23 = vpop.f32.mrb[39].mxu1  ;;  %v3367_v18 = vpop.f32.mrb[7].mxu0 }
 0x261   :  { %v4941_v9 = vpack.c.bf16 %v3839_v63, %v3838_v25  ;;  %v4942_v28 = vpack.c.bf16 %v3841_v48, %v3840_v55  ;;  %v3849_v60 = vmax.f32 %v3254_v23, 0.0  ;;  %v3851_v3 = vmax.f32 %v3367_v18, 0.0 }
 0x263   :  { %4467 = vst [vmem:[%s7361_s4 + $0x58] sm:$0xff] %v4941_v9  ;;  %4468 = vst [vmem:[%s7361_s4 + $0x60] sm:$0xff] %v4942_v28  ;;  %v4946_v5 = vpack.c.bf16 %v3849_v60, %v3848_v43  ;;  %v4947_v24 = vpack.c.bf16 %v3851_v3, %v3850_v10 }
 0x265   :  { %4472 = vst [vmem:[%s7361_s4 + $0x80] sm:$0xff] %v4946_v5  ;;  %4473 = vst [vmem:[%s7361_s4 + $0x88] sm:$0xff] %v4947_v24  ;;  %v3258_v7 = vpop.f32.mrb[40].mxu1  ;;  %v3371_v30 = vpop.f32.mrb[8].mxu0 }
 0x266   :  { %v3858_v54 = vmax.f32 %v3258_v7, 0.0  ;;  %v3860_v32 = vmax.f32 %v3371_v30, 0.0  ;;  %v3260_v26 = vpop.f32.mrb[41].mxu1  ;;  %v3373_v59 = vpop.f32.mrb[9].mxu0 }
 0x267   :  { %v3859_v61 = vmax.f32 %v3260_v26, 0.0  ;;  %v3861_v29 = vmax.f32 %v3373_v59, 0.0  ;;  %v3262_v11 = vpop.f32.mrb[42].mxu1  ;;  %v3375_v0 = vpop.f32.mrb[10].mxu0 }
 0x268   :  { %v3868_v52 = vmax.f32 %v3262_v11, 0.0  ;;  %v3870_v62 = vmax.f32 %v3375_v0, 0.0  ;;  %v3264_v13 = vpop.f32.mrb[43].mxu1  ;;  %v3377_v33 = vpop.f32.mrb[11].mxu0 }
 0x269   :  { %v4951_v50 = vpack.c.bf16 %v3859_v61, %v3858_v54  ;;  %v4952_v15 = vpack.c.bf16 %v3861_v29, %v3860_v32  ;;  %v3869_v27 = vmax.f32 %v3264_v13, 0.0  ;;  %v3871_v2 = vmax.f32 %v3377_v33, 0.0 }
 0x26b   :  { %4477 = vst [vmem:[%s7361_s4 + $0xa8] sm:$0xff] %v4951_v50  ;;  %4478 = vst [vmem:[%s7361_s4 + $0xb0] sm:$0xff] %v4952_v15  ;;  %v4956_v38 = vpack.c.bf16 %v3869_v27, %v3868_v52  ;;  %v4957_v37 = vpack.c.bf16 %v3871_v2, %v3870_v62 }
 0x26d   :  { %4482 = vst [vmem:[%s7361_s4 + $0xd0] sm:$0xff] %v4956_v38  ;;  %4483 = vst [vmem:[%s7361_s4 + $0xd8] sm:$0xff] %v4957_v37  ;;  %v3268_v39 = vpop.f32.mrb[44].mxu1  ;;  %v3381_v41 = vpop.f32.mrb[12].mxu0 }
 0x26e   :  { %v3878_v49 = vmax.f32 %v3268_v39, 0.0  ;;  %v3880_v46 = vmax.f32 %v3381_v41, 0.0  ;;  %v3270_v17 = vpop.f32.mrb[45].mxu1  ;;  %v3383_v1 = vpop.f32.mrb[13].mxu0 }
 0x26f   :  { %v3879_v57 = vmax.f32 %v3270_v17, 0.0  ;;  %v3881_v19 = vmax.f32 %v3383_v1, 0.0  ;;  %v3272_v21 = vpop.f32.mrb[46].mxu1  ;;  %v3385_v51 = vpop.f32.mrb[14].mxu0 }
 0x270   :  { %v3888_v36 = vmax.f32 %v3272_v21, 0.0  ;;  %v3890_v25 = vmax.f32 %v3385_v51, 0.0  ;;  %v3274_v55 = vpop.f32.mrb[47].mxu1  ;;  %v3387_v56 = vpop.f32.mrb[15].mxu0 }
 0x271   :  { %v4961_v58 = vpack.c.bf16 %v3879_v57, %v3878_v49  ;;  %v4962_v63 = vpack.c.bf16 %v3881_v19, %v3880_v46  ;;  %v3889_v48 = vmax.f32 %v3274_v55, 0.0  ;;  %v3891_v4 = vmax.f32 %v3387_v56, 0.0 }
 0x273   :  { %4487 = vst [vmem:[%s7361_s4 + $0xf8] sm:$0xff] %v4961_v58  ;;  %4488 = vst [vmem:[%s7361_s4 + $0x100] sm:$0xff] %v4962_v63  ;;  %v4966_v40 = vpack.c.bf16 %v3889_v48, %v3888_v36  ;;  %v4967_v43 = vpack.c.bf16 %v3891_v4, %v3890_v25 }
 0x275   :  { %4492 = vst [vmem:[%s7361_s4 + $0x120] sm:$0xff] %v4966_v40  ;;  %4493 = vst [vmem:[%s7361_s4 + $0x128] sm:$0xff] %v4967_v43  ;;  %v3278_v10 = vpop.f32.mrb[48].mxu1  ;;  %v3391_v23 = vpop.f32.mrb[80].mxu0 }
 0x276   :  { %v3898_v18 = vmax.f32 %v3278_v10, 0.0  ;;  %v5058_v9 = vadd.f32 %v3391_v23, %v6879_v31  ;;  %v3280_v28 = vpop.f32.mrb[49].mxu1  ;;  %v3393_v60 = vpop.f32.mrb[81].mxu0 }
 0x277   :  { %v3899_v3 = vmax.f32 %v3280_v28, 0.0  ;;  %v5059_v5 = vadd.f32 %v3393_v60, %v6881_v34  ;;  %v3282_v24 = vpop.f32.mrb[50].mxu1  ;;  %v3395_v7 = vpop.f32.mrb[82].mxu0 }
 0x278   :  { %v3900_v30 = vmax.f32 %v5058_v9, 0.0  ;;  %v3908_v54 = vmax.f32 %v3282_v24, 0.0  ;;  %v5060_v32 = vadd.f32 %v3395_v7, %v6885_v35  ;;  %v3284_v26 = vpop.f32.mrb[51].mxu1  ;;  %v3397_v59 = vpop.f32.mrb[83].mxu0 }
 0x279   :  { %v4971_v61 = vpack.c.bf16 %v3899_v3, %v3898_v18  ;;  %v3901_v29 = vmax.f32 %v5059_v5, 0.0  ;;  %v3909_v11 = vmax.f32 %v3284_v26, 0.0  ;;  %v5061_v0 = vadd.f32 %v3397_v59, %v6887_v16 }
 0x27a   :  { %v3910_v52 = vmax.f32 %v5060_v32, 0.0 }
 0x27b   :  { %4497 = vst [vmem:[%s7361_s4 + $0x148] sm:$0xff] %v4971_v61  ;;  %v4972_v31 = vpack.c.bf16 %v3901_v29, %v3900_v30  ;;  %v4976_v34 = vpack.c.bf16 %v3909_v11, %v3908_v54  ;;  %v3911_v62 = vmax.f32 %v5061_v0, 0.0 }
 0x27d   :  { %4498 = vst [vmem:[%s7361_s4 + $0x150] sm:$0xff] %v4972_v31  ;;  %4502 = vst [vmem:[%s7361_s4 + $0x170] sm:$0xff] %v4976_v34  ;;  %v4977_v35 = vpack.c.bf16 %v3911_v62, %v3910_v52  ;;  %v3288_v13 = vpop.f32.mrb[52].mxu1  ;;  %v3401_v33 = vpop.f32.mrb[84].mxu0 }
 0x27e   :  { %v3918_v16 = vmax.f32 %v3288_v13, 0.0  ;;  %v5062_v50 = vadd.f32 %v3401_v33, %v6893_v44  ;;  %v3290_v15 = vpop.f32.mrb[53].mxu1  ;;  %v3403_v27 = vpop.f32.mrb[85].mxu0 }
 0x27f   :  { %4503 = vst [vmem:[%s7361_s4 + $0x178] sm:$0xff] %v4977_v35  ;;  %v3919_v2 = vmax.f32 %v3290_v15, 0.0  ;;  %v5063_v38 = vadd.f32 %v3403_v27, %v6895_v42  ;;  %v3292_v37 = vpop.f32.mrb[54].mxu1  ;;  %v3405_v39 = vpop.f32.mrb[86].mxu0  ;;  %v7366_v15 = vld [vmem:[#allocation5_spill] sm:$0xff] }
 0x280   :  { %v3920_v41 = vmax.f32 %v5062_v50, 0.0  ;;  %v3928_v49 = vmax.f32 %v3292_v37, 0.0  ;;  %v5064_v46 = vadd.f32 %v3405_v39, %v6897_v45  ;;  %v3294_v17 = vpop.f32.mrb[55].mxu1  ;;  %v3407_v1 = vpop.f32.mrb[87].mxu0 }
 0x281   :  { %v4981_v57 = vpack.c.bf16 %v3919_v2, %v3918_v16  ;;  %v3921_v19 = vmax.f32 %v5063_v38, 0.0  ;;  %v3929_v44 = vmax.f32 %v3294_v17, 0.0  ;;  %v5065_v21 = vadd.f32 %v3407_v1, %v6905_v47 }
 0x282   :  { %v3930_v51 = vmax.f32 %v5064_v46, 0.0 }
 0x283   :  { %4507 = vst [vmem:[%s7361_s4 + $0x198] sm:$0xff] %v4981_v57  ;;  %v4982_v36 = vpack.c.bf16 %v3921_v19, %v3920_v41  ;;  %v4986_v42 = vpack.c.bf16 %v3929_v44, %v3928_v49  ;;  %v3931_v25 = vmax.f32 %v5065_v21, 0.0 }
 0x285   :  { %4508 = vst [vmem:[%s7361_s4 + $0x1a0] sm:$0xff] %v4982_v36  ;;  %4512 = vst [vmem:[%s7361_s4 + $0x1c0] sm:$0xff] %v4986_v42  ;;  %v4987_v45 = vpack.c.bf16 %v3931_v25, %v3930_v51  ;;  %v3298_v55 = vpop.f32.mrb[56].mxu1  ;;  %v3411_v56 = vpop.f32.mrb[88].mxu0 }
 0x286   :  { %v3938_v47 = vmax.f32 %v3298_v55, 0.0  ;;  %v5066_v58 = vadd.f32 %v3411_v56, %v6929_v14  ;;  %v3300_v63 = vpop.f32.mrb[57].mxu1  ;;  %v3413_v48 = vpop.f32.mrb[89].mxu0 }
 0x287   :  { %4513 = vst [vmem:[%s7361_s4 + $0x1c8] sm:$0xff] %v4987_v45  ;;  %v3939_v4 = vmax.f32 %v3300_v63, 0.0  ;;  %v5067_v40 = vadd.f32 %v3413_v48, %v6931_v20  ;;  %v3302_v43 = vpop.f32.mrb[58].mxu1  ;;  %v3415_v10 = vpop.f32.mrb[90].mxu0 }
 0x288   :  { %v3940_v23 = vmax.f32 %v5066_v58, 0.0  ;;  %v3948_v18 = vmax.f32 %v3302_v43, 0.0  ;;  %v5068_v9 = vadd.f32 %v3415_v10, %v6933_v22  ;;  %v3304_v28 = vpop.f32.mrb[59].mxu1  ;;  %v3417_v60 = vpop.f32.mrb[91].mxu0 }
 0x289   :  { %v4991_v3 = vpack.c.bf16 %v3939_v4, %v3938_v47  ;;  %v3941_v5 = vmax.f32 %v5067_v40, 0.0  ;;  %v3949_v14 = vmax.f32 %v3304_v28, 0.0  ;;  %v5069_v24 = vadd.f32 %v3417_v60, %v6935_v6 }
 0x28a   :  { %v3950_v7 = vmax.f32 %v5068_v9, 0.0 }
 0x28b   :  { %4517 = vst [vmem:[%s7361_s4 + $0x1e8] sm:$0xff] %v4991_v3  ;;  %v4992_v30 = vpack.c.bf16 %v3941_v5, %v3940_v23  ;;  %v4996_v20 = vpack.c.bf16 %v3949_v14, %v3948_v18  ;;  %v3951_v54 = vmax.f32 %v5069_v24, 0.0 }
 0x28d   :  { %4518 = vst [vmem:[%s7361_s4 + $0x1f0] sm:$0xff] %v4992_v30  ;;  %4522 = vst [vmem:[%s7361_s4 + $0x210] sm:$0xff] %v4996_v20  ;;  %v4997_v22 = vpack.c.bf16 %v3951_v54, %v3950_v7  ;;  %v3308_v32 = vpop.f32.mrb[60].mxu1  ;;  %v3421_v26 = vpop.f32.mrb[92].mxu0 }
 0x28e   :  { %v3958_v6 = vmax.f32 %v3308_v32, 0.0  ;;  %v5070_v59 = vadd.f32 %v3421_v26, %v6959_v53  ;;  %v3310_v61 = vpop.f32.mrb[61].mxu1  ;;  %v3423_v29 = vpop.f32.mrb[93].mxu0 }
 0x28f   :  { %4523 = vst [vmem:[%s7361_s4 + $0x218] sm:$0xff] %v4997_v22  ;;  %v3959_v11 = vmax.f32 %v3310_v61, 0.0  ;;  %v5071_v0 = vadd.f32 %v3423_v29, %v6967_v8  ;;  %v3312_v52 = vpop.f32.mrb[62].mxu1  ;;  %v3425_v31 = vpop.f32.mrb[94].mxu0 }
 0x290   :  { %v3960_v34 = vmax.f32 %v5070_v59, 0.0  ;;  %v3968_v62 = vmax.f32 %v3312_v52, 0.0  ;;  %v5072_v35 = vadd.f32 %v3425_v31, %v6969_v12  ;;  %v3314_v13 = vpop.f32.mrb[63].mxu1  ;;  %v3427_v33 = vpop.f32.mrb[95].mxu0 }
 0x291   :  { %v5001_v16 = vpack.c.bf16 %v3959_v11, %v3958_v6  ;;  %v3961_v50 = vmax.f32 %v5071_v0, 0.0  ;;  %v3969_v53 = vmax.f32 %v3314_v13, 0.0  ;;  %v5073_v27 = vadd.f32 %v3427_v33, %v7366_v15 }
 0x292   :  { %v3970_v2 = vmax.f32 %v5072_v35, 0.0 }
 0x293   :  { %4527 = vst [vmem:[%s7361_s4 + $0x238] sm:$0xff] %v5001_v16  ;;  %v5002_v38 = vpack.c.bf16 %v3961_v50, %v3960_v34  ;;  %v5006_v8 = vpack.c.bf16 %v3969_v53, %v3968_v62  ;;  %v3971_v37 = vmax.f32 %v5073_v27, 0.0 }
 0x295   :  { %4528 = vst [vmem:[%s7361_s4 + $0x240] sm:$0xff] %v5002_v38  ;;  %4532 = vst [vmem:[%s7361_s4 + $0x260] sm:$0xff] %v5006_v8  ;;  %v5007_v12 = vpack.c.bf16 %v3971_v37, %v3970_v2  ;;  %v3464_v39 = vpop.f32.mrb[80].mxu1  ;;  %v3577_v41 = vpop.f32.mrb[16].mxu0 }
 0x296   :  { %v3822_v49 = vmax.f32 %v3464_v39, 0.0  ;;  %v3824_v46 = vmax.f32 %v3577_v41, 0.0  ;;  %v3466_v17 = vpop.f32.mrb[81].mxu1  ;;  %v3579_v1 = vpop.f32.mrb[17].mxu0 }
 0x297   :  { %4533 = vst [vmem:[%s7361_s4 + $0x268] sm:$0xff] %v5007_v12  ;;  %v3823_v57 = vmax.f32 %v3466_v17, 0.0  ;;  %v3825_v19 = vmax.f32 %v3579_v1, 0.0  ;;  %v3468_v44 = vpop.f32.mrb[82].mxu1  ;;  %v3581_v21 = vpop.f32.mrb[18].mxu0 }
 0x298   :  { %v3832_v51 = vmax.f32 %v3468_v44, 0.0  ;;  %v3834_v36 = vmax.f32 %v3581_v21, 0.0  ;;  %v3470_v42 = vpop.f32.mrb[83].mxu1  ;;  %v3583_v25 = vpop.f32.mrb[19].mxu0 }
 0x299   :  { %v4933_v45 = vpack.c.bf16 %v3823_v57, %v3822_v49  ;;  %v4934_v55 = vpack.c.bf16 %v3825_v19, %v3824_v46  ;;  %v3833_v56 = vmax.f32 %v3470_v42, 0.0  ;;  %v3835_v47 = vmax.f32 %v3583_v25, 0.0 }
 0x29b   :  { %4459 = vst [vmem:[%s7361_s4 + $0x18] sm:$0xff] %v4933_v45  ;;  %4460 = vst [vmem:[%s7361_s4 + $0x20] sm:$0xff] %v4934_v55  ;;  %v4938_v58 = vpack.c.bf16 %v3833_v56, %v3832_v51  ;;  %v4939_v63 = vpack.c.bf16 %v3835_v47, %v3834_v36 }
 0x29d   :  { %4464 = vst [vmem:[%s7361_s4 + $0x40] sm:$0xff] %v4938_v58  ;;  %4465 = vst [vmem:[%s7361_s4 + $0x48] sm:$0xff] %v4939_v63  ;;  %v3474_v48 = vpop.f32.mrb[84].mxu1  ;;  %v3587_v4 = vpop.f32.mrb[20].mxu0 }
 0x29e   :  { %v3842_v40 = vmax.f32 %v3474_v48, 0.0  ;;  %v3844_v43 = vmax.f32 %v3587_v4, 0.0  ;;  %v3476_v10 = vpop.f32.mrb[85].mxu1  ;;  %v3589_v23 = vpop.f32.mrb[21].mxu0 }
 0x29f   :  { %v3843_v18 = vmax.f32 %v3476_v10, 0.0  ;;  %v3845_v9 = vmax.f32 %v3589_v23, 0.0  ;;  %v3478_v28 = vpop.f32.mrb[86].mxu1  ;;  %v3591_v60 = vpop.f32.mrb[22].mxu0 }
 0x2a0   :  { %v3852_v3 = vmax.f32 %v3478_v28, 0.0  ;;  %v3854_v5 = vmax.f32 %v3591_v60, 0.0  ;;  %v3480_v14 = vpop.f32.mrb[87].mxu1  ;;  %v3593_v24 = vpop.f32.mrb[23].mxu0 }
 0x2a1   :  { %v4943_v7 = vpack.c.bf16 %v3843_v18, %v3842_v40  ;;  %v4944_v30 = vpack.c.bf16 %v3845_v9, %v3844_v43  ;;  %v3853_v20 = vmax.f32 %v3480_v14, 0.0  ;;  %v3855_v54 = vmax.f32 %v3593_v24, 0.0 }
 0x2a3   :  { %4469 = vst [vmem:[%s7361_s4 + $0x68] sm:$0xff] %v4943_v7  ;;  %4470 = vst [vmem:[%s7361_s4 + $0x70] sm:$0xff] %v4944_v30  ;;  %v4948_v22 = vpack.c.bf16 %v3853_v20, %v3852_v3  ;;  %v4949_v32 = vpack.c.bf16 %v3855_v54, %v3854_v5 }
 0x2a5   :  { %4474 = vst [vmem:[%s7361_s4 + $0x90] sm:$0xff] %v4948_v22  ;;  %4475 = vst [vmem:[%s7361_s4 + $0x98] sm:$0xff] %v4949_v32  ;;  %v3484_v26 = vpop.f32.mrb[88].mxu1  ;;  %v3597_v6 = vpop.f32.mrb[24].mxu0 }
 0x2a6   :  { %v3862_v59 = vmax.f32 %v3484_v26, 0.0  ;;  %v3864_v61 = vmax.f32 %v3597_v6, 0.0  ;;  %v3486_v29 = vpop.f32.mrb[89].mxu1  ;;  %v3599_v11 = vpop.f32.mrb[25].mxu0 }
 0x2a7   :  { %v3863_v0 = vmax.f32 %v3486_v29, 0.0  ;;  %v3865_v52 = vmax.f32 %v3599_v11, 0.0  ;;  %v3488_v31 = vpop.f32.mrb[90].mxu1  ;;  %v3601_v34 = vpop.f32.mrb[26].mxu0 }
 0x2a8   :  { %v3872_v62 = vmax.f32 %v3488_v31, 0.0  ;;  %v3874_v35 = vmax.f32 %v3601_v34, 0.0  ;;  %v3490_v13 = vpop.f32.mrb[91].mxu1  ;;  %v3603_v33 = vpop.f32.mrb[27].mxu0 }
 0x2a9   :  { %v4953_v16 = vpack.c.bf16 %v3863_v0, %v3862_v59  ;;  %v4954_v50 = vpack.c.bf16 %v3865_v52, %v3864_v61  ;;  %v3873_v53 = vmax.f32 %v3490_v13, 0.0  ;;  %v3875_v15 = vmax.f32 %v3603_v33, 0.0 }
 0x2ab   :  { %4479 = vst [vmem:[%s7361_s4 + $0xb8] sm:$0xff] %v4953_v16  ;;  %4480 = vst [vmem:[%s7361_s4 + $0xc0] sm:$0xff] %v4954_v50  ;;  %v4958_v27 = vpack.c.bf16 %v3873_v53, %v3872_v62  ;;  %v4959_v2 = vpack.c.bf16 %v3875_v15, %v3874_v35 }
 0x2ad   :  { %4484 = vst [vmem:[%s7361_s4 + $0xe0] sm:$0xff] %v4958_v27  ;;  %4485 = vst [vmem:[%s7361_s4 + $0xe8] sm:$0xff] %v4959_v2  ;;  %v3494_v38 = vpop.f32.mrb[92].mxu1  ;;  %v3607_v8 = vpop.f32.mrb[28].mxu0 }
 0x2ae   :  { %v3882_v37 = vmax.f32 %v3494_v38, 0.0  ;;  %v3884_v12 = vmax.f32 %v3607_v8, 0.0  ;;  %v3496_v39 = vpop.f32.mrb[93].mxu1  ;;  %v3609_v41 = vpop.f32.mrb[29].mxu0 }
 0x2af   :  { %v3883_v49 = vmax.f32 %v3496_v39, 0.0  ;;  %v3885_v46 = vmax.f32 %v3609_v41, 0.0  ;;  %v3498_v17 = vpop.f32.mrb[94].mxu1  ;;  %v3611_v1 = vpop.f32.mrb[30].mxu0 }
 0x2b0   :  { %v3892_v57 = vmax.f32 %v3498_v17, 0.0  ;;  %v3894_v19 = vmax.f32 %v3611_v1, 0.0  ;;  %v3500_v44 = vpop.f32.mrb[95].mxu1  ;;  %v3613_v21 = vpop.f32.mrb[31].mxu0 }
 0x2b1   :  { %v4963_v51 = vpack.c.bf16 %v3883_v49, %v3882_v37  ;;  %v4964_v36 = vpack.c.bf16 %v3885_v46, %v3884_v12  ;;  %v3893_v42 = vmax.f32 %v3500_v44, 0.0  ;;  %v3895_v25 = vmax.f32 %v3613_v21, 0.0 }
 0x2b3   :  { %4489 = vst [vmem:[%s7361_s4 + $0x108] sm:$0xff] %v4963_v51  ;;  %4490 = vst [vmem:[%s7361_s4 + $0x110] sm:$0xff] %v4964_v36  ;;  %v4968_v45 = vpack.c.bf16 %v3893_v42, %v3892_v57  ;;  %v4969_v55 = vpack.c.bf16 %v3895_v25, %v3894_v19 }
 0x2b5   :  { %4494 = vst [vmem:[%s7361_s4 + $0x130] sm:$0xff] %v4968_v45  ;;  %4495 = vst [vmem:[%s7361_s4 + $0x138] sm:$0xff] %v4969_v55  ;;  %v3504_v56 = vpop.f32.mrb[96].mxu1  ;;  %v3617_v47 = vpop.f32.mrb[32].mxu0 }
 0x2b6   :  { %v3902_v58 = vmax.f32 %v3504_v56, 0.0  ;;  %v3904_v63 = vmax.f32 %v3617_v47, 0.0  ;;  %v3506_v48 = vpop.f32.mrb[97].mxu1  ;;  %v3619_v4 = vpop.f32.mrb[33].mxu0 }
 0x2b7   :  { %v3903_v40 = vmax.f32 %v3506_v48, 0.0  ;;  %v3905_v43 = vmax.f32 %v3619_v4, 0.0  ;;  %v3508_v10 = vpop.f32.mrb[98].mxu1  ;;  %v3621_v23 = vpop.f32.mrb[34].mxu0 }
 0x2b8   :  { %v3912_v18 = vmax.f32 %v3508_v10, 0.0  ;;  %v3914_v9 = vmax.f32 %v3621_v23, 0.0  ;;  %v3510_v28 = vpop.f32.mrb[99].mxu1  ;;  %v3623_v60 = vpop.f32.mrb[35].mxu0 }
 0x2b9   :  { %v4973_v3 = vpack.c.bf16 %v3903_v40, %v3902_v58  ;;  %v4974_v5 = vpack.c.bf16 %v3905_v43, %v3904_v63  ;;  %v3913_v14 = vmax.f32 %v3510_v28, 0.0  ;;  %v3915_v24 = vmax.f32 %v3623_v60, 0.0 }
 0x2bb   :  { %4499 = vst [vmem:[%s7361_s4 + $0x158] sm:$0xff] %v4973_v3  ;;  %4500 = vst [vmem:[%s7361_s4 + $0x160] sm:$0xff] %v4974_v5  ;;  %v4978_v7 = vpack.c.bf16 %v3913_v14, %v3912_v18  ;;  %v4979_v30 = vpack.c.bf16 %v3915_v24, %v3914_v9 }
 0x2bd   :  { %4504 = vst [vmem:[%s7361_s4 + $0x180] sm:$0xff] %v4978_v7  ;;  %4505 = vst [vmem:[%s7361_s4 + $0x188] sm:$0xff] %v4979_v30  ;;  %v3514_v20 = vpop.f32.mrb[100].mxu1  ;;  %v3627_v54 = vpop.f32.mrb[36].mxu0 }
 0x2be   :  { %v3922_v22 = vmax.f32 %v3514_v20, 0.0  ;;  %v3924_v32 = vmax.f32 %v3627_v54, 0.0  ;;  %v3516_v26 = vpop.f32.mrb[101].mxu1  ;;  %v3629_v6 = vpop.f32.mrb[37].mxu0 }
 0x2bf   :  { %v3923_v59 = vmax.f32 %v3516_v26, 0.0  ;;  %v3925_v61 = vmax.f32 %v3629_v6, 0.0  ;;  %v3518_v29 = vpop.f32.mrb[102].mxu1  ;;  %v3631_v11 = vpop.f32.mrb[38].mxu0 }
 0x2c0   :  { %v3932_v0 = vmax.f32 %v3518_v29, 0.0  ;;  %v3934_v52 = vmax.f32 %v3631_v11, 0.0  ;;  %v3520_v31 = vpop.f32.mrb[103].mxu1  ;;  %v3633_v34 = vpop.f32.mrb[39].mxu0 }
 0x2c1   :  { %v4983_v62 = vpack.c.bf16 %v3923_v59, %v3922_v22  ;;  %v4984_v35 = vpack.c.bf16 %v3925_v61, %v3924_v32  ;;  %v3933_v13 = vmax.f32 %v3520_v31, 0.0  ;;  %v3935_v33 = vmax.f32 %v3633_v34, 0.0 }
 0x2c3   :  { %4509 = vst [vmem:[%s7361_s4 + $0x1a8] sm:$0xff] %v4983_v62  ;;  %4510 = vst [vmem:[%s7361_s4 + $0x1b0] sm:$0xff] %v4984_v35  ;;  %v4988_v16 = vpack.c.bf16 %v3933_v13, %v3932_v0  ;;  %v4989_v50 = vpack.c.bf16 %v3935_v33, %v3934_v52 }
 0x2c5   :  { %4514 = vst [vmem:[%s7361_s4 + $0x1d0] sm:$0xff] %v4988_v16  ;;  %4515 = vst [vmem:[%s7361_s4 + $0x1d8] sm:$0xff] %v4989_v50  ;;  %v3524_v53 = vpop.f32.mrb[104].mxu1  ;;  %v3637_v15 = vpop.f32.mrb[40].mxu0 }
 0x2c6   :  { %v3942_v27 = vmax.f32 %v3524_v53, 0.0  ;;  %v3944_v2 = vmax.f32 %v3637_v15, 0.0  ;;  %v3526_v38 = vpop.f32.mrb[105].mxu1  ;;  %v3639_v8 = vpop.f32.mrb[41].mxu0 }
 0x2c7   :  { %v3943_v37 = vmax.f32 %v3526_v38, 0.0  ;;  %v3945_v12 = vmax.f32 %v3639_v8, 0.0  ;;  %v3528_v39 = vpop.f32.mrb[106].mxu1  ;;  %v3641_v41 = vpop.f32.mrb[42].mxu0 }
 0x2c8   :  { %v3952_v49 = vmax.f32 %v3528_v39, 0.0  ;;  %v3954_v46 = vmax.f32 %v3641_v41, 0.0  ;;  %v3530_v17 = vpop.f32.mrb[107].mxu1  ;;  %v3643_v1 = vpop.f32.mrb[43].mxu0 }
 0x2c9   :  { %v4993_v57 = vpack.c.bf16 %v3943_v37, %v3942_v27  ;;  %v4994_v19 = vpack.c.bf16 %v3945_v12, %v3944_v2  ;;  %v3953_v44 = vmax.f32 %v3530_v17, 0.0  ;;  %v3955_v21 = vmax.f32 %v3643_v1, 0.0 }
 0x2cb   :  { %4519 = vst [vmem:[%s7361_s4 + $0x1f8] sm:$0xff] %v4993_v57  ;;  %4520 = vst [vmem:[%s7361_s4 + $0x200] sm:$0xff] %v4994_v19  ;;  %v4998_v51 = vpack.c.bf16 %v3953_v44, %v3952_v49  ;;  %v4999_v36 = vpack.c.bf16 %v3955_v21, %v3954_v46 }
 0x2cd   :  { %4524 = vst [vmem:[%s7361_s4 + $0x220] sm:$0xff] %v4998_v51  ;;  %4525 = vst [vmem:[%s7361_s4 + $0x228] sm:$0xff] %v4999_v36  ;;  %v3534_v42 = vpop.f32.mrb[108].mxu1  ;;  %v3647_v25 = vpop.f32.mrb[44].mxu0 }
 0x2ce   :  { %v3962_v45 = vmax.f32 %v3534_v42, 0.0  ;;  %v3964_v55 = vmax.f32 %v3647_v25, 0.0  ;;  %v3536_v56 = vpop.f32.mrb[109].mxu1  ;;  %v3649_v47 = vpop.f32.mrb[45].mxu0 }
 0x2cf   :  { %v3963_v58 = vmax.f32 %v3536_v56, 0.0  ;;  %v3965_v63 = vmax.f32 %v3649_v47, 0.0  ;;  %v3538_v48 = vpop.f32.mrb[110].mxu1  ;;  %v3651_v4 = vpop.f32.mrb[46].mxu0 }
 0x2d0   :  { %v3972_v40 = vmax.f32 %v3538_v48, 0.0  ;;  %v3974_v43 = vmax.f32 %v3651_v4, 0.0  ;;  %v3540_v10 = vpop.f32.mrb[111].mxu1  ;;  %v3653_v23 = vpop.f32.mrb[47].mxu0 }
 0x2d1   :  { %v5003_v18 = vpack.c.bf16 %v3963_v58, %v3962_v45  ;;  %v5004_v9 = vpack.c.bf16 %v3965_v63, %v3964_v55  ;;  %v3973_v28 = vmax.f32 %v3540_v10, 0.0  ;;  %v3975_v60 = vmax.f32 %v3653_v23, 0.0 }
 0x2d3   :  { %4529 = vst [vmem:[%s7361_s4 + $0x248] sm:$0xff] %v5003_v18  ;;  %4530 = vst [vmem:[%s7361_s4 + $0x250] sm:$0xff] %v5004_v9  ;;  %v5008_v3 = vpack.c.bf16 %v3973_v28, %v3972_v40  ;;  %v5009_v5 = vpack.c.bf16 %v3975_v60, %v3974_v43 }
 0x2d5   :  { %4534 = vst [vmem:[%s7361_s4 + $0x270] sm:$0xff] %v5008_v3  ;;  %4535 = vst [vmem:[%s7361_s4 + $0x278] sm:$0xff] %v5009_v5 }

</bundles_post_ra>
